<compile_context>
chip_gen: v5e
topology: v5e:2x2
jax: 0.10.0
libtpu: 0.0.40
codegen_flags: <defaults>
</compile_context>

<pallas_src>
import functools

import jax
import jax.numpy as jnp
import numpy as np
from jax import lax
from jax.experimental import pallas as pl
from jax.experimental.pallas import tpu as pltpu


def _round_up(x, m):
    return (x + m - 1) // m * m


def _shifted_cat(flat, c):
    """Return ([flat | flat<<1 | flat<<2] along lanes, flat<<1).

    flat: (L, c) flattened lane-dense strip.  Shifted tails are zero (they only ever
    land in columns that are masked / never stored).
    """
    z1 = jnp.zeros((1, c), flat.dtype)
    z2 = jnp.zeros((2, c), flat.dtype)
    s1 = jnp.concatenate([flat[1:], z1], axis=0)
    s2 = jnp.concatenate([flat[2:], z2], axis=0)
    cat = jnp.concatenate([flat, s1, s2], axis=-1)   # (L, 3c)
    return cat, s1


def _conv3x3_flat(cat, w_fold_ref, b_ref, out_rows, wx):
    """3x3 conv on a flattened strip.

    cat:        (L, 3C) lane-concatenation of dw = 0/1/2 shifted inputs, L = (out_rows+2)*wx
    w_fold_ref: (3, 3C, C) per-dh weights with the kw taps stacked along K
    Returns (out_rows*wx, C) f32 accumulator with bias added.
    """
    m = out_rows * wx
    acc = jnp.dot(cat[0:m], w_fold_ref[0], preferred_element_type=jnp.float32)
    acc = acc + jnp.dot(cat[wx:wx + m], w_fold_ref[1],
                        preferred_element_type=jnp.float32)
    acc = acc + jnp.dot(cat[2 * wx:2 * wx + m], w_fold_ref[2],
                        preferred_element_type=jnp.float32)
    return acc + b_ref[...]


def _resblock_kernel(x_hbm, w1_ref, b1_ref, w2_ref, b2_ref, o_ref, xbuf, sem,
                     *, th, wx, w_img, h_img, c_pad, res_scale):
    # x_hbm : (N, H+4, wx, c_pad) padded input, stays in HBM (pl.ANY)
    # w*_ref: (3, 3*c_pad, c_pad) folded weights (resident in VMEM)
    # b*_ref: (1, c_pad)
    # o_ref : (1, th, w_img, c_pad) output tile
    # xbuf  : VMEM scratch (th+4, wx, c_pad) for the halo'd input window
    n = pl.program_id(0)
    h = pl.program_id(1)
    t0 = h * th                                   # first output row of this tile
    row0 = pl.multiple_of(t0, 8) if th % 8 == 0 else t0

    # Manual DMA: fetch this tile's (th+4)-row halo window straight from HBM.
    cp = pltpu.make_async_copy(x_hbm.at[n, pl.ds(row0, th + 4)], xbuf, sem.at[0])
    cp.start()
    cp.wait()

    # Flatten (free: wx % 8 == 0, c_pad % 128 == 0).
    xflat = xbuf[...].reshape((th + 4) * wx, c_pad)

    # ---- conv1 + bias + ReLU : 3 MXU calls with K = 3*c_pad ----
    xcat, xs1 = _shifted_cat(xflat, c_pad)
    mid = jnp.maximum(_conv3x3_flat(xcat, w1_ref, b1_ref, th + 2, wx), 0.0)

    # Zero rows that fall outside the image (conv2's zero padding in H) and the
    # garbage columns >= w_img (conv1 evaluated on pad / shift-wrap columns).
    mid3 = mid.reshape(th + 2, wx, c_pad)
    row_id = lax.broadcasted_iota(jnp.int32, (th + 2, wx, c_pad), 0) + (t0 - 1)
    col_id = lax.broadcasted_iota(jnp.int32, (th + 2, wx, c_pad), 1)
    valid = (row_id >= 0) & (row_id < h_img) & (col_id < w_img)
    mid3 = jnp.where(valid, mid3, 0.0)

    # Shift the flat strip by +1: inserts conv2's left zero-pad column
    # (column W's zero pad already comes from the mask above).
    midflat = mid3.reshape((th + 2) * wx, c_pad)
    midflat = jnp.concatenate(
        [jnp.zeros((1, c_pad), jnp.float32), midflat[:-1]], axis=0)

    # ---- conv2 + bias ----
    mcat, _ = _shifted_cat(midflat, c_pad)
    y = _conv3x3_flat(mcat, w2_ref, b2_ref, th, wx)      # (th*wx, c_pad)

    # ---- residual add:  identity[o, j] = x[t0+o, j] = xflat[(o+2)*wx + j + 1] ----
    ident = xs1[2 * wx:2 * wx + th * wx]
    out = (ident + y * res_scale).reshape(th, wx, c_pad)

    o_ref[0] = out[:, :w_img, :].astype(o_ref.dtype)


def residual_block_no_bn(x_nchw, w1, b1, w2, b2, res_scale=1.0, tile_h=None):
    """x_nchw: (N, C, H, W) f32; w*: (Cout, Cin, 3, 3) PyTorch layout; b*: (C,)."""
    n, c, h_img, w_img = x_nchw.shape
    c_pad = _round_up(c, 128)                    # lane-dense channels
    wx = _round_up(w_img + 2, 8)                 # sublane-aligned padded width

    # Generation-aware spatial tile: pick TH from the chip's VMEM capacity
    # (v7x: 64 MiB -> smaller tile; v5e/v6e: 128 MiB).
    try:
        vmem_bytes = int(getattr(pltpu.get_tpu_info(), "vmem_capacity_bytes",
                                 128 * 1024 * 1024))
    except Exception:  # pragma: no cover - conservative fallback
        vmem_bytes = 128 * 1024 * 1024
    if tile_h is None:
        budget = vmem_bytes // 3                 # headroom for temps / weights / out
        tile_h = max(budget // (24 * wx * c_pad * 4) - 4, 1)
    tile_h = int(min(tile_h, h_img))
    while h_img % tile_h:                        # make it divide H
        tile_h -= 1
    n_h = h_img // tile_h

    # NCHW -> NHWC; pad H by 2 each side (2-row halo for two stacked 3x3 convs),
    # W by 1 left / (wx - W - 1) right, C up to c_pad.  Single fused relayout pass.
    x_nhwc = jnp.transpose(x_nchw, (0, 2, 3, 1)).astype(jnp.float32)
    x_h = jnp.pad(x_nhwc, ((0, 0), (2, 2), (1, wx - w_img - 1), (0, c_pad - c)))

    def fold(wgt):
        # (Cout, Cin, kh, kw) -> (kh, kw, Cin, Cout), pad channels, stack kw into K.
        wt = jnp.transpose(wgt, (2, 3, 1, 0)).astype(jnp.float32)
        wt = jnp.pad(wt, ((0, 0), (0, 0), (0, c_pad - c), (0, c_pad - c)))
        return wt.reshape(3, 3 * c_pad, c_pad)

    w1f, w2f = fold(w1), fold(w2)
    b1p = jnp.pad(b1.astype(jnp.float32), (0, c_pad - c)).reshape(1, c_pad)
    b2p = jnp.pad(b2.astype(jnp.float32), (0, c_pad - c)).reshape(1, c_pad)

    kernel = functools.partial(
        _resblock_kernel, th=tile_h, wx=wx, w_img=w_img, h_img=h_img,
        c_pad=c_pad, res_scale=float(res_scale))

    out = pl.pallas_call(
        kernel,
        out_shape=jax.ShapeDtypeStruct((n, h_img, w_img, c_pad), x_nchw.dtype),
        grid_spec=pltpu.PrefetchScalarGridSpec(
            num_scalar_prefetch=0,
            grid=(n, n_h),
            in_specs=[
                pl.BlockSpec(memory_space=pl.ANY),                       # x stays in HBM
                pl.BlockSpec((3, 3 * c_pad, c_pad), lambda i, j: (0, 0, 0)),
                pl.BlockSpec((1, c_pad), lambda i, j: (0, 0)),
                pl.BlockSpec((3, 3 * c_pad, c_pad), lambda i, j: (0, 0, 0)),
                pl.BlockSpec((1, c_pad), lambda i, j: (0, 0)),
            ],
            out_specs=pl.BlockSpec((1, tile_h, w_img, c_pad),
                                   lambda i, j: (i, j, 0, 0)),
            scratch_shapes=[
                pltpu.VMEM((tile_h + 4, wx, c_pad), jnp.float32),
                pltpu.SemaphoreType.DMA((1,)),
            ],
        ),
        compiler_params=pltpu.CompilerParams(
            dimension_semantics=("parallel", "parallel"),
            vmem_limit_bytes=min(vmem_bytes, 100 * 1024 * 1024),
        ),
    )(x_h, w1f, b1p, w2f, b2p)

    # Drop channel padding, back to NCHW.
    return jnp.transpose(out[..., :c], (0, 3, 1, 2))


def _reference(x, w1, b1, w2, b2, res_scale):
    """Pure-JAX reference (NCHW, matches PyTorch conv2d semantics)."""
    dn = lax.conv_dimension_numbers(x.shape, w1.shape, ("NCHW", "OIHW", "NCHW"))
    y = lax.conv_general_dilated(x, w1, (1, 1), ((1, 1), (1, 1)),
                                 dimension_numbers=dn)
    y = jnp.maximum(y + b1.reshape(1, -1, 1, 1), 0.0)
    y = lax.conv_general_dilated(y, w2, (1, 1), ((1, 1), (1, 1)),
                                 dimension_numbers=dn)
    y = y + b2.reshape(1, -1, 1, 1)
    return x + y * res_scale


if __name__ == "__main__":
    # Small shapes consistent with the module's forward (n, c, h, w).
    N, C, H, W = 2, 8, 16, 16
    res_scale = 0.5

    key = jax.random.PRNGKey(0)
    kx, kw1, kw2, kb1, kb2 = jax.random.split(key, 5)

    x = jax.random.normal(kx, (N, C, H, W), dtype=jnp.float32)

    # Kaiming-style (fan_in, a=0) init scaled by 0.1, plus small non-zero biases.
    fan_in = C * 3 * 3
    std = (2.0 / fan_in) ** 0.5
    w1 = jax.random.normal(kw1, (C, C, 3, 3), jnp.float32) * std * 0.1
    w2 = jax.random.normal(kw2, (C, C, 3, 3), jnp.float32) * std * 0.1
    b1 = jax.random.normal(kb1, (C,), jnp.float32) * 0.01
    b2 = jax.random.normal(kb2, (C,), jnp.float32) * 0.01

    ref = _reference(x, w1, b1, w2, b2, res_scale)

    # Forced spatial tiling (2 h-tiles per image) exercises the halo / border-mask path.
    out_tiled = jax.block_until_ready(
        residual_block_no_bn(x, w1, b1, w2, b2, res_scale=res_scale, tile_h=8))
    np.testing.assert_allclose(np.asarray(out_tiled), np.asarray(ref),
                               rtol=2e-5, atol=2e-5)

    # Auto (VMEM-aware) tile selection.
    out_auto = jax.block_until_ready(
        residual_block_no_bn(x, w1, b1, w2, b2, res_scale=res_scale))
    np.testing.assert_allclose(np.asarray(out_auto), np.asarray(ref),
                               rtol=2e-5, atol=2e-5)

    print("KERNEL_OK")
</pallas_src>

<mosaic_0001>
module attributes {stable_mosaic.version = 11 : i64} {
  func.func @_resblock_kernel(%arg0: i32, %arg1: i32, %arg2: memref<2x20x24x128xf32, #tpu.memory_space<any>>, %arg3: memref<3x384x128xf32, #tpu.memory_space<vmem>>, %arg4: memref<1x128xf32, #tpu.memory_space<vmem>>, %arg5: memref<3x384x128xf32, #tpu.memory_space<vmem>>, %arg6: memref<1x128xf32, #tpu.memory_space<vmem>>, %arg7: memref<1x8x16x128xf32, #tpu.memory_space<vmem>>, %arg8: memref<12x24x128xf32, #tpu.memory_space<vmem>>, %arg9: memref<1x!tpu.dma_semaphore, #tpu.memory_space<semaphore_mem>>) attributes {dimension_semantics = [#tpu.dimension_semantics<parallel>, #tpu.dimension_semantics<parallel>], iteration_bounds = array<i64: 2, 2>, scalar_prefetch = 0 : i64, scratch_operands = 2 : i64, tpu.core_type = #tpu.core_type<tc>, window_params = [{}, {pipeline_mode = #tpu.pipeline_mode<synchronous>, transform_indices = @transform_1, window_bounds = array<i64: 3, 384, 128>}, {pipeline_mode = #tpu.pipeline_mode<synchronous>, transform_indices = @transform_2, window_bounds = array<i64: 1, 128>}, {pipeline_mode = #tpu.pipeline_mode<synchronous>, transform_indices = @transform_3, window_bounds = array<i64: 3, 384, 128>}, {pipeline_mode = #tpu.pipeline_mode<synchronous>, transform_indices = @transform_4, window_bounds = array<i64: 1, 128>}, {transform_indices = @transform_5, window_bounds = array<i64: 1, 8, 16, 128>}]} {
    %c8_i32 = arith.constant 8 : i32
    %0 = arith.muli %arg1, %c8_i32 : i32
    %1 = tpu.assume_multiple %0, 8 : i32
    %c0_i32 = arith.constant 0 : i32
    %c0_i32_0 = arith.constant 0 : i32
    %c0_i32_1 = arith.constant 0 : i32
    %2 = tpu.memref_slice %arg2[%arg0, %1, %c0_i32_0, %c0_i32_1] : memref<2x20x24x128xf32, #tpu.memory_space<any>> -> memref<1x12x24x128xf32, #tpu.memory_space<any>>
    %3 = tpu.memref_squeeze %2 : memref<1x12x24x128xf32, #tpu.memory_space<any>> -> memref<12x24x128xf32, #tpu.memory_space<any>>
    %4 = tpu.memref_slice %arg9[%c0_i32] : memref<1x!tpu.dma_semaphore, #tpu.memory_space<semaphore_mem>> -> memref<1x!tpu.dma_semaphore, #tpu.memory_space<semaphore_mem>>
    %5 = tpu.memref_squeeze %4 : memref<1x!tpu.dma_semaphore, #tpu.memory_space<semaphore_mem>> -> memref<!tpu.dma_semaphore, #tpu.memory_space<semaphore_mem>>
    tpu.enqueue_dma source(%3 : memref<12x24x128xf32, #tpu.memory_space<any>>) target(%arg8 : memref<12x24x128xf32, #tpu.memory_space<vmem>>) target_semaphore(%5 : memref<!tpu.dma_semaphore, #tpu.memory_space<semaphore_mem>>)
    %c0_i32_2 = arith.constant 0 : i32
    %c0_i32_3 = arith.constant 0 : i32
    %c0_i32_4 = arith.constant 0 : i32
    %6 = tpu.memref_slice %arg2[%arg0, %1, %c0_i32_3, %c0_i32_4] : memref<2x20x24x128xf32, #tpu.memory_space<any>> -> memref<1x12x24x128xf32, #tpu.memory_space<any>>
    %7 = tpu.memref_squeeze %6 : memref<1x12x24x128xf32, #tpu.memory_space<any>> -> memref<12x24x128xf32, #tpu.memory_space<any>>
    %8 = tpu.memref_slice %arg9[%c0_i32_2] : memref<1x!tpu.dma_semaphore, #tpu.memory_space<semaphore_mem>> -> memref<1x!tpu.dma_semaphore, #tpu.memory_space<semaphore_mem>>
    %9 = tpu.memref_squeeze %8 : memref<1x!tpu.dma_semaphore, #tpu.memory_space<semaphore_mem>> -> memref<!tpu.dma_semaphore, #tpu.memory_space<semaphore_mem>>
    tpu.wait_dma2 semaphore(%9 : memref<!tpu.dma_semaphore, #tpu.memory_space<semaphore_mem>>) src(%7 : memref<12x24x128xf32, #tpu.memory_space<any>>) dst(%arg8 : memref<12x24x128xf32, #tpu.memory_space<vmem>>)
    %c0 = arith.constant 0 : index
    %c0_5 = arith.constant 0 : index
    %c0_6 = arith.constant 0 : index
    %10 = vector.load %arg8[%c0, %c0_5, %c0_6] : memref<12x24x128xf32, #tpu.memory_space<vmem>>, vector<12x24x128xf32>
    %11 = vector.shape_cast %10 : vector<12x24x128xf32> to vector<288x128xf32>
    %cst = arith.constant 0.000000e+00 : f32
    %12 = vector.broadcast %cst : f32 to vector<1x128xf32>
    %cst_7 = arith.constant 0.000000e+00 : f32
    %13 = vector.broadcast %cst_7 : f32 to vector<2x128xf32>
    %14 = vector.extract_strided_slice %11 {offsets = [1, 0], sizes = [287, 128], strides = [1, 1]} : vector<288x128xf32> to vector<287x128xf32>
    %15 = tpu.concatenate %14, %12 in 0 : vector<287x128xf32>, vector<1x128xf32> -> vector<288x128xf32>
    %16 = vector.extract_strided_slice %11 {offsets = [2, 0], sizes = [286, 128], strides = [1, 1]} : vector<288x128xf32> to vector<286x128xf32>
    %17 = tpu.concatenate %16, %13 in 0 : vector<286x128xf32>, vector<2x128xf32> -> vector<288x128xf32>
    %18 = tpu.concatenate %11, %15, %17 in 1 : vector<288x128xf32>, vector<288x128xf32>, vector<288x128xf32> -> vector<288x384xf32>
    %19 = vector.extract_strided_slice %18 {offsets = [0, 0], sizes = [240, 384], strides = [1, 1]} : vector<288x384xf32> to vector<240x384xf32>
    %c0_8 = arith.constant 0 : index
    %c0_9 = arith.constant 0 : index
    %c0_10 = arith.constant 0 : index
    %20 = vector.load %arg3[%c0_8, %c0_9, %c0_10] : memref<3x384x128xf32, #tpu.memory_space<vmem>>, vector<1x384x128xf32>
    %21 = vector.shape_cast %20 : vector<1x384x128xf32> to vector<384x128xf32>
    %cst_11 = arith.constant dense<0.000000e+00> : vector<240x128xf32>
    %22 = tpu.matmul %19, %21, %cst_11 {dimension_numbers = #tpu.dot_dimension_numbers<[1], [0], [0], [1], [0, 0, 1, 1], [], []>} : vector<240x384xf32>, vector<384x128xf32>, vector<240x128xf32> -> vector<240x128xf32>
    %23 = vector.extract_strided_slice %18 {offsets = [24, 0], sizes = [240, 384], strides = [1, 1]} : vector<288x384xf32> to vector<240x384xf32>
    %c1 = arith.constant 1 : index
    %c0_12 = arith.constant 0 : index
    %c0_13 = arith.constant 0 : index
    %24 = vector.load %arg3[%c1, %c0_12, %c0_13] : memref<3x384x128xf32, #tpu.memory_space<vmem>>, vector<1x384x128xf32>
    %25 = vector.shape_cast %24 : vector<1x384x128xf32> to vector<384x128xf32>
    %cst_14 = arith.constant dense<0.000000e+00> : vector<240x128xf32>
    %26 = tpu.matmul %23, %25, %cst_14 {dimension_numbers = #tpu.dot_dimension_numbers<[1], [0], [0], [1], [0, 0, 1, 1], [], []>} : vector<240x384xf32>, vector<384x128xf32>, vector<240x128xf32> -> vector<240x128xf32>
    %27 = arith.addf %22, %26 : vector<240x128xf32>
    %28 = vector.extract_strided_slice %18 {offsets = [48, 0], sizes = [240, 384], strides = [1, 1]} : vector<288x384xf32> to vector<240x384xf32>
    %c2 = arith.constant 2 : index
    %c0_15 = arith.constant 0 : index
    %c0_16 = arith.constant 0 : index
    %29 = vector.load %arg3[%c2, %c0_15, %c0_16] : memref<3x384x128xf32, #tpu.memory_space<vmem>>, vector<1x384x128xf32>
    %30 = vector.shape_cast %29 : vector<1x384x128xf32> to vector<384x128xf32>
    %cst_17 = arith.constant dense<0.000000e+00> : vector<240x128xf32>
    %31 = tpu.matmul %28, %30, %cst_17 {dimension_numbers = #tpu.dot_dimension_numbers<[1], [0], [0], [1], [0, 0, 1, 1], [], []>} : vector<240x384xf32>, vector<384x128xf32>, vector<240x128xf32> -> vector<240x128xf32>
    %32 = arith.addf %27, %31 : vector<240x128xf32>
    %c0_18 = arith.constant 0 : index
    %c0_19 = arith.constant 0 : index
    %33 = vector.load %arg4[%c0_18, %c0_19] : memref<1x128xf32, #tpu.memory_space<vmem>>, vector<1x128xf32>
    %34 = vector.broadcast %33 : vector<1x128xf32> to vector<240x128xf32>
    %35 = arith.addf %32, %34 : vector<240x128xf32>
    %cst_20 = arith.constant 0.000000e+00 : f32
    %36 = vector.broadcast %cst_20 : f32 to vector<240x128xf32>
    %37 = arith.maximumf %35, %36 : vector<240x128xf32>
    %38 = vector.shape_cast %37 : vector<240x128xf32> to vector<10x24x128xf32>
    %39 = tpu.iota {dimensions = array<i32: 0>} : vector<10x24x128xi32>
    %c1_i32 = arith.constant 1 : i32
    %40 = arith.subi %0, %c1_i32 : i32
    %41 = vector.broadcast %40 : i32 to vector<10x24x128xi32>
    %42 = arith.addi %39, %41 : vector<10x24x128xi32>
    %43 = tpu.iota {dimensions = array<i32: 1>} : vector<10x24x128xi32>
    %c0_i32_21 = arith.constant 0 : i32
    %44 = vector.broadcast %c0_i32_21 : i32 to vector<10x24x128xi32>
    %45 = arith.cmpi sge, %42, %44 : vector<10x24x128xi32>
    %c16_i32 = arith.constant 16 : i32
    %46 = vector.broadcast %c16_i32 : i32 to vector<10x24x128xi32>
    %47 = arith.cmpi slt, %42, %46 : vector<10x24x128xi32>
    %48 = arith.andi %45, %47 : vector<10x24x128xi1>
    %c16_i32_22 = arith.constant 16 : i32
    %49 = vector.broadcast %c16_i32_22 : i32 to vector<10x24x128xi32>
    %50 = arith.cmpi slt, %43, %49 : vector<10x24x128xi32>
    %51 = arith.andi %48, %50 : vector<10x24x128xi1>
    %cst_23 = arith.constant 0.000000e+00 : f32
    %52 = vector.broadcast %cst_23 : f32 to vector<10x24x128xf32>
    %53 = arith.select %51, %38, %52 : vector<10x24x128xi1>, vector<10x24x128xf32>
    %54 = vector.shape_cast %53 : vector<10x24x128xf32> to vector<240x128xf32>
    %cst_24 = arith.constant 0.000000e+00 : f32
    %55 = vector.broadcast %cst_24 : f32 to vector<1x128xf32>
    %56 = vector.extract_strided_slice %54 {offsets = [0, 0], sizes = [239, 128], strides = [1, 1]} : vector<240x128xf32> to vector<239x128xf32>
    %57 = tpu.concatenate %55, %56 in 0 : vector<1x128xf32>, vector<239x128xf32> -> vector<240x128xf32>
    %cst_25 = arith.constant 0.000000e+00 : f32
    %58 = vector.broadcast %cst_25 : f32 to vector<1x128xf32>
    %cst_26 = arith.constant 0.000000e+00 : f32
    %59 = vector.broadcast %cst_26 : f32 to vector<2x128xf32>
    %60 = vector.extract_strided_slice %57 {offsets = [1, 0], sizes = [239, 128], strides = [1, 1]} : vector<240x128xf32> to vector<239x128xf32>
    %61 = tpu.concatenate %60, %58 in 0 : vector<239x128xf32>, vector<1x128xf32> -> vector<240x128xf32>
    %62 = vector.extract_strided_slice %57 {offsets = [2, 0], sizes = [238, 128], strides = [1, 1]} : vector<240x128xf32> to vector<238x128xf32>
    %63 = tpu.concatenate %62, %59 in 0 : vector<238x128xf32>, vector<2x128xf32> -> vector<240x128xf32>
    %64 = tpu.concatenate %57, %61, %63 in 1 : vector<240x128xf32>, vector<240x128xf32>, vector<240x128xf32> -> vector<240x384xf32>
    %65 = vector.extract_strided_slice %64 {offsets = [0, 0], sizes = [192, 384], strides = [1, 1]} : vector<240x384xf32> to vector<192x384xf32>
    %c0_27 = arith.constant 0 : index
    %c0_28 = arith.constant 0 : index
    %c0_29 = arith.constant 0 : index
    %66 = vector.load %arg5[%c0_27, %c0_28, %c0_29] : memref<3x384x128xf32, #tpu.memory_space<vmem>>, vector<1x384x128xf32>
    %67 = vector.shape_cast %66 : vector<1x384x128xf32> to vector<384x128xf32>
    %cst_30 = arith.constant dense<0.000000e+00> : vector<192x128xf32>
    %68 = tpu.matmul %65, %67, %cst_30 {dimension_numbers = #tpu.dot_dimension_numbers<[1], [0], [0], [1], [0, 0, 1, 1], [], []>} : vector<192x384xf32>, vector<384x128xf32>, vector<192x128xf32> -> vector<192x128xf32>
    %69 = vector.extract_strided_slice %64 {offsets = [24, 0], sizes = [192, 384], strides = [1, 1]} : vector<240x384xf32> to vector<192x384xf32>
    %c1_31 = arith.constant 1 : index
    %c0_32 = arith.constant 0 : index
    %c0_33 = arith.constant 0 : index
    %70 = vector.load %arg5[%c1_31, %c0_32, %c0_33] : memref<3x384x128xf32, #tpu.memory_space<vmem>>, vector<1x384x128xf32>
    %71 = vector.shape_cast %70 : vector<1x384x128xf32> to vector<384x128xf32>
    %cst_34 = arith.constant dense<0.000000e+00> : vector<192x128xf32>
    %72 = tpu.matmul %69, %71, %cst_34 {dimension_numbers = #tpu.dot_dimension_numbers<[1], [0], [0], [1], [0, 0, 1, 1], [], []>} : vector<192x384xf32>, vector<384x128xf32>, vector<192x128xf32> -> vector<192x128xf32>
    %73 = arith.addf %68, %72 : vector<192x128xf32>
    %74 = vector.extract_strided_slice %64 {offsets = [48, 0], sizes = [192, 384], strides = [1, 1]} : vector<240x384xf32> to vector<192x384xf32>
    %c2_35 = arith.constant 2 : index
    %c0_36 = arith.constant 0 : index
    %c0_37 = arith.constant 0 : index
    %75 = vector.load %arg5[%c2_35, %c0_36, %c0_37] : memref<3x384x128xf32, #tpu.memory_space<vmem>>, vector<1x384x128xf32>
    %76 = vector.shape_cast %75 : vector<1x384x128xf32> to vector<384x128xf32>
    %cst_38 = arith.constant dense<0.000000e+00> : vector<192x128xf32>
    %77 = tpu.matmul %74, %76, %cst_38 {dimension_numbers = #tpu.dot_dimension_numbers<[1], [0], [0], [1], [0, 0, 1, 1], [], []>} : vector<192x384xf32>, vector<384x128xf32>, vector<192x128xf32> -> vector<192x128xf32>
    %78 = arith.addf %73, %77 : vector<192x128xf32>
    %c0_39 = arith.constant 0 : index
    %c0_40 = arith.constant 0 : index
    %79 = vector.load %arg6[%c0_39, %c0_40] : memref<1x128xf32, #tpu.memory_space<vmem>>, vector<1x128xf32>
    %80 = vector.broadcast %79 : vector<1x128xf32> to vector<192x128xf32>
    %81 = arith.addf %78, %80 : vector<192x128xf32>
    %82 = vector.extract_strided_slice %15 {offsets = [48, 0], sizes = [192, 128], strides = [1, 1]} : vector<288x128xf32> to vector<192x128xf32>
    %cst_41 = arith.constant 5.000000e-01 : f32
    %83 = vector.broadcast %cst_41 : f32 to vector<192x128xf32>
    %84 = arith.mulf %81, %83 : vector<192x128xf32>
    %85 = arith.addf %82, %84 : vector<192x128xf32>
    %86 = vector.shape_cast %85 : vector<192x128xf32> to vector<8x24x128xf32>
    %87 = vector.extract_strided_slice %86 {offsets = [0, 0, 0], sizes = [8, 16, 128], strides = [1, 1, 1]} : vector<8x24x128xf32> to vector<8x16x128xf32>
    %c0_42 = arith.constant 0 : index
    %c0_43 = arith.constant 0 : index
    %c0_44 = arith.constant 0 : index
    %c0_45 = arith.constant 0 : index
    %88 = vector.load %arg7[%c0_42, %c0_43, %c0_44, %c0_45] : memref<1x8x16x128xf32, #tpu.memory_space<vmem>>, vector<1x8x16x128xf32>
    %89 = vector.shape_cast %88 : vector<1x8x16x128xf32> to vector<8x16x128xf32>
    %90 = vector.shape_cast %87 : vector<8x16x128xf32> to vector<1x8x16x128xf32>
    tpu.vector_store %arg7[%c0_42, %c0_43, %c0_44, %c0_45], %90 {strides = array<i32>} : memref<1x8x16x128xf32, #tpu.memory_space<vmem>>, vector<1x8x16x128xf32>,
    return
  }
  func.func @transform_1(%arg0: i32, %arg1: i32) -> (i32, i32, i32) {
    %c0_i32 = arith.constant 0 : i32
    %c0_i32_0 = arith.constant 0 : i32
    %c0_i32_1 = arith.constant 0 : i32
    %c0_i32_2 = arith.constant 0 : i32
    return %c0_i32, %c0_i32_0, %c0_i32_1 : i32, i32, i32
  }
  func.func @transform_2(%arg0: i32, %arg1: i32) -> (i32, i32) {
    %c0_i32 = arith.constant 0 : i32
    %c0_i32_0 = arith.constant 0 : i32
    %c0_i32_1 = arith.constant 0 : i32
    return %c0_i32, %c0_i32_0 : i32, i32
  }
  func.func @transform_3(%arg0: i32, %arg1: i32) -> (i32, i32, i32) {
    %c0_i32 = arith.constant 0 : i32
    %c0_i32_0 = arith.constant 0 : i32
    %c0_i32_1 = arith.constant 0 : i32
    %c0_i32_2 = arith.constant 0 : i32
    return %c0_i32, %c0_i32_0, %c0_i32_1 : i32, i32, i32
  }
  func.func @transform_4(%arg0: i32, %arg1: i32) -> (i32, i32) {
    %c0_i32 = arith.constant 0 : i32
    %c0_i32_0 = arith.constant 0 : i32
    %c0_i32_1 = arith.constant 0 : i32
    return %c0_i32, %c0_i32_0 : i32, i32
  }
  func.func @transform_5(%arg0: i32, %arg1: i32) -> (i32, i32, i32, i32) {
    %c0_i32 = arith.constant 0 : i32
    %c0_i32_0 = arith.constant 0 : i32
    %c0_i32_1 = arith.constant 0 : i32
    return %arg0, %arg1, %c0_i32, %c0_i32_0 : i32, i32, i32, i32
  }
}

</mosaic_0001>

<bundles_post_ra>
// kernel: tpu_custom_call.1
= control target key start
LH: loop header
LB: loop body
LE: loop exit
PB: predicated region body
PF: predicated region fallthrough
CT: control target
= control target key end

     0   :  { %s5810_s0 = inlined_call_operand.hbm [shape: f32[2,20,24,128], index: 0, kind: input, shape index: {}]   ;;  %s5811_s1 = inlined_call_operand.hbm [shape: f32[3,384,128], index: 1, kind: input, shape index: {}]   ;;  %s5812_s2 = inlined_call_operand.vmem [shape: f32[1,128], index: 2, kind: input, shape index: {}]   ;;  %s5813_s3 = inlined_call_operand.hbm [shape: f32[3,384,128], index: 3, kind: input, shape index: {}]   ;;  %s5814_s4 = inlined_call_operand.vmem [shape: f32[1,128], index: 4, kind: input, shape index: {}]   ;;  %s5815_s5 = inlined_call_operand.hbm [shape: f32[2,16,16,128], index: 5, kind: output, shape index: {}]  }
   0x1   :  { %5977 = sst [smem:[#allocation135_spill]] %s5811_s1 }
   0x2   :  { %5978 = sst [smem:[#allocation136_spill]] %s5813_s3 }
   0x3   :  { %10 = vsyncpa [#allocation5], 0 }
   0x4   :  { %11 = vsyncpa [#allocation8], 0 }
   0x5   :  { %12 = vsyncpa [#allocation6], 0 }
   0x6   :  { %14 = vsyncpa [#allocation6 + $0x1], 0  ;;  %s3673_s18 = smov 0   ;;  %s3675_s19 = smov 0  }
   0x7   :  { %s3677_s20 = smov 0   ;;  %s3679_s21 = smov 0  }
   0x8   :  { %s3681_s22 = smov 0   ;;  %s3683_s23 = smov 0  }
   0x9   :  { %s3685_s24 = smov 0   ;;  %s3687_s25 = smov 0  }
   0xa LB: > { %5979 = sst [smem:[#allocation18_spill]] %s3629_s24  ;;  %s3225_s26 = sadd.s32 4294967295, %s3633_s25   ;;  %s3633_s25 = sphi %s3687_s25, %s20_s25   ;;  %s3629_s24 = sphi %s3685_s24, %s6425_s24   ;;  %s3625_s23 = sphi %s3683_s23, %s6430_s23   ;;  %s3621_s22 = sphi %s3681_s22, %s6423_s22   ;;  %s3617_s21 = sphi %s3679_s21, %s6429_s21   ;;  %s3613_s20 = sphi %s3677_s20, %s6428_s20   ;;  %s3609_s19 = sphi %s3675_s19, %s6427_s19   ;;  %s3605_s18 = sphi %s3673_s18, %s6426_s18  }
   0xb   : > { %s3226_s27 = sadd.s32 4294967294, %s3633_s25   ;;  %s29_s28 = sadd.s32 1, %s3625_s23 }
   0xc   : > { %s32_s29 = sadd.s32 1, %s3629_s24  ;;  %p30_p0 = scmp.ge.s32.totalorder %s29_s28, 2 }
   0xd   : > { %s125_s30 = sadd.s32 1, %s3613_s20  ;;  %p135_p1 = scmp.ne.s32.totalorder %s3613_s20, %s3609_s19 }
   0xe   : > { %p136_p2 = scmp.eq.s32.totalorder %s3225_s26, 3  ;;  %s6432_s28 = smov (%p30_p0, %s29_s28), 0 }
   0xf   : > { %5980 = sst [smem:[#allocation19_spill]] %s6432_s28  ;;  %s6434_s29 = smov (!%p30_p0, %s32_s29), %s3629_s24 }
  0x10   : > { %s121_s6 = ssub.s32 %s3625_s23, %s6432_s28  ;;  %p3725_p3 = por %p136_p2, %p135_p1 }
  0x11   : > { %p34_p4 = scmp.ge.s32.totalorder %s6434_s29, 2  ;;  %p141_p5 = scmp.ne.s32.totalorder %s3609_s19, %s3605_s18 }
  0x12   : > { %p142_p6 = scmp.eq.s32.totalorder %s3226_s27, 3  ;;  %p3227_p7 = scmp.ge.s32.totalorder %s3633_s25, 1 }
  0x13   : > { %s6436_s29 = smov (%p34_p4, %s6434_s29), 0  ;;  %p149_p9 = scmp.lt.s32.totalorder %s3633_s25, 5 }
  0x14   : > { %5982 = sst [smem:[#allocation20_spill]] %s6436_s29  ;;  %p3734_p8 = por %p142_p6, %p141_p5 }
  0x15   : > { %s120_s9 = ssub.s32 %s3629_s24, %s6436_s29  ;;  %p3741_p10 = pnand %p3227_p7, %p149_p9 }
  0x16   : > { %s122_s10 = sor.u32 %s121_s6, %s120_s9  ;;  %p3745_p12 = scmp.eq.s32.totalorder %s3225_s26, 0 }
  0x17   : > { %p123_p11 = scmp.eq.s32.totalorder %s122_s10, 0  ;;  %p3310_p13 = pneg %p3741_p10 }
  0x18   : > { %s5986_s1 = sld [smem:[#allocation135_spill]]  ;;  %s3635_s17 = smov [#allocation4]  }
  0x19   : > { %s3755_s16 = scalar_select %p123_p11, %s3613_s20, %s125_s30  }
  0x1a   : > { %s162_s27 = sshll.u32 %s3635_s17, 4  ;;  %p3311_p0 = pnand %p3745_p12, %p3310_p13  ;;  %s163_s27 = int_to_ptr.vmem [resolvable:$true] %s162_s27 }
  0x1b   : > { %s3636_s6 = smov 128   ;;  %s3637_s26 = smov 8  }
  0x1c   : > { %s5987_s3 = sld [smem:[#allocation136_spill]]  ;;  %s3638_s28 = smov [#allocation7]  }
  0x1d   : > { %s179_s24 = sshll.u32 %s3638_s28, 4  ;;  %s180_s24 = int_to_ptr.vmem [resolvable:$true] %s179_s24 }
  0x1e   : > { %s160_s15 = sshll.u32 %s5986_s1, 4  ;;  %s161_s15 = int_to_ptr.hbm [resolvable:$true] %s160_s15 }
  0x1f   : > { %3313 = dma.hbm_to_vmem [thread:$0]  (!%p3311_p0), %s161_s15, 18432, %s163_s27, [#allocation5], %s3636_s6, %s3636_s6, %s3637_s26  }
  0x20   : > { %198 = sbr.rel (%p3741_p10) target bundleno = 1530 (0x5fa), region = 36 }
  0x22   : > { %s177_s29 = sshll.u32 %s5987_s3, 4  ;;  %s178_s29 = int_to_ptr.hbm [resolvable:$true] %s177_s29 }
  0x23   : > { %3316 = dma.hbm_to_vmem [thread:$0]  (!%p3311_p0), %s178_s29, 18432, %s180_s24, [#allocation8], %s3636_s6, %s3636_s6, %s3637_s26  }
  0x25   : > { %3590 = dma.done.wait (%p3745_p12), [#allocation5], 18432  }
  0x26   : > { %3592 = vsyncadd (%p3745_p12), [#allocation5], 4294948864 }
  0x27   : > { %3594 = dma.done.wait (%p3745_p12), [#allocation8], 18432  }
  0x28   : > { %3596 = vsyncadd (%p3745_p12), [#allocation8], 4294948864  ;;  %s5819_s24 = sand.u32 1, %s3609_s19   ;;  %s3235_s30 = smul.u32 192, %s3617_s21 }
  0x29   : > { %s3233_s29 = sshll.u32 %s5819_s24, 7  ;;  %s228_s11 = smul.u32 480, %s3621_s22 }
  0x2a   : > { %s3639_s14 = smov [#allocation2]   ;;  %s3509_s24 = scalar_lea.hbm %s5810_s0, 960 }
  0x2b   : > { %s229_s13 = sadd.s32 %s3235_s30, %s228_s11  ;;  %s240_s15 = sshll.u32 %s3639_s14, 4  ;;  %s241_s15 = int_to_ptr.vmem [resolvable:$true] %s240_s15 }
  0x2c   : > { %s230_s6 = scalar_lea.hbm %s5810_s0, %s229_s13 }
  0x2d   : > { %s238_s12 = sshll.u32 %s230_s6, 4  ;;  %s239_s12 = int_to_ptr.hbm [resolvable:$true] %s238_s12 }
  0x2e   : > { %s3505_s26 = sshra.s32 %s239_s12, 4  ;;  %s3506_s26 = int_to_ptr.hbm [resolvable:$true] %s3505_s26 }
  0x2f   : > { %s3507_s9 = scalar_lea.hbm %s3506_s26, 288  ;;  %p3510_p2 = scmp.lt.s32.totalorder %s3506_s26, %s5810_s0 }
  0x30   : > { %p3508_p1 = scmp.ne.s32.totalorder %s3506_s26, %s3507_s9  ;;  %p3511_p4 = scmp.lt.s32.totalorder %s3509_s24, %s3507_s9 }
  0x32   : > { %p3512_p5 = por %p3511_p4, %p3510_p2 }
  0x34   : > { %p3513_p6 = pnand %p3512_p5, %p3508_p1 }
  0x36   : > { %3516 = shalt.err (!%p3513_p6)  }
  0x37   : > { %243 = dma.hbm_to_vmem [thread:$0]  %s239_s12, 4608, %s241_s15, [#allocation3] }
  0x38   : > { %s3787_s30 = scalar_lea.vmem [#allocation9], %s3233_s29 }
  0x39   : > { %3597 = dma.done.wait [#allocation3], 4608 }
  0x3a   : > { %3598 = vsyncadd [#allocation3], 4294962688  ;;  %v602_v0 = vld [vmem:[#allocation4 + $0x1f8] sm:$0xff]  ;;  %v601_v2 = vld [vmem:[#allocation4 + $0x1f0] sm:$0xff]  ;;  %vm320_vm0 = vcmask 1046528   ;;  %vm429_vm1 = vcmask 1045504  }
  0x3b   : > { %v618_v1 = vld [vmem:[#allocation4 + $0x278] sm:$0xff]  ;;  %635 = vmatpush.msra.mxu0 %v602_v0  ;;  %v617_v3 = vld [vmem:[#allocation4 + $0x270] sm:$0xff]  ;;  %v600_v4 = vld [vmem:[#allocation4 + $0x1e8] sm:$0xff]  ;;  %s6154_s1 = sshll.u32 %s3617_s21, 3  ;;  %vm1879_vm5 = vcmask 1040384   ;;  %s3251_s15 = sshll.u32 %s3617_s21, 4 }
  0x3c   : > { %742 = vmatpush.msra.mxu1 %v618_v1  ;;  %3252 = vmatpush.msra.mxu3 %v618_v1  ;;  %v616_v5 = vld [vmem:[#allocation4 + $0x268] sm:$0xff]  ;;  %v599_v6 = vld [vmem:[#allocation4 + $0x1e0] sm:$0xff]  ;;  %v598_v8 = vld [vmem:[#allocation4 + $0x1d8] sm:$0xff]  ;;  %s3238_s3 = sadd.s32 4294967295, %s6154_s1  ;;  %s3246_s17 = sshll.u32 %s3621_s22, 5 }
  0x3d   : > { %636 = vmatpush.msra.mxu0 %v601_v2  ;;  %v615_v7 = vld [vmem:[#allocation4 + $0x260] sm:$0xff]  ;;  %v614_v9 = vld [vmem:[#allocation4 + $0x258] sm:$0xff]  ;;  %v597_v10 = vld [vmem:[#allocation4 + $0x1d0] sm:$0xff]  ;;  %s3123_s27 = sadd.s32 %s3251_s15, %s3246_s17  ;;  %s3126_s22 = sshll.u32 %s3787_s30, 4  ;;  %s3127_s22 = int_to_ptr.vmem [resolvable:$true] %s3126_s22 }
  0x3e   : > { %743 = vmatpush.msra.mxu1 %v617_v3  ;;  %3253 = vmatpush.msra.mxu3 %v617_v3  ;;  %v613_v11 = vld [vmem:[#allocation4 + $0x250] sm:$0xff]  ;;  %v596_v12 = vld [vmem:[#allocation4 + $0x1c8] sm:$0xff]  ;;  %v595_v14 = vld [vmem:[#allocation4 + $0x1c0] sm:$0xff]  ;;  %s3247_s6 = sshll.u32 %s3123_s27, 3  ;;  %s6422_s10 = sand.u32 1, %s3609_s19  }
  0x3f   : > { %637 = vmatpush.msra.mxu0 %v600_v4  ;;  %v612_v13 = vld [vmem:[#allocation4 + $0x248] sm:$0xff]  ;;  %v611_v15 = vld [vmem:[#allocation4 + $0x240] sm:$0xff]  ;;  %v3789_v16 = vld [vmem:[#allocation4 + $0x2f8] sm:$0xff]  ;;  %s3125_s21 = scalar_lea.hbm %s5815_s5, %s3247_s6  ;;  %s3111_s1 = scalar_lea.sflag [#allocation6], %s6422_s10 }
  0x40   : > { %744 = vmatpush.msra.mxu1 %v616_v5  ;;  %3254 = vmatpush.msra.mxu3 %v616_v5  ;;  %v594_v17 = vld [vmem:[#allocation4 + $0x1b8] sm:$0xff]  ;;  %v3791_v18 = vld [vmem:[#allocation4 + $0x2f0] sm:$0xff]  ;;  %v592_v22 = vld [vmem:[#allocation4 + $0x1a8] sm:$0xff]  ;;  %s3128_s9 = sshll.u32 %s3125_s21, 4  ;;  %s3549_s11 = scalar_lea.hbm %s5815_s5, 512  ;;  %s3129_s9 = int_to_ptr.hbm [resolvable:$true] %s3128_s9 }
  0x41   : > { %638 = vmatpush.msra.mxu0 %v599_v6  ;;  %v610_v19 = vld [vmem:[#allocation4 + $0x238] sm:$0xff]  ;;  %3268 = vmatpush.msra.mxu2 %v3789_v16  ;;  %v593_v20 = vld [vmem:[#allocation4 + $0x1b0] sm:$0xff]  ;;  %v608_v23 = vld [vmem:[#allocation4 + $0x228] sm:$0xff] }
  0x42   : > { %745 = vmatpush.msra.mxu1 %v615_v7  ;;  %3255 = vmatpush.msra.mxu3 %v615_v7  ;;  %v609_v21 = vld [vmem:[#allocation4 + $0x230] sm:$0xff]  ;;  %v591_v24 = vld [vmem:[#allocation4 + $0x1a0] sm:$0xff]  ;;  %v590_v26 = vld [vmem:[#allocation4 + $0x198] sm:$0xff] }
  0x43   : > { %639 = vmatpush.msra.mxu0 %v598_v8  ;;  %3269 = vmatpush.msra.mxu2 %v3791_v18  ;;  %v607_v25 = vld [vmem:[#allocation4 + $0x220] sm:$0xff]  ;;  %v606_v27 = vld [vmem:[#allocation4 + $0x218] sm:$0xff]  ;;  %v589_v32 = vld [vmem:[#allocation4 + $0x190] sm:$0xff] }
  0x44   : > { %746 = vmatpush.msra.mxu1 %v614_v9  ;;  %3256 = vmatpush.msra.mxu3 %v614_v9  ;;  %v3795_v28 = vld [vmem:[#allocation2 + $0x18] sm:$0xff]  ;;  %v3797_v29 = vld [vmem:[#allocation2 + $0x20] sm:$0xff]  ;;  %v605_v33 = vld [vmem:[#allocation4 + $0x210] sm:$0xff] }
  0x45   : > { %640 = vmatpush.msra.mxu0 %v597_v10  ;;  %v3799_v30 = vld [vmem:[#allocation2 + $0xb8] sm:$0xff]  ;;  %v3801_v31 = vld [vmem:[#allocation2 + $0xc0] sm:$0xff]  ;;  %v632_v34 = vld [vmem:[#allocation4 + $0x2e8] sm:$0xff]  ;;  %v5821_v37 = vrot.slane %v3795_v28, 1  ;;  %v328_v38 = vrot.slane %v3797_v29, 1 }
  0x46   : > { %747 = vmatpush.msra.mxu1 %v613_v11  ;;  %3257 = vmatpush.msra.mxu3 %v613_v11  ;;  %v588_v35 = vld [vmem:[#allocation4 + $0x188] sm:$0xff]  ;;  %v5823_v39 = vrot.slane %v3799_v30, 1  ;;  %v368_v40 = vrot.slane %v3801_v31, 1  ;;  %v587_v41 = vld [vmem:[#allocation4 + $0x180] sm:$0xff]  ;;  %v3834_v51 = vld [vmem:[#allocation2 + $0x30] sm:$0xff] }
  0x47   : > { %641 = vmatpush.msra.mxu0 %v596_v12  ;;  %v604_v36 = vld [vmem:[#allocation4 + $0x208] sm:$0xff]  ;;  %3270 = vmatpush.msra.mxu2 %v632_v34  ;;  %v603_v42 = vld [vmem:[#allocation4 + $0x200] sm:$0xff]  ;;  %v3810_v43 = vsel %vm320_vm0, %v5821_v37, %v328_v38  ;;  %v3836_v52 = vld [vmem:[#allocation2 + $0xd0] sm:$0xff]  ;;  %v332_v54 = vrot.slane %v3834_v51, 1 }
  0x48   : > { %748 = vmatpush.msra.mxu1 %v612_v13  ;;  %3258 = vmatpush.msra.mxu3 %v612_v13  ;;  %v3815_v44 = vsel %vm320_vm0, %v5823_v39, %v368_v40  ;;  %v3817_v45 = vld [vmem:[#allocation2 + $0x28] sm:$0xff]  ;;  %v631_v53 = vld [vmem:[#allocation4 + $0x2e0] sm:$0xff]  ;;  %v372_v55 = vrot.slane %v3836_v52, 1  ;;  %v3849_v58 = vld [vmem:[#allocation2 + $0x38] sm:$0xff] }
  0x49   : > { %642 = vmatpush.msra.mxu0 %v595_v14  ;;  %5988 = vst [vmem:[#allocation21_spill] sm:$0xff] %v3815_v44  ;;  %v3819_v46 = vld [vmem:[#allocation2 + $0xc8] sm:$0xff]  ;;  %v330_v47 = vrot.slane %v3817_v45, 1  ;;  %3271 = vmatpush.msra.mxu2 %v631_v53  ;;  %v3851_v59 = vld [vmem:[#allocation2 + $0xd8] sm:$0xff]  ;;  %v552_v61 = vld [vmem:[#allocation4 + $0x70] sm:$0xff]  ;;  %v334_v63 = vrot.slane %v3849_v58, 1 }
  0x4a   : > { %749 = vmatpush.msra.mxu1 %v611_v15  ;;  %3259 = vmatpush.msra.mxu3 %v611_v15  ;;  %v370_v48 = vrot.slane %v3819_v46, 1  ;;  %v553_v60 = vld [vmem:[#allocation4 + $0x78] sm:$0xff]  ;;  %v374_v0 = vrot.slane %v3851_v59, 1  ;;  %v629_v1 = vld [vmem:[#allocation4 + $0x2d0] sm:$0xff]  ;;  %v551_v2 = vld [vmem:[#allocation4 + $0x68] sm:$0xff] }
  0x4b   : > { %643 = vmatpush.msra.mxu0 %v594_v17  ;;  %v3829_v49 = vsel %vm320_vm0, %v328_v38, %v330_v47  ;;  %v3844_v56 = vsel %vm320_vm0, %v330_v47, %v332_v54  ;;  %v630_v62 = vld [vmem:[#allocation4 + $0x2d8] sm:$0xff]  ;;  %v550_v3 = vld [vmem:[#allocation4 + $0x60] sm:$0xff]  ;;  %v3859_v4 = vsel %vm320_vm0, %v332_v54, %v334_v63  ;;  %v628_v8 = vld [vmem:[#allocation4 + $0x2c8] sm:$0xff] }
  0x4c   : > { %750 = vmatpush.msra.mxu1 %v610_v19  ;;  %3260 = vmatpush.msra.mxu3 %v610_v19  ;;  %v3832_v50 = vsel %vm320_vm0, %v368_v40, %v370_v48  ;;  %v3847_v57 = vsel %vm320_vm0, %v370_v48, %v372_v55  ;;  %5991 = vst [vmem:[#allocation24_spill] sm:$0xff] %v3859_v4  ;;  %v3864_v6 = vld [vmem:[#allocation2 + $0x40] sm:$0xff]  ;;  %v549_v9 = vld [vmem:[#allocation4 + $0x58] sm:$0xff]  ;;  %v548_v13 = vld [vmem:[#allocation4 + $0x50] sm:$0xff] }
  0x4d   : > { %644 = vmatpush.msra.mxu0 %v593_v20  ;;  %5989 = vst [vmem:[#allocation22_spill] sm:$0xff] %v3832_v50  ;;  %3272 = vmatpush.msra.mxu2 %v630_v62  ;;  %v3862_v5 = vsel %vm320_vm0, %v372_v55, %v374_v0  ;;  %v3866_v7 = vld [vmem:[#allocation2 + $0xe0] sm:$0xff]  ;;  %v336_v11 = vrot.slane %v3864_v6, 1  ;;  %v626_v14 = vld [vmem:[#allocation4 + $0x2b8] sm:$0xff]  ;;  %v547_v15 = vld [vmem:[#allocation4 + $0x48] sm:$0xff] }
  0x4e   : > { %751 = vmatpush.msra.mxu1 %v609_v21  ;;  %3261 = vmatpush.msra.mxu3 %v609_v21  ;;  %5990 = vst [vmem:[#allocation23_spill] sm:$0xff] %v3847_v57  ;;  %v627_v10 = vld [vmem:[#allocation4 + $0x2c0] sm:$0xff]  ;;  %v376_v12 = vrot.slane %v3866_v7, 1  ;;  %v3879_v19 = vld [vmem:[#allocation2 + $0x48] sm:$0xff]  ;;  %v3896_v38 = vld [vmem:[#allocation2 + $0xf0] sm:$0xff] }
  0x4f   : > { %645 = vmatpush.msra.mxu0 %v592_v22  ;;  %3273 = vmatpush.msra.mxu2 %v629_v1  ;;  %5992 = vst [vmem:[#allocation25_spill] sm:$0xff] %v3862_v5  ;;  %v3874_v17 = vsel %vm320_vm0, %v334_v63, %v336_v11  ;;  %v3881_v20 = vld [vmem:[#allocation2 + $0xe8] sm:$0xff]  ;;  %v546_v21 = vld [vmem:[#allocation4 + $0x40] sm:$0xff]  ;;  %v621_v40 = vld [vmem:[#allocation4 + $0x290] sm:$0xff]  ;;  %v380_v55 = vrot.slane %v3896_v38, 1 }
  0x50   : > { %752 = vmatpush.msra.mxu1 %v608_v23  ;;  %3262 = vmatpush.msra.mxu3 %v608_v23  ;;  %5993 = vst [vmem:[#allocation26_spill] sm:$0xff] %v3874_v17  ;;  %v624_v22 = vld [vmem:[#allocation4 + $0x2a8] sm:$0xff]  ;;  %v545_v23 = vld [vmem:[#allocation4 + $0x38] sm:$0xff] }
  0x51   : > { %646 = vmatpush.msra.mxu0 %v591_v24  ;;  %3274 = vmatpush.msra.mxu2 %v628_v8  ;;  %v623_v24 = vld [vmem:[#allocation4 + $0x2a0] sm:$0xff]  ;;  %v620_v47 = vld [vmem:[#allocation4 + $0x288] sm:$0xff]  ;;  %v541_v48 = vld [vmem:[#allocation4 + $0x18] sm:$0xff] }
  0x52   : > { %753 = vmatpush.msra.mxu1 %v607_v25  ;;  %3263 = vmatpush.msra.mxu3 %v607_v25  ;;  %v338_v25 = vrot.slane %v3879_v19, 1  ;;  %v4016_v37 = vld [vmem:[#allocation2 + $0x8] sm:$0xff] }
  0x53   : > { %647 = vmatpush.msra.mxu0 %v590_v26  ;;  %3275 = vmatpush.msra.mxu2 %v627_v10  ;;  %v378_v26 = vrot.slane %v3881_v20, 1 }
  0x54   : > { %754 = vmatpush.msra.mxu1 %v606_v27  ;;  %3264 = vmatpush.msra.mxu3 %v606_v27  ;;  %v544_v27 = vld [vmem:[#allocation4 + $0x30] sm:$0xff] }
  0x55   : > { %648 = vmatpush.msra.mxu0 %v589_v32  ;;  %3276 = vmatpush.msra.mxu2 %v626_v14  ;;  %v622_v32 = vld [vmem:[#allocation4 + $0x298] sm:$0xff] }
  0x56   : > { %755 = vmatpush.msra.mxu1 %v605_v33  ;;  %3265 = vmatpush.msra.mxu3 %v605_v33  ;;  %v543_v33 = vld [vmem:[#allocation4 + $0x28] sm:$0xff] }
  0x57   : > { %649 = vmatpush.msra.mxu0 %v588_v35  ;;  %v3892_v35 = vsel %vm320_vm0, %v376_v12, %v378_v26 }
  0x58   : > { %756 = vmatpush.msra.mxu1 %v604_v36  ;;  %3266 = vmatpush.msra.mxu3 %v604_v36  ;;  %5995 = vst [vmem:[#allocation28_spill] sm:$0xff] %v3892_v35  ;;  %v3894_v36 = vld [vmem:[#allocation2 + $0x50] sm:$0xff] }
  0x59   : > { %650 = vmatpush.msra.mxu0 %v587_v41  ;;  %v542_v41 = vld [vmem:[#allocation4 + $0x20] sm:$0xff]  ;;  %v340_v54 = vrot.slane %v3894_v36, 1 }
  0x5a   : > { %757 = vmatpush.msra.mxu1 %v603_v42  ;;  %3267 = vmatpush.msra.mxu3 %v603_v42  ;;  %v3899_v42 = vld [vmem:[#allocation2 + $0x68] sm:$0xff] }
  0x5b   : > { %651 = vmatmul.f32.vlgmr.msra.gmra.mxu0 %v3795_v28  ;;  %758 = vmatmul.f32.vlgmr.msra.gmra.mxu1 %v3810_v43 }
  0x5c   : > { %818 = vmatmul.f32.vlgmr.msra.gmra.mxu3 %v3815_v44  ;;  %849 = vmatpush.msrb.mxu0 %v3789_v16  ;;  %v625_v16 = vld [vmem:[#allocation4 + $0x2b0] sm:$0xff]  ;;  %v475_v44 = vrot.slane %v3799_v30, 2 }
  0x5d   : > { %956 = vmatpush.msrb.mxu3 %v553_v60  ;;  %3277 = vmatpush.msra.mxu2 %v625_v16  ;;  %v3906_v60 = vld [vmem:[#allocation2 + $0x70] sm:$0xff] }
  0x5e   : > { %850 = vmatpush.msrb.mxu0 %v3791_v18  ;;  %v3877_v18 = vsel %vm320_vm0, %v374_v0, %v376_v12  ;;  %v457_v63 = vrot.slane %v3906_v60, 2 }
  0x5f   : > { %957 = vmatpush.msrb.mxu3 %v552_v61  ;;  %5994 = vst [vmem:[#allocation27_spill] sm:$0xff] %v3877_v18  ;;  %3278 = vmatpush.msra.mxu2 %v624_v22  ;;  %v619_v61 = vld [vmem:[#allocation4 + $0x280] sm:$0xff] }
  0x60   : > { %851 = vmatpush.msrb.mxu0 %v632_v34  ;;  %v3889_v34 = vsel %vm320_vm0, %v336_v11, %v338_v25  ;;  %v3928_v11 = vld [vmem:[#allocation2 + $0x78] sm:$0xff] }
  0x61   : > { %958 = vmatpush.msrb.mxu3 %v551_v2  ;;  %3279 = vmatpush.msra.mxu2 %v623_v24  ;;  %v3915_v2 = vsel %vm320_vm0, %v338_v25, %v340_v54 }
  0x62   : > { %852 = vmatpush.msrb.mxu0 %v631_v53  ;;  %v5822_v53 = vrot.slane %v3899_v42, 2  ;;  %5996 = vst [vmem:[#allocation29_spill] sm:$0xff] %v3915_v2 }
  0x63   : > { %654 = vmatmul.f32.gmra.mxu0 %v3797_v29  ;;  %761 = vmatmul.f32.gmra.mxu1 %v3829_v49 }
  0x64   : > { %821 = vmatmul.f32.gmra.mxu3 %v3832_v50  ;;  %853 = vmatpush.msrb.mxu0 %v630_v62  ;;  %v540_v62 = vld [vmem:[#allocation4 + $0x10] sm:$0xff]  ;;  %v3912_v0 = vsel %vm429_vm1, %v5822_v53, %v457_v63  ;;  %v4022_v53 = vld [vmem:[#allocation2 + $0xa0] sm:$0xff] }
  0x65   : > { %959 = vmatpush.msrb.mxu3 %v550_v3  ;;  %3280 = vmatpush.msra.mxu2 %v622_v32  ;;  %v3918_v3 = vsel %vm320_vm0, %v378_v26, %v380_v55 }
  0x66   : > { %854 = vmatpush.msrb.mxu0 %v629_v1  ;;  %v539_v1 = vld [vmem:[#allocation4 + $0x8] sm:$0xff]  ;;  %5997 = vst [vmem:[#allocation30_spill] sm:$0xff] %v3918_v3 }
  0x67   : > { %960 = vmatpush.msrb.mxu3 %v549_v9  ;;  %3281 = vmatpush.msra.mxu2 %v621_v40  ;;  %v3922_v9 = vld [vmem:[#allocation2 + $0xf8] sm:$0xff] }
  0x68   : > { %855 = vmatpush.msrb.mxu0 %v628_v8  ;;  %v3920_v8 = vld [vmem:[#allocation2 + $0x58] sm:$0xff] }
  0x69   : > { %961 = vmatpush.msrb.mxu3 %v548_v13  ;;  %3282 = vmatpush.msra.mxu2 %v620_v47  ;;  %v342_v12 = vrot.slane %v3920_v8, 1  ;;  %v382_v13 = vrot.slane %v3922_v9, 1 }
  0x6a   : > { %856 = vmatpush.msrb.mxu0 %v627_v10  ;;  %v538_v10 = vld [vmem:[#allocation4] sm:$0xff] }
  0x6b   : > { %657 = vmatmul.f32.gmra.mxu0 %v3817_v45  ;;  %764 = vmatmul.f32.gmra.mxu1 %v3844_v56 }
  0x6c   : > { %824 = vmatmul.f32.gmra.mxu3 %v3847_v57  ;;  %857 = vmatpush.msrb.mxu0 %v626_v14  ;;  %v459_v14 = vrot.slane %v3928_v11, 2 }
  0x6d   : > { %962 = vmatpush.msrb.mxu3 %v547_v15  ;;  %3283 = vmatpush.msra.mxu2 %v619_v61 }
  0x6e   : > { %858 = vmatpush.msrb.mxu0 %v625_v16  ;;  %895 = vmatmul.f32.vlgmr.msra.gmra.mxu2 %v3912_v0  ;;  %v3934_v15 = vsel %vm429_vm1, %v457_v63, %v459_v14  ;;  %v3937_v16 = vsel %vm320_vm0, %v340_v54, %v342_v12 }
  0x6f   : > { %963 = vmatpush.msrb.mxu3 %v546_v21  ;;  %5998 = vst [vmem:[#allocation31_spill] sm:$0xff] %v3937_v16  ;;  %v3940_v21 = vsel %vm320_vm0, %v380_v55, %v382_v13 }
  0x70   : > { %859 = vmatpush.msrb.mxu0 %v624_v22  ;;  %5999 = vst [vmem:[#allocation32_spill] sm:$0xff] %v3940_v21  ;;  %v3942_v22 = vld [vmem:[#allocation2 + $0x60] sm:$0xff] }
  0x71   : > { %964 = vmatpush.msrb.mxu3 %v545_v23  ;;  %v3944_v23 = vld [vmem:[#allocation2 + $0x100] sm:$0xff]  ;;  %v344_v25 = vrot.slane %v3942_v22, 1 }
  0x72   : > { %860 = vmatpush.msrb.mxu0 %v623_v24  ;;  %v3950_v24 = vld [vmem:[#allocation2 + $0x80] sm:$0xff]  ;;  %v384_v26 = vrot.slane %v3944_v23, 1 }
  0x73   : > { %660 = vmatmul.f32.gmra.mxu0 %v3834_v51  ;;  %767 = vmatmul.f32.gmra.mxu1 %v3859_v4  ;;  %v352_v39 = vrot.slane %v3950_v24, 1 }
  0x74   : > { %827 = vmatmul.f32.gmra.mxu3 %v3862_v5  ;;  %861 = vmatpush.msrb.mxu0 %v622_v32 }
  0x75   : > { %965 = vmatpush.msrb.mxu3 %v544_v27  ;;  %v461_v27 = vrot.slane %v3950_v24, 2 }
  0x76   : > { %862 = vmatpush.msrb.mxu0 %v621_v40  ;;  %898 = vmatmul.f32.gmra.mxu2 %v3934_v15  ;;  %v3962_v40 = vsel %vm320_vm0, %v382_v13, %v384_v26 }
  0x77   : > { %966 = vmatpush.msrb.mxu3 %v543_v33  ;;  %v3956_v32 = vsel %vm429_vm1, %v459_v14, %v461_v27  ;;  %v3959_v33 = vsel %vm320_vm0, %v342_v12, %v344_v25  ;;  %6000 = vst [vmem:[#allocation33_spill] sm:$0xff] %v3962_v40 }
  0x78   : > { %863 = vmatpush.msrb.mxu0 %v620_v47  ;;  %v3970_v47 = vld [vmem:[#allocation2 + $0x88] sm:$0xff] }
  0x79   : > { %967 = vmatpush.msrb.mxu3 %v542_v41  ;;  %v3964_v41 = vld [vmem:[#allocation2 + $0x108] sm:$0xff]  ;;  %v463_v55 = vrot.slane %v3970_v47, 2 }
  0x7a   : > { %864 = vmatpush.msrb.mxu0 %v619_v61  ;;  %6001 = vst [vmem:[#allocation34_spill] sm:$0xff] %v3964_v41  ;;  %v5820_v54 = vrot.slane %v3964_v41, 1 }
  0x7b   : > { %663 = vmatmul.f32.gmra.mxu0 %v3849_v58  ;;  %770 = vmatmul.f32.gmra.mxu1 %v3874_v17  ;;  %v3976_v61 = vsel %vm429_vm1, %v461_v27, %v463_v55  ;;  %v350_v27 = vrot.slane %v3928_v11, 1 }
  0x7c   : > { %830 = vmatmul.f32.gmra.mxu3 %v3877_v18  ;;  %v3984_v63 = vsel %vm320_vm0, %v384_v26, %v5820_v54  ;;  %v4006_v26 = vld [vmem:[#allocation2 + $0x98] sm:$0xff]  ;;  %v4052_v18 = vld [vmem:[#allocation2 + $0xb0] sm:$0xff] }
  0x7d   : > { %968 = vmatpush.msrb.mxu3 %v541_v48  ;;  %v346_v48 = vrot.slane %v3899_v42, 1  ;;  %6003 = vst [vmem:[#allocation36_spill] sm:$0xff] %v3984_v63  ;;  %v473_v57 = vrot.slane %v4052_v18, 2  ;;  %v358_v50 = vrot.slane %v4006_v26, 1 }
  0x7e   : > { %901 = vmatmul.f32.gmra.mxu2 %v3956_v32 }
  0x7f   : > { %969 = vmatpush.msrb.mxu3 %v540_v62  ;;  %v3979_v62 = vsel %vm320_vm0, %v344_v25, %v346_v48  ;;  %v4000_v25 = vld [vmem:[#allocation2] sm:$0xff] }
  0x80   : > { %6002 = vst [vmem:[#allocation35_spill] sm:$0xff] %v3979_v62 }
  0x81   : > { %970 = vmatpush.msrb.mxu3 %v539_v1  ;;  %v3990_v1 = vld [vmem:[#allocation2 + $0x90] sm:$0xff] }
  0x82   : > { %v465_v12 = vrot.slane %v3990_v1, 2  ;;  %v356_v5 = vrot.slane %v3990_v1, 1 }
  0x83   : > { %666 = vmatmul.f32.gmra.mxu0 %v3864_v6  ;;  %773 = vmatmul.f32.gmra.mxu1 %v3889_v34 }
  0x84   : > { %833 = vmatmul.f32.gmra.mxu3 %v3892_v35  ;;  %v3995_v13 = vsel %vm429_vm1, %v463_v55, %v465_v12  ;;  %v467_v55 = vrot.slane %v4006_v26, 2 }
  0x85   : > { %971 = vmatpush.msrb.mxu3 %v538_v10  ;;  %v348_v10 = vrot.slane %v3906_v60, 1 }
  0x86   : > { %904 = vmatmul.f32.gmra.mxu2 %v3976_v61  ;;  %v4011_v54 = vsel %vm429_vm1, %v465_v12, %v467_v55  ;;  %v469_v12 = vrot.slane %v4022_v53, 2 }
  0x87   : > { %v3998_v14 = vsel %vm320_vm0, %v346_v48, %v348_v10  ;;  %v4014_v48 = vsel %vm320_vm0, %v348_v10, %v350_v27  ;;  %v4030_v10 = vsel %vm320_vm0, %v350_v27, %v352_v39 }
  0x88   : > { %6004 = vst [vmem:[#allocation37_spill] sm:$0xff] %v3998_v14 }
  0x89   : > { %6005 = vst [vmem:[#allocation38_spill] sm:$0xff] %v4030_v10 }
  0x8b   : > { %669 = vmatmul.f32.gmra.mxu0 %v3879_v19  ;;  %776 = vmatmul.f32.gmra.mxu1 %v3915_v2 }
  0x8c   : > { %836 = vmatmul.f32.gmra.mxu3 %v3918_v3  ;;  %v354_v3 = vrot.slane %v3970_v47, 1 }
  0x8e   : > { %907 = vmatmul.f32.gmra.mxu2 %v3995_v13  ;;  %v4046_v27 = vsel %vm320_vm0, %v352_v39, %v354_v3  ;;  %v4060_v39 = vsel %vm320_vm0, %v354_v3, %v356_v5  ;;  %v360_v3 = vrot.slane %v4022_v53, 1 }
  0x8f   : > { %6007 = vst [vmem:[#allocation40_spill] sm:$0xff] %v4046_v27 }
  0x90   : > { %6009 = vst [vmem:[#allocation42_spill] sm:$0xff] %v4060_v39 }
  0x93   : > { %672 = vmatmul.f32.gmra.mxu0 %v3894_v36  ;;  %779 = vmatmul.f32.gmra.mxu1 %v3937_v16 }
  0x94   : > { %839 = vmatmul.f32.gmra.mxu3 %v3940_v21  ;;  %v4038_v21 = vld [vmem:[#allocation2 + $0xa8] sm:$0xff] }
  0x96   : > { %910 = vmatmul.f32.gmra.mxu2 %v4011_v54 }
  0x9b   : > { %675 = vmatmul.f32.gmra.mxu0 %v3920_v8  ;;  %782 = vmatmul.f32.gmra.mxu1 %v3959_v33 }
  0x9c   : > { %842 = vmatmul.f32.gmra.mxu3 %v3962_v40  ;;  %v4032_v40 = vld [vmem:[#allocation2 + $0x10] sm:$0xff] }
  0xa3   : > { %678 = vmatmul.f32.gmra.mxu0 %v3942_v22  ;;  %785 = vmatmul.f32.gmra.mxu1 %v3979_v62 }
  0xa4   : > { %845 = vmatmul.f32.gmra.mxu3 %v3984_v63  ;;  %v4027_v63 = vsel %vm429_vm1, %v467_v55, %v469_v12  ;;  %v471_v55 = vrot.slane %v4038_v21, 2 }
  0xa5   : > { %913 = vmatmul.f32.gmra.mxu2 %v4027_v63 }
  0xa6   : > { %v4043_v35 = vsel %vm429_vm1, %v469_v12, %v471_v55  ;;  %v4057_v12 = vsel %vm429_vm1, %v471_v55, %v473_v57  ;;  %v4072_v55 = vsel %vm320_vm0, %v356_v5, %v358_v50  ;;  %v4088_v5 = vsel %vm320_vm0, %v358_v50, %v360_v3 }
  0xa7   : > { %6006 = vst [vmem:[#allocation39_spill] sm:$0xff] %v4043_v35 }
  0xa8   : > { %6008 = vst [vmem:[#allocation41_spill] sm:$0xff] %v4057_v12 }
  0xa9   : > { %6011 = vst [vmem:[#allocation44_spill] sm:$0xff] %v4072_v55 }
  0xaa   : > { %6015 = vst [vmem:[#allocation48_spill] sm:$0xff] %v4088_v5 }
  0xab   : > { %681 = vmatmul.f32.gmra.mxu0 %v3899_v42  ;;  %788 = vmatmul.f32.gmra.mxu1 %v3998_v14 }
  0xac   : > { %972 = vmatmul.f32.vlgmr.msrb.gmra.mxu3 %v4000_v25 }
  0xad   : > { %916 = vmatmul.f32.gmra.mxu2 %v4043_v35  ;;  %v4069_v35 = vsel %vm429_vm1, %v473_v57, %v475_v44 }
  0xae   : > { %6010 = vst [vmem:[#allocation43_spill] sm:$0xff] %v4069_v35 }
  0xb3   : > { %684 = vmatmul.f32.gmra.mxu0 %v3906_v60  ;;  %791 = vmatmul.f32.gmra.mxu1 %v4014_v48 }
  0xb4   : > { %975 = vmatmul.f32.gmra.mxu3 %v4016_v37 }
  0xb5   : > { %919 = vmatmul.f32.gmra.mxu2 %v4057_v12  ;;  %v477_v12 = vrot.slane %v3801_v31, 2 }
  0xbb   : > { %687 = vmatmul.f32.gmra.mxu0 %v3928_v11  ;;  %794 = vmatmul.f32.gmra.mxu1 %v4030_v10 }
  0xbc   : > { %978 = vmatmul.f32.gmra.mxu3 %v4032_v40 }
  0xbd   : > { %922 = vmatmul.f32.gmra.mxu2 %v4069_v35  ;;  %v362_v35 = vrot.slane %v4038_v21, 1 }
  0xc3   : > { %690 = vmatmul.f32.gmra.mxu0 %v3950_v24  ;;  %797 = vmatmul.f32.gmra.mxu1 %v4046_v27 }
  0xc4   : > { %981 = vmatmul.f32.gmra.mxu3 %v3795_v28 }
  0xcb   : > { %693 = vmatmul.f32.gmra.mxu0 %v3970_v47  ;;  %800 = vmatmul.f32.gmra.mxu1 %v4060_v39  ;;  %v4081_v39 = vsel %vm429_vm1, %v475_v44, %v477_v12  ;;  %v479_v44 = vrot.slane %v3819_v46, 2 }
  0xcc   : > { %984 = vmatmul.f32.gmra.mxu3 %v3797_v29  ;;  %6012 = vst [vmem:[#allocation45_spill] sm:$0xff] %v4081_v39  ;;  %925 = vmatmul.f32.gmra.mxu2 %v4081_v39  ;;  %v4104_v39 = vsel %vm320_vm0, %v360_v3, %v362_v35 }
  0xcd   : > { %6019 = vst [vmem:[#allocation52_spill] sm:$0xff] %v4104_v39 }
  0xd3   : > { %696 = vmatmul.f32.gmra.mxu0 %v3990_v1  ;;  %803 = vmatmul.f32.gmra.mxu1 %v4072_v55 }
  0xd4   : > { %987 = vmatmul.f32.gmra.mxu3 %v3817_v45 }
  0xd8   : > { %v4083_v57 = vpop.f32.mrf.mxu0  ;;  %v4085_v41 = vpop.f32.mrf.mxu1 }
  0xd9   : > { %6013 = vst [vmem:[#allocation46_spill] sm:$0xff] %v4083_v57  ;;  %v4097_v57 = vsel %vm429_vm1, %v477_v12, %v479_v44  ;;  %v481_v12 = vrot.slane %v3836_v52, 2 }
  0xda   : > { %6014 = vst [vmem:[#allocation47_spill] sm:$0xff] %v4085_v41  ;;  %928 = vmatmul.f32.gmra.mxu2 %v4097_v57 }
  0xdb   : > { %699 = vmatmul.f32.gmra.mxu0 %v4006_v26  ;;  %806 = vmatmul.f32.gmra.mxu1 %v4088_v5  ;;  %6016 = vst [vmem:[#allocation49_spill] sm:$0xff] %v4097_v57  ;;  %v483_v57 = vrot.slane %v3851_v59, 2 }
  0xdc   : > { %990 = vmatmul.f32.gmra.mxu3 %v3834_v51 }
  0xdf   : > { %v819_v55 = vpop.f32.mrf.mxu3 }
  0xe0   : > { %v4099_v41 = vpop.f32.mrf.mxu0  ;;  %v4101_v50 = vpop.f32.mrf.mxu1  ;;  %v364_v55 = vrot.slane %v4052_v18, 1 }
  0xe1   : > { %6017 = vst [vmem:[#allocation50_spill] sm:$0xff] %v4099_v41  ;;  %v4115_v41 = vsel %vm429_vm1, %v479_v44, %v481_v12  ;;  %v4128_v44 = vsel %vm429_vm1, %v481_v12, %v483_v57  ;;  %v485_v12 = vrot.slane %v3866_v7, 2 }
  0xe2   : > { %6018 = vst [vmem:[#allocation51_spill] sm:$0xff] %v4101_v50  ;;  %v4118_v27 = vsel %vm320_vm0, %v362_v35, %v364_v55  ;;  %931 = vmatmul.f32.gmra.mxu2 %v4115_v41  ;;  %v6027_v35 = vrot.slane %v3799_v30, 1 }
  0xe3   : > { %702 = vmatmul.f32.gmra.mxu0 %v4022_v53  ;;  %809 = vmatmul.f32.gmra.mxu1 %v4104_v39  ;;  %6021 = vst [vmem:[#allocation54_spill] sm:$0xff] %v4115_v41 }
  0xe4   : > { %993 = vmatmul.f32.gmra.mxu3 %v3849_v58  ;;  %6022 = vst [vmem:[#allocation55_spill] sm:$0xff] %v4118_v27 }
  0xe5   : > { %6024 = vst [vmem:[#allocation57_spill] sm:$0xff] %v4128_v44 }
  0xe7   : > { %v4112_v5 = vpop.f32.mrf.mxu3 }
  0xe8   : > { %6020 = vst [vmem:[#allocation53_spill] sm:$0xff] %v4112_v5  ;;  %v658_v50 = vpop.f32.mrf.mxu0  ;;  %v765_v3 = vpop.f32.mrf.mxu1  ;;  %v4137_v5 = vsel %vm320_vm0, %v364_v55, %v6027_v35  ;;  %v487_v55 = vrot.slane %v3881_v20, 2 }
  0xe9   : > { %6028 = vst [vmem:[#allocation60_spill] sm:$0xff] %v4137_v5 }
  0xea   : > { %934 = vmatmul.f32.gmra.mxu2 %v4128_v44  ;;  %v4158_v44 = vsel %vm429_vm1, %v485_v12, %v487_v55 }
  0xeb   : > { %705 = vmatmul.f32.gmra.mxu0 %v4038_v21  ;;  %812 = vmatmul.f32.gmra.mxu1 %v4118_v27  ;;  %6033 = vst [vmem:[#allocation65_spill] sm:$0xff] %v4158_v44 }
  0xec   : > { %996 = vmatmul.f32.gmra.mxu3 %v3864_v6 }
  0xef   : > { %v4125_v39 = vpop.f32.mrf.mxu3 }
  0xf0   : > { %6023 = vst [vmem:[#allocation56_spill] sm:$0xff] %v4125_v39  ;;  %v4130_v50 = vpop.f32.mrf.mxu0  ;;  %v4132_v3 = vpop.f32.mrf.mxu1 }
  0xf1   : > { %6025 = vst [vmem:[#allocation58_spill] sm:$0xff] %v4130_v50  ;;  %v4145_v50 = vsel %vm429_vm1, %v483_v57, %v485_v12  ;;  %v4176_v12 = vpop.f32.mrf.mxu2 }
  0xf2   : > { %6026 = vst [vmem:[#allocation59_spill] sm:$0xff] %v4132_v3  ;;  %937 = vmatmul.f32.gmra.mxu2 %v4145_v50 }
  0xf3   : > { %708 = vmatmul.f32.gmra.mxu0 %v4052_v18  ;;  %815 = vmatmul.f32.gmra.mxu1 %v4137_v5  ;;  %6029 = vst [vmem:[#allocation61_spill] sm:$0xff] %v4145_v50 }
  0xf4   : > { %999 = vmatmul.f32.gmra.mxu3 %v3879_v19  ;;  %6038 = vst [vmem:[#allocation70_spill] sm:$0xff] %v4176_v12 }
  0xf7   : > { %v828_v39 = vpop.f32.mrf.mxu3 }
  0xf8   : > { %v4147_v3 = vpop.f32.mrf.mxu0  ;;  %v4149_v41 = vpop.f32.mrf.mxu1 }
  0xf9   : > { %6030 = vst [vmem:[#allocation62_spill] sm:$0xff] %v4147_v3 }
  0xfa   : > { %6031 = vst [vmem:[#allocation63_spill] sm:$0xff] %v4149_v41  ;;  %940 = vmatmul.f32.gmra.mxu2 %v4158_v44  ;;  %v489_v41 = vrot.slane %v3896_v38, 2 }
  0xfb   : > { %711 = vmatmul.f32.gmra.mxu0 %v3799_v30 }
  0xfc   : > { %1002 = vmatmul.f32.gmra.mxu3 %v3894_v36  ;;  %v4167_v50 = vsel %vm429_vm1, %v487_v55, %v489_v41 }
  0xfd   : > { %6035 = vst [vmem:[#allocation67_spill] sm:$0xff] %v4167_v50 }
  0xff   : > { %v4155_v35 = vpop.f32.mrf.mxu3 }
 0x100   : > { %6032 = vst [vmem:[#allocation64_spill] sm:$0xff] %v4155_v35  ;;  %v667_v39 = vpop.f32.mrf.mxu0  ;;  %v774_v57 = vpop.f32.mrf.mxu1 }
 0x101   : > { %v491_v39 = vrot.slane %v3922_v9, 2 }
 0x102   : > { %943 = vmatmul.f32.gmra.mxu2 %v4167_v50 }
 0x103   : > { %714 = vmatmul.f32.gmra.mxu0 %v3801_v31 }
 0x104   : > { %1005 = vmatmul.f32.gmra.mxu3 %v3920_v8 }
 0x107   : > { %v4164_v3 = vpop.f32.mrf.mxu3 }
 0x108   : > { %6034 = vst [vmem:[#allocation66_spill] sm:$0xff] %v4164_v3  ;;  %v4169_v5 = vpop.f32.mrf.mxu0  ;;  %v4171_v35 = vpop.f32.mrf.mxu1  ;;  %v4180_v3 = vsel %vm429_vm1, %v489_v41, %v491_v39 }
 0x109   : > { %6036 = vst [vmem:[#allocation68_spill] sm:$0xff] %v4169_v5  ;;  %v5874_v5 = vrot.slane %v3944_v23, 2 }
 0x10a   : > { %6037 = vst [vmem:[#allocation69_spill] sm:$0xff] %v4171_v35  ;;  %946 = vmatmul.f32.gmra.mxu2 %v4180_v3  ;;  %v899_v35 = vpop.f32.mrf.mxu2 }
 0x10b   : > { %717 = vmatmul.f32.gmra.mxu0 %v3819_v46  ;;  %6039 = vst [vmem:[#allocation71_spill] sm:$0xff] %v4180_v3  ;;  %v4195_v41 = vsel %vm429_vm1, %v491_v39, %v5874_v5 }
 0x10c   : > { %1008 = vmatmul.f32.gmra.mxu3 %v3942_v22  ;;  %6043 = vst [vmem:[#allocation75_spill] sm:$0xff] %v4195_v41 }
 0x10f   : > { %v837_v57 = vpop.f32.mrf.mxu3 }
 0x110   : > { %v4182_v55 = vpop.f32.mrf.mxu0  ;;  %v4184_v44 = vpop.f32.mrf.mxu1 }
 0x111   : > { %6040 = vst [vmem:[#allocation72_spill] sm:$0xff] %v4182_v55 }
 0x112   : > { %6041 = vst [vmem:[#allocation73_spill] sm:$0xff] %v4184_v44  ;;  %949 = vmatmul.f32.gmra.mxu2 %v4195_v41  ;;  %v4200_v3 = vpop.f32.mrf.mxu2 }
 0x113   : > { %720 = vmatmul.f32.gmra.mxu0 %v3836_v52  ;;  %6044 = vst [vmem:[#allocation76_spill] sm:$0xff] %v4200_v3 }
 0x114   : > { %1011 = vmatmul.f32.gmra.mxu3 %v3899_v42 }
 0x117   : > { %v4190_v12 = vpop.f32.mrf.mxu3 }
 0x118   : > { %6042 = vst [vmem:[#allocation74_spill] sm:$0xff] %v4190_v12  ;;  %v676_v57 = vpop.f32.mrf.mxu0  ;;  %v783_v55 = vpop.f32.mrf.mxu1 }
 0x11a   : > { %v4210_v39 = vpop.f32.mrf.mxu2 }
 0x11b   : > { %723 = vmatmul.f32.gmra.mxu0 %v3851_v59  ;;  %6048 = vst [vmem:[#allocation80_spill] sm:$0xff] %v4210_v39 }
 0x11c   : > { %1014 = vmatmul.f32.gmra.mxu3 %v3906_v60  ;;  %v569_v60 = vld [vmem:[#allocation4 + $0xf8] sm:$0xff] }
 0x11d   : > { %1063 = vmatpush.msra.mxu0 %v569_v60 }
 0x11f   : > { %v4202_v35 = vpop.f32.mrf.mxu3 }
 0x120   : > { %6045 = vst [vmem:[#allocation77_spill] sm:$0xff] %v4202_v35  ;;  %v4204_v44 = vpop.f32.mrf.mxu0  ;;  %v4206_v12 = vpop.f32.mrf.mxu1 }
 0x121   : > { %6046 = vst [vmem:[#allocation78_spill] sm:$0xff] %v4204_v44  ;;  %v568_v44 = vld [vmem:[#allocation4 + $0xf0] sm:$0xff] }
 0x122   : > { %6047 = vst [vmem:[#allocation79_spill] sm:$0xff] %v4206_v12  ;;  %v908_v35 = vpop.f32.mrf.mxu2  ;;  %1064 = vmatpush.msra.mxu0 %v568_v44 }
 0x123   : > { %726 = vmatmul.f32.gmra.mxu0 %v3866_v7 }
 0x124   : > { %1017 = vmatmul.f32.gmra.mxu3 %v3928_v11  ;;  %v567_v11 = vld [vmem:[#allocation4 + $0xe8] sm:$0xff] }
 0x125   : > { %1065 = vmatpush.msra.mxu0 %v567_v11  ;;  %v5876_v11 = vrot.slane %v3795_v28, 2 }
 0x127   : > { %v846_v55 = vpop.f32.mrf.mxu3 }
 0x128   : > { %v4212_v57 = vpop.f32.mrf.mxu0  ;;  %v4214_v5 = vpop.f32.mrf.mxu1 }
 0x129   : > { %6049 = vst [vmem:[#allocation81_spill] sm:$0xff] %v4212_v57  ;;  %v1312_v57 = vld [vmem:[#allocation4 + $0x410] sm:$0xff] }
 0x12a   : > { %6050 = vst [vmem:[#allocation82_spill] sm:$0xff] %v4214_v5  ;;  %v4222_v55 = vpop.f32.mrf.mxu2  ;;  %v2214_v5 = vld [vmem:[#allocation7 + $0x1f0] sm:$0xff] }
 0x12b   : > { %729 = vmatmul.f32.gmra.mxu0 %v3881_v20  ;;  %6051 = vst [vmem:[#allocation83_spill] sm:$0xff] %v4222_v55 }
 0x12c   : > { %1020 = vmatmul.f32.gmra.mxu3 %v3950_v24 }
 0x12f   : > { %v4218_v3 = vpop.f32.mrf.mxu3 }
 0x130   : > { %v685_v41 = vpop.f32.mrf.mxu0  ;;  %v792_v12 = vpop.f32.mrf.mxu1 }
 0x131   : > { %v566_v12 = vld [vmem:[#allocation4 + $0xe0] sm:$0xff] }
 0x132   : > { %v4232_v41 = vpop.f32.mrf.mxu2  ;;  %1066 = vmatpush.msra.mxu0 %v566_v12 }
 0x133   : > { %732 = vmatmul.f32.gmra.mxu0 %v3896_v38  ;;  %6054 = vst [vmem:[#allocation86_spill] sm:$0xff] %v4232_v41 }
 0x134   : > { %1023 = vmatmul.f32.gmra.mxu3 %v3970_v47  ;;  %v565_v47 = vld [vmem:[#allocation4 + $0xd8] sm:$0xff] }
 0x135   : > { %1067 = vmatpush.msra.mxu0 %v565_v47 }
 0x137   : > { %v4224_v39 = vpop.f32.mrf.mxu3 }
 0x138   : > { %v4226_v24 = vpop.f32.mrf.mxu0  ;;  %v4228_v35 = vpop.f32.mrf.mxu1 }
 0x139   : > { %6052 = vst [vmem:[#allocation84_spill] sm:$0xff] %v4226_v24  ;;  %v2231_v24 = vld [vmem:[#allocation7 + $0x278] sm:$0xff] }
 0x13a   : > { %6053 = vst [vmem:[#allocation85_spill] sm:$0xff] %v4228_v35  ;;  %v917_v55 = vpop.f32.mrf.mxu2  ;;  %v575_v35 = vld [vmem:[#allocation4 + $0x128] sm:$0xff] }
 0x13b   : > { %735 = vmatmul.f32.gmra.mxu0 %v3922_v9  ;;  %v437_v9 = vrot.slane %v3797_v29, 2 }
 0x13c   : > { %1026 = vmatmul.f32.gmra.mxu3 %v3990_v1  ;;  %v564_v1 = vld [vmem:[#allocation4 + $0xd0] sm:$0xff] }
 0x13d   : > { %1068 = vmatpush.msra.mxu0 %v564_v1  ;;  %v562_v1 = vld [vmem:[#allocation4 + $0xc0] sm:$0xff] }
 0x13f   : > { %v979_v38 = vpop.f32.mrf.mxu3 }
 0x140   : > { %v4234_v44 = vpop.f32.mrf.mxu0  ;;  %v4236_v60 = vpop.f32.mrf.mxu1  ;;  %v4247_v38 = vsel %vm429_vm1, %v5876_v11, %v437_v9 }
 0x141   : > { %6055 = vst [vmem:[#allocation87_spill] sm:$0xff] %v4234_v44 }
 0x142   : > { %6056 = vst [vmem:[#allocation88_spill] sm:$0xff] %v4236_v60  ;;  %v563_v60 = vld [vmem:[#allocation4 + $0xc8] sm:$0xff]  ;;  %v4252_v29 = vpop.f32.mrf.mxu2 }
 0x143   : > { %738 = vmatmul.f32.gmra.mxu0 %v3944_v23  ;;  %6057 = vst [vmem:[#allocation89_spill] sm:$0xff] %v4252_v29 }
 0x144   : > { %1029 = vmatmul.f32.gmra.mxu3 %v4006_v26  ;;  %v439_v26 = vrot.slane %v3817_v45, 2  ;;  %1069 = vmatpush.msra.mxu0 %v563_v60  ;;  %v441_v45 = vrot.slane %v3834_v51, 2  ;;  %v443_v51 = vrot.slane %v3849_v58, 2  ;;  %v445_v58 = vrot.slane %v3864_v6, 2 }
 0x145   : > { %v447_v6 = vrot.slane %v3879_v19, 2  ;;  %v574_v19 = vld [vmem:[#allocation4 + $0x120] sm:$0xff] }
 0x146   : > { %v4259_v44 = vsel %vm429_vm1, %v437_v9, %v439_v26  ;;  %1070 = vmatpush.msra.mxu0 %v562_v1  ;;  %v560_v9 = vld [vmem:[#allocation4 + $0xb0] sm:$0xff] }
 0x147   : > { %v4242_v41 = vpop.f32.mrf.mxu3 }
 0x148   : > { %v694_v12 = vpop.f32.mrf.mxu0  ;;  %v801_v47 = vpop.f32.mrf.mxu1 }
 0x14a   : > { %v4266_v60 = vpop.f32.mrf.mxu2 }
 0x14b   : > { %865 = vmatmul.f32.vlgmr.msrb.gmra.mxu0 %v4247_v38  ;;  %6060 = vst [vmem:[#allocation92_spill] sm:$0xff] %v4266_v60 }
 0x14c   : > { %1032 = vmatmul.f32.gmra.mxu3 %v4022_v53  ;;  %v561_v53 = vld [vmem:[#allocation4 + $0xb8] sm:$0xff] }
 0x14d   : > { %1071 = vmatpush.msra.mxu0 %v561_v53  ;;  %v585_v53 = vld [vmem:[#allocation4 + $0x178] sm:$0xff] }
 0x14e   : > { %1170 = vmatpush.msrb.mxu1 %v585_v53  ;;  %v4293_v53 = vsel %vm429_vm1, %v443_v51, %v445_v58 }
 0x14f   : > { %v4254_v55 = vpop.f32.mrf.mxu3  ;;  %1072 = vmatpush.msra.mxu0 %v560_v9  ;;  %v583_v9 = vld [vmem:[#allocation4 + $0x168] sm:$0xff] }
 0x150   : > { %v4256_v12 = vpop.f32.mrf.mxu0  ;;  %v4261_v47 = vpop.f32.mrf.mxu1 }
 0x151   : > { %6058 = vst [vmem:[#allocation90_spill] sm:$0xff] %v4256_v12  ;;  %v4271_v12 = vsel %vm429_vm1, %v439_v26, %v441_v45  ;;  %v4281_v26 = vsel %vm429_vm1, %v441_v45, %v443_v51 }
 0x152   : > { %6059 = vst [vmem:[#allocation91_spill] sm:$0xff] %v4261_v47  ;;  %v926_v47 = vpop.f32.mrf.mxu2 }
 0x153   : > { %868 = vmatmul.f32.gmra.mxu0 %v4259_v44  ;;  %v582_v47 = vld [vmem:[#allocation4 + $0x160] sm:$0xff] }
 0x154   : > { %1035 = vmatmul.f32.gmra.mxu3 %v4038_v21  ;;  %v559_v21 = vld [vmem:[#allocation4 + $0xa8] sm:$0xff] }
 0x155   : > { %1073 = vmatpush.msra.mxu0 %v559_v21 }
 0x157   : > { %v988_v11 = vpop.f32.mrf.mxu3 }
 0x158   : > { %v4268_v29 = vpop.f32.mrf.mxu0  ;;  %v4273_v1 = vpop.f32.mrf.mxu1 }
 0x159   : > { %6061 = vst [vmem:[#allocation93_spill] sm:$0xff] %v4268_v29  ;;  %v584_v29 = vld [vmem:[#allocation4 + $0x170] sm:$0xff] }
 0x15a   : > { %6062 = vst [vmem:[#allocation94_spill] sm:$0xff] %v4273_v1  ;;  %1171 = vmatpush.msrb.mxu1 %v584_v29 }
 0x15b   : > { %871 = vmatmul.f32.gmra.mxu0 %v4271_v12 }
 0x15c   : > { %1038 = vmatmul.f32.gmra.mxu3 %v4052_v18  ;;  %v558_v18 = vld [vmem:[#allocation4 + $0xa0] sm:$0xff]  ;;  %1172 = vmatpush.msrb.mxu1 %v583_v9  ;;  %v580_v9 = vld [vmem:[#allocation4 + $0x150] sm:$0xff] }
 0x15d   : > { %1074 = vmatpush.msra.mxu0 %v558_v18  ;;  %v4286_v21 = vpop.f32.mrf.mxu2  ;;  %v556_v18 = vld [vmem:[#allocation4 + $0x90] sm:$0xff] }
 0x15e   : > { %6063 = vst [vmem:[#allocation95_spill] sm:$0xff] %v4286_v21  ;;  %1173 = vmatpush.msrb.mxu1 %v582_v47  ;;  %v578_v47 = vld [vmem:[#allocation4 + $0x140] sm:$0xff]  ;;  %v577_v21 = vld [vmem:[#allocation4 + $0x138] sm:$0xff] }
 0x15f   : > { %v4278_v11 = vpop.f32.mrf.mxu3 }
 0x160   : > { %v703_v60 = vpop.f32.mrf.mxu0  ;;  %v810_v1 = vpop.f32.mrf.mxu1 }
 0x161   : > { %v581_v60 = vld [vmem:[#allocation4 + $0x158] sm:$0xff] }
 0x162   : > { %1174 = vmatpush.msrb.mxu1 %v581_v60  ;;  %v557_v1 = vld [vmem:[#allocation4 + $0x98] sm:$0xff] }
 0x163   : > { %874 = vmatmul.f32.gmra.mxu0 %v4281_v26 }
 0x164   : > { %1041 = vmatmul.f32.gmra.mxu3 %v3799_v30  ;;  %1075 = vmatpush.msra.mxu0 %v557_v1  ;;  %v579_v30 = vld [vmem:[#allocation4 + $0x148] sm:$0xff] }
 0x165   : > { %1175 = vmatpush.msrb.mxu1 %v580_v9  ;;  %v4298_v60 = vpop.f32.mrf.mxu2  ;;  %v4303_v9 = vsel %vm429_vm1, %v445_v58, %v447_v6  ;;  %v321_v58 = vrot.slane %v4000_v25, 1 }
 0x166   : > { %6066 = vst [vmem:[#allocation98_spill] sm:$0xff] %v4298_v60  ;;  %1076 = vmatpush.msra.mxu0 %v556_v18  ;;  %v449_v18 = vrot.slane %v3894_v36, 2  ;;  %v554_v36 = vld [vmem:[#allocation4 + $0x80] sm:$0xff] }
 0x167   : > { %v4288_v45 = vpop.f32.mrf.mxu3  ;;  %1176 = vmatpush.msrb.mxu1 %v579_v30  ;;  %v555_v30 = vld [vmem:[#allocation4 + $0x88] sm:$0xff] }
 0x168   : > { %6064 = vst [vmem:[#allocation96_spill] sm:$0xff] %v4288_v45  ;;  %v4290_v29 = vpop.f32.mrf.mxu0  ;;  %1077 = vmatpush.msra.mxu0 %v555_v30  ;;  %v431_v30 = vrot.slane %v4016_v37, 2 }
 0x169   : > { %6065 = vst [vmem:[#allocation97_spill] sm:$0xff] %v4290_v29  ;;  %1177 = vmatpush.msrb.mxu1 %v578_v47  ;;  %v576_v29 = vld [vmem:[#allocation4 + $0x130] sm:$0xff]  ;;  %v573_v47 = vld [vmem:[#allocation4 + $0x118] sm:$0xff] }
 0x16a   : > { %1078 = vmatpush.msra.mxu0 %v554_v36  ;;  %v433_v36 = vrot.slane %v4032_v40, 2 }
 0x16b   : > { %877 = vmatmul.f32.gmra.mxu0 %v4293_v53  ;;  %1178 = vmatpush.msrb.mxu1 %v577_v21 }
 0x16c   : > { %1044 = vmatmul.f32.gmra.mxu3 %v3801_v31  ;;  %v1309_v31 = vld [vmem:[#allocation4 + $0x3f8] sm:$0xff] }
 0x16d   : > { %1179 = vmatpush.msrb.mxu1 %v576_v29  ;;  %v935_v21 = vpop.f32.mrf.mxu2  ;;  %1433 = vmatpush.msra.mxu3 %v1309_v31  ;;  %v322_v29 = vrot.slane %v4016_v37, 1  ;;  %v571_v31 = vld [vmem:[#allocation4 + $0x108] sm:$0xff] }
 0x16e   : > { %v572_v21 = vld [vmem:[#allocation4 + $0x110] sm:$0xff] }
 0x16f   : > { %v997_v51 = vpop.f32.mrf.mxu3  ;;  %1180 = vmatpush.msrb.mxu1 %v575_v35 }
 0x170   : > { %v4300_v1 = vpop.f32.mrf.mxu0  ;;  %v430_v51 = vrot.slane %v4000_v25, 2  ;;  %v323_v25 = vsel %vm320_vm0, %v321_v58, %v322_v29 }
 0x171   : > { %6067 = vst [vmem:[#allocation99_spill] sm:$0xff] %v4300_v1  ;;  %1181 = vmatpush.msrb.mxu1 %v574_v19  ;;  %v1325_v19 = vld [vmem:[#allocation4 + $0x478] sm:$0xff]  ;;  %v570_v1 = vld [vmem:[#allocation4 + $0x100] sm:$0xff] }
 0x172   : > { %v432_v37 = vsel %vm429_vm1, %v430_v51, %v431_v30  ;;  %1540 = vmatpush.msrb.mxu0 %v1325_v19  ;;  %v434_v51 = vsel %vm429_vm1, %v431_v30, %v433_v36 }
 0x173   : > { %880 = vmatmul.f32.gmra.mxu0 %v4303_v9  ;;  %1182 = vmatpush.msrb.mxu1 %v573_v47  ;;  %v451_v47 = vrot.slane %v3920_v8, 2 }
 0x174   : > { %1047 = vmatmul.f32.gmra.mxu3 %v3819_v46  ;;  %v4315_v46 = vsel %vm429_vm1, %v447_v6, %v449_v18 }
 0x175   : > { %1183 = vmatpush.msrb.mxu1 %v572_v21  ;;  %v4322_v6 = vpop.f32.mrf.mxu2 }
 0x176   : > { %6069 = vst [vmem:[#allocation101_spill] sm:$0xff] %v4322_v6  ;;  %v1293_v6 = vld [vmem:[#allocation4 + $0x378] sm:$0xff] }
 0x177   : > { %v4312_v60 = vpop.f32.mrf.mxu3  ;;  %1184 = vmatpush.msrb.mxu1 %v571_v31  ;;  %v4331_v31 = vsel %vm429_vm1, %v449_v18, %v451_v47  ;;  %1326 = vmatpush.msrb.mxu2 %v1293_v6  ;;  %v1307_v6 = vld [vmem:[#allocation4 + $0x3e8] sm:$0xff] }
 0x178   : > { %6068 = vst [vmem:[#allocation100_spill] sm:$0xff] %v4312_v60  ;;  %v712_v35 = vpop.f32.mrf.mxu0  ;;  %v3403_v60 = vld [vmem:[#allocation2 + $0x48] sm:$0xff] }
 0x179   : > { %1185 = vmatpush.msrb.mxu1 %v570_v1  ;;  %v324_v35 = vrot.slane %v4032_v40, 1  ;;  %v453_v1 = vrot.slane %v3942_v22, 2 }
 0x17a   : > { %1186 = vmatmul.f32.vlgmr.msrb.gmra.mxu1 %v432_v37 }
 0x17b   : > { %883 = vmatmul.f32.gmra.mxu0 %v4315_v46  ;;  %v325_v8 = vsel %vm320_vm0, %v322_v29, %v324_v35  ;;  %v4343_v18 = vsel %vm429_vm1, %v451_v47, %v453_v1  ;;  %v6076_v47 = vrot.slane %v3899_v42, 2  ;;  %v1291_v42 = vld [vmem:[#allocation4 + $0x368] sm:$0xff] }
 0x17c   : > { %1050 = vmatmul.f32.gmra.mxu3 %v3836_v52  ;;  %v1308_v52 = vld [vmem:[#allocation4 + $0x3f0] sm:$0xff] }
 0x17d   : > { %v4338_v19 = vpop.f32.mrf.mxu2  ;;  %1434 = vmatpush.msra.mxu3 %v1308_v52 }
 0x17e   : > { %6072 = vst [vmem:[#allocation104_spill] sm:$0xff] %v4338_v19 }
 0x17f   : > { %v4326_v21 = vpop.f32.mrf.mxu3  ;;  %1435 = vmatpush.msra.mxu3 %v1307_v6  ;;  %v1305_v6 = vld [vmem:[#allocation4 + $0x3d8] sm:$0xff] }
 0x180   : > { %6070 = vst [vmem:[#allocation102_spill] sm:$0xff] %v4326_v21  ;;  %v4328_v58 = vpop.f32.mrf.mxu0  ;;  %v3401_v21 = vld [vmem:[#allocation2 + $0x38] sm:$0xff] }
 0x181   : > { %6071 = vst [vmem:[#allocation103_spill] sm:$0xff] %v4328_v58  ;;  %v1324_v58 = vld [vmem:[#allocation4 + $0x470] sm:$0xff] }
 0x182   : > { %1189 = vmatmul.f32.gmra.mxu1 %v434_v51  ;;  %1541 = vmatpush.msrb.mxu0 %v1324_v58  ;;  %v4355_v51 = vsel %vm429_vm1, %v453_v1, %v6076_v47  ;;  %v1292_v58 = vld [vmem:[#allocation4 + $0x370] sm:$0xff]  ;;  %v1322_v47 = vld [vmem:[#allocation4 + $0x460] sm:$0xff] }
 0x183   : > { %886 = vmatmul.f32.gmra.mxu0 %v4331_v31  ;;  %1327 = vmatpush.msrb.mxu2 %v1292_v58  ;;  %v1321_v58 = vld [vmem:[#allocation4 + $0x458] sm:$0xff] }
 0x184   : > { %1053 = vmatmul.f32.gmra.mxu3 %v3851_v59  ;;  %v6074_v59 = vrot.slane %v3795_v28, 2 }
 0x185   : > { %v944_v29 = vpop.f32.mrf.mxu2  ;;  %1328 = vmatpush.msrb.mxu2 %v1291_v42 }
 0x186   : > { %v436_v22 = vsel %vm429_vm1, %v433_v36, %v6074_v59  ;;  %v6081_v29 = vrot.slane %v3795_v28, 1 }
 0x187   : > { %v1006_v40 = vpop.f32.mrf.mxu3 }
 0x188   : > { %v4340_v37 = vpop.f32.mrf.mxu0  ;;  %v1323_v40 = vld [vmem:[#allocation4 + $0x468] sm:$0xff] }
 0x189   : > { %6073 = vst [vmem:[#allocation105_spill] sm:$0xff] %v4340_v37  ;;  %1542 = vmatpush.msrb.mxu0 %v1323_v40  ;;  %v1288_v40 = vld [vmem:[#allocation4 + $0x350] sm:$0xff]  ;;  %v1315_v37 = vld [vmem:[#allocation4 + $0x428] sm:$0xff] }
 0x18a   : > { %1192 = vmatmul.f32.gmra.mxu1 %v436_v22  ;;  %v1306_v22 = vld [vmem:[#allocation4 + $0x3e0] sm:$0xff] }
 0x18b   : > { %889 = vmatmul.f32.gmra.mxu0 %v4343_v18  ;;  %1436 = vmatpush.msra.mxu3 %v1306_v22  ;;  %v1304_v22 = vld [vmem:[#allocation4 + $0x3d0] sm:$0xff] }
 0x18c   : > { %1056 = vmatmul.f32.gmra.mxu3 %v3866_v7  ;;  %1543 = vmatpush.msrb.mxu0 %v1322_v47 }
 0x18d   : > { %1437 = vmatpush.msra.mxu3 %v1305_v6  ;;  %v1319_v6 = vld [vmem:[#allocation4 + $0x448] sm:$0xff] }
 0x18e   : > { %1544 = vmatpush.msrb.mxu0 %v1321_v58  ;;  %v1285_v58 = vld [vmem:[#allocation4 + $0x338] sm:$0xff] }
 0x18f   : > { %v4350_v30 = vpop.f32.mrf.mxu3  ;;  %1438 = vmatpush.msra.mxu3 %v1304_v22 }
 0x190   : > { %6075 = vst [vmem:[#allocation106_spill] sm:$0xff] %v4350_v30  ;;  %v721_v52 = vpop.f32.mrf.mxu0  ;;  %v6103_v30 = vld [vmem:[#allocation41_spill] sm:$0xff] }
 0x191   : > { %v327_v52 = vsel %vm320_vm0, %v324_v35, %v6081_v29  ;;  %v1320_v29 = vld [vmem:[#allocation4 + $0x450] sm:$0xff] }
 0x192   : > { %1195 = vmatmul.f32.gmra.mxu1 %v4247_v38  ;;  %1545 = vmatpush.msrb.mxu0 %v1320_v29  ;;  %v1318_v29 = vld [vmem:[#allocation4 + $0x440] sm:$0xff] }
 0x193   : > { %892 = vmatmul.f32.gmra.mxu0 %v4355_v51 }
 0x194   : > { %1059 = vmatmul.f32.gmra.mxu3 %v3881_v20  ;;  %1546 = vmatpush.msrb.mxu0 %v1319_v6  ;;  %v1301_v6 = vld [vmem:[#allocation4 + $0x3b8] sm:$0xff] }
 0x196   : > { %1547 = vmatpush.msrb.mxu0 %v1318_v29  ;;  %v1317_v29 = vld [vmem:[#allocation4 + $0x438] sm:$0xff] }
 0x197   : > { %v4360_v7 = vpop.f32.mrf.mxu3 }
 0x198   : > { %6077 = vst [vmem:[#allocation107_spill] sm:$0xff] %v4360_v7  ;;  %v4362_v36 = vpop.f32.mrf.mxu0  ;;  %1548 = vmatpush.msrb.mxu0 %v1317_v29  ;;  %v1295_v7 = vld [vmem:[#allocation4 + $0x388] sm:$0xff] }
 0x199   : > { %6078 = vst [vmem:[#allocation108_spill] sm:$0xff] %v4362_v36  ;;  %v1299_v36 = vld [vmem:[#allocation4 + $0x3a8] sm:$0xff] }
 0x19a   : > { %1198 = vmatmul.f32.gmra.mxu1 %v4259_v44 }
 0x19b   : > { %1079 = vmatmul.f32.vlgmr.msra.gmra.mxu0 %v323_v25  ;;  %v1290_v25 = vld [vmem:[#allocation4 + $0x360] sm:$0xff] }
 0x19c   : > { %1329 = vmatpush.msrb.mxu2 %v1290_v25 }
 0x19f   : > { %v1015_v1 = vpop.f32.mrf.mxu3 }
 0x1a0   : > { %v4365_v59 = vpop.f32.mrf.mxu0 }
 0x1a1   : > { %6079 = vst [vmem:[#allocation109_spill] sm:$0xff] %v4365_v59  ;;  %v1281_v59 = vld [vmem:[#allocation4 + $0x318] sm:$0xff] }
 0x1a2   : > { %1201 = vmatmul.f32.gmra.mxu1 %v4271_v12  ;;  %v1289_v12 = vld [vmem:[#allocation4 + $0x358] sm:$0xff] }
 0x1a3   : > { %1082 = vmatmul.f32.gmra.mxu0 %v325_v8  ;;  %1330 = vmatpush.msrb.mxu2 %v1289_v12 }
 0x1a5   : > { %1331 = vmatpush.msrb.mxu2 %v1288_v40  ;;  %v1302_v40 = vld [vmem:[#allocation4 + $0x3c0] sm:$0xff] }
 0x1a7   : > { %v4368_v20 = vpop.f32.mrf.mxu3 }
 0x1a8   : > { %6080 = vst [vmem:[#allocation110_spill] sm:$0xff] %v4368_v20  ;;  %v730_v38 = vpop.f32.mrf.mxu0  ;;  %v1296_v20 = vld [vmem:[#allocation4 + $0x390] sm:$0xff] }
 0x1aa   : > { %1204 = vmatmul.f32.gmra.mxu1 %v4281_v26 }
 0x1ab   : > { %1085 = vmatmul.f32.gmra.mxu0 %v327_v52 }
 0x1af   : > { %v4374_v44 = vpop.f32.mrf.mxu3 }
 0x1b0   : > { %6082 = vst [vmem:[#allocation111_spill] sm:$0xff] %v4374_v44  ;;  %v4376_v8 = vpop.f32.mrf.mxu0  ;;  %v6102_v44 = vld [vmem:[#allocation42_spill] sm:$0xff] }
 0x1b1   : > { %6083 = vst [vmem:[#allocation112_spill] sm:$0xff] %v4376_v8 }
 0x1b2   : > { %1207 = vmatmul.f32.gmra.mxu1 %v4293_v53 }
 0x1b3   : > { %1088 = vmatmul.f32.gmra.mxu0 %v3810_v43  ;;  %v1287_v43 = vld [vmem:[#allocation4 + $0x348] sm:$0xff] }
 0x1b4   : > { %1332 = vmatpush.msrb.mxu2 %v1287_v43  ;;  %v1284_v43 = vld [vmem:[#allocation4 + $0x330] sm:$0xff] }
 0x1b7   : > { %v1024_v28 = vpop.f32.mrf.mxu3 }
 0x1b8   : > { %v4380_v35 = vpop.f32.mrf.mxu0 }
 0x1b9   : > { %6084 = vst [vmem:[#allocation113_spill] sm:$0xff] %v4380_v35 }
 0x1ba   : > { %1210 = vmatmul.f32.gmra.mxu1 %v4303_v9 }
 0x1bb   : > { %1091 = vmatmul.f32.gmra.mxu0 %v3829_v49  ;;  %v1303_v49 = vld [vmem:[#allocation4 + $0x3c8] sm:$0xff] }
 0x1bc   : > { %1439 = vmatpush.msra.mxu3 %v1303_v49 }
 0x1be   : > { %1440 = vmatpush.msra.mxu3 %v1302_v40 }
 0x1bf   : > { %v4384_v42 = vpop.f32.mrf.mxu3 }
 0x1c0   : > { %6085 = vst [vmem:[#allocation114_spill] sm:$0xff] %v4384_v42  ;;  %v739_v1 = vpop.f32.mrf.mxu0  ;;  %1441 = vmatpush.msra.mxu3 %v1301_v6  ;;  %v1314_v42 = vld [vmem:[#allocation4 + $0x420] sm:$0xff] }
 0x1c2   : > { %1213 = vmatmul.f32.gmra.mxu1 %v4315_v46 }
 0x1c3   : > { %1094 = vmatmul.f32.gmra.mxu0 %v3844_v56  ;;  %v1286_v56 = vld [vmem:[#allocation4 + $0x340] sm:$0xff] }
 0x1c4   : > { %1333 = vmatpush.msrb.mxu2 %v1286_v56  ;;  %v4410_v56 = vpop.f32.mrf.mxu1 }
 0x1c5   : > { %6089 = vst [vmem:[#allocation118_spill] sm:$0xff] %v4410_v56  ;;  %v1297_v56 = vld [vmem:[#allocation4 + $0x398] sm:$0xff] }
 0x1c6   : > { %1334 = vmatpush.msrb.mxu2 %v1285_v58 }
 0x1c7   : > { %v4388_v38 = vpop.f32.mrf.mxu3 }
 0x1c8   : > { %6086 = vst [vmem:[#allocation115_spill] sm:$0xff] %v4388_v38  ;;  %v4390_v52 = vpop.f32.mrf.mxu0  ;;  %1335 = vmatpush.msrb.mxu2 %v1284_v43  ;;  %v6098_v38 = vld [vmem:[#allocation34_spill] sm:$0xff] }
 0x1ca   : > { %1216 = vmatmul.f32.gmra.mxu1 %v4331_v31 }
 0x1cb   : > { %1097 = vmatmul.f32.gmra.mxu0 %v3859_v4 }
 0x1cc   : > { %v4416_v43 = vpop.f32.mrf.mxu1 }
 0x1cd   : > { %6091 = vst [vmem:[#allocation120_spill] sm:$0xff] %v4416_v43  ;;  %v6099_v43 = vrot.slane %v3944_v23, 2  ;;  %v1294_v23 = vld [vmem:[#allocation4 + $0x380] sm:$0xff] }
 0x1cf   : > { %v1033_v25 = vpop.f32.mrf.mxu3 }
 0x1d0   : > { %v4394_v47 = vpop.f32.mrf.mxu0 }
 0x1d2   : > { %1219 = vmatmul.f32.gmra.mxu1 %v4343_v18 }
 0x1d3   : > { %1100 = vmatmul.f32.gmra.mxu0 %v3874_v17 }
 0x1d7   : > { %v4398_v12 = vpop.f32.mrf.mxu3 }
 0x1d8   : > { %6087 = vst [vmem:[#allocation116_spill] sm:$0xff] %v4398_v12  ;;  %v872_v28 = vpop.f32.mrf.mxu0  ;;  %v1278_v12 = vld [vmem:[#allocation4 + $0x300] sm:$0xff] }
 0x1d9   : > { %v1283_v28 = vld [vmem:[#allocation4 + $0x328] sm:$0xff] }
 0x1da   : > { %1222 = vmatmul.f32.gmra.mxu1 %v4355_v51  ;;  %1336 = vmatpush.msrb.mxu2 %v1283_v28  ;;  %v1300_v28 = vld [vmem:[#allocation4 + $0x3b0] sm:$0xff] }
 0x1db   : > { %1103 = vmatmul.f32.gmra.mxu0 %v3889_v34  ;;  %1442 = vmatpush.msra.mxu3 %v1300_v28  ;;  %v1280_v28 = vld [vmem:[#allocation4 + $0x310] sm:$0xff] }
 0x1dd   : > { %1443 = vmatpush.msra.mxu3 %v1299_v36 }
 0x1df   : > { %v4402_v1 = vpop.f32.mrf.mxu3 }
 0x1e0   : > { %6088 = vst [vmem:[#allocation117_spill] sm:$0xff] %v4402_v1  ;;  %v4404_v22 = vpop.f32.mrf.mxu0 }
 0x1e2   : > { %1225 = vmatmul.f32.gmra.mxu1 %v3912_v0 }
 0x1e3   : > { %1106 = vmatmul.f32.gmra.mxu0 %v3915_v2 }
 0x1e7   : > { %v1042_v49 = vpop.f32.mrf.mxu3 }
 0x1e8   : > { %v4408_v25 = vpop.f32.mrf.mxu0  ;;  %v1282_v49 = vld [vmem:[#allocation4 + $0x320] sm:$0xff] }
 0x1e9   : > { %1337 = vmatpush.msrb.mxu2 %v1282_v49  ;;  %v1316_v49 = vld [vmem:[#allocation4 + $0x430] sm:$0xff] }
 0x1ea   : > { %1228 = vmatmul.f32.gmra.mxu1 %v3934_v15  ;;  %1549 = vmatpush.msrb.mxu0 %v1316_v49 }
 0x1eb   : > { %1109 = vmatmul.f32.gmra.mxu0 %v3937_v16  ;;  %1338 = vmatpush.msrb.mxu2 %v1281_v59 }
 0x1ec   : > { %1550 = vmatpush.msrb.mxu0 %v1315_v37  ;;  %v5877_v37 = vrot.slane %v6098_v38, 2 }
 0x1ed   : > { %1339 = vmatpush.msrb.mxu2 %v1280_v28 }
 0x1ee   : > { %1551 = vmatpush.msrb.mxu0 %v1314_v42  ;;  %v6104_v42 = vld [vmem:[#allocation44_spill] sm:$0xff] }
 0x1ef   : > { %v4414_v58 = vpop.f32.mrf.mxu3 }
 0x1f0   : > { %6090 = vst [vmem:[#allocation119_spill] sm:$0xff] %v4414_v58  ;;  %v881_v40 = vpop.f32.mrf.mxu0 }
 0x1f2   : > { %1231 = vmatmul.f32.gmra.mxu1 %v3956_v32 }
 0x1f3   : > { %1112 = vmatmul.f32.gmra.mxu0 %v3959_v33 }
 0x1f7   : > { %v4420_v35 = vpop.f32.mrf.mxu3  ;;  %v4425_v6 = vpop.f32.mrf.mxu1 }
 0x1f8   : > { %6092 = vst [vmem:[#allocation121_spill] sm:$0xff] %v4420_v35  ;;  %v4422_v8 = vpop.f32.mrf.mxu0 }
 0x1fa   : > { %1234 = vmatmul.f32.gmra.mxu1 %v3976_v61 }
 0x1fb   : > { %1115 = vmatmul.f32.gmra.mxu0 %v3979_v62 }
 0x1ff   : > { %v1051_v40 = vpop.f32.mrf.mxu3  ;;  %v4431_v29 = vpop.f32.mrf.mxu1 }
 0x200   : > { %v4428_v19 = vpop.f32.mrf.mxu0 }
 0x201   : > { %6093 = vst [vmem:[#allocation122_spill] sm:$0xff] %v4428_v19 }
 0x202   : > { %1237 = vmatmul.f32.gmra.mxu1 %v3995_v13 }
 0x203   : > { %1118 = vmatmul.f32.gmra.mxu0 %v3998_v14 }
 0x207   : > { %v4434_v35 = vpop.f32.mrf.mxu3  ;;  %v1193_v40 = vpop.f32.mrf.mxu1 }
 0x208   : > { %6094 = vst [vmem:[#allocation123_spill] sm:$0xff] %v4434_v35  ;;  %v890_v58 = vpop.f32.mrf.mxu0  ;;  %v1298_v40 = vld [vmem:[#allocation4 + $0x3a0] sm:$0xff]  ;;  %v6097_v35 = vld [vmem:[#allocation40_spill] sm:$0xff] }
 0x209   : > { %v1279_v58 = vld [vmem:[#allocation4 + $0x308] sm:$0xff]  ;;  %1444 = vmatpush.msra.mxu3 %v1298_v40 }
 0x20a   : > { %1240 = vmatmul.f32.gmra.mxu1 %v4011_v54  ;;  %1340 = vmatpush.msrb.mxu2 %v1279_v58  ;;  %v4457_v58 = vsel %vm429_vm1, %v6099_v43, %v5877_v37  ;;  %v3400_v43 = vld [vmem:[#allocation2 + $0x30] sm:$0xff] }
 0x20b   : > { %1121 = vmatmul.f32.gmra.mxu0 %v4014_v48  ;;  %6100 = vst [vmem:[#allocation34_spill] sm:$0xff] %v4457_v58  ;;  %952 = vmatmul.f32.gmra.mxu2 %v4457_v58  ;;  %v1313_v58 = vld [vmem:[#allocation4 + $0x418] sm:$0xff] }
 0x20c   : > { %1341 = vmatpush.msrb.mxu2 %v1278_v12  ;;  %1445 = vmatpush.msra.mxu3 %v1297_v56 }
 0x20d   : > { %1552 = vmatpush.msrb.mxu0 %v1313_v58  ;;  %v6110_v58 = vld [vmem:[#allocation52_spill] sm:$0xff] }
 0x20e   : > { %1446 = vmatpush.msra.mxu3 %v1296_v20  ;;  %2329 = vmatpush.msra.mxu2 %v2231_v24  ;;  %v6106_v20 = vld [vmem:[#allocation43_spill] sm:$0xff] }
 0x20f   : > { %v4438_v59 = vpop.f32.mrf.mxu3  ;;  %v4443_v49 = vpop.f32.mrf.mxu1  ;;  %v2230_v24 = vld [vmem:[#allocation7 + $0x270] sm:$0xff]  ;;  %1553 = vmatpush.msrb.mxu0 %v1312_v57 }
 0x210   : > { %6095 = vst [vmem:[#allocation124_spill] sm:$0xff] %v4438_v59  ;;  %v4440_v1 = vpop.f32.mrf.mxu0  ;;  %1447 = vmatpush.msra.mxu3 %v1295_v7  ;;  %2330 = vmatpush.msra.mxu2 %v2230_v24 }
 0x211   : > { %6096 = vst [vmem:[#allocation125_spill] sm:$0xff] %v4440_v1  ;;  %v2229_v1 = vld [vmem:[#allocation7 + $0x268] sm:$0xff] }
 0x212   : > { %1243 = vmatmul.f32.gmra.mxu1 %v4027_v63  ;;  %1448 = vmatpush.msra.mxu3 %v1294_v23 }
 0x213   : > { %1124 = vmatmul.f32.gmra.mxu0 %v4030_v10  ;;  %1342 = vmatmul.f32.vlgmr.msrb.gmra.mxu2 %v3400_v43  ;;  %v6109_v43 = vld [vmem:[#allocation45_spill] sm:$0xff] }
 0x214   : > { %1449 = vmatmul.f32.vlgmr.msra.gmra.mxu3 %v3859_v4  ;;  %v3402_v4 = vld [vmem:[#allocation2 + $0x40] sm:$0xff]  ;;  %2331 = vmatpush.msra.mxu2 %v2229_v1 }
 0x217   : > { %v1060_v36 = vpop.f32.mrf.mxu3  ;;  %v4449_v59 = vpop.f32.mrf.mxu1 }
 0x218   : > { %v4446_v28 = vpop.f32.mrf.mxu0  ;;  %v6101_v36 = vld [vmem:[#allocation39_spill] sm:$0xff] }
 0x21a   : > { %1246 = vmatmul.f32.gmra.mxu1 %v6101_v36 }
 0x21b   : > { %1127 = vmatmul.f32.gmra.mxu0 %v6097_v35  ;;  %1345 = vmatmul.f32.gmra.mxu2 %v3401_v21 }
 0x21c   : > { %1452 = vmatmul.f32.gmra.mxu3 %v3874_v17  ;;  %v6111_v17 = vld [vmem:[#allocation49_spill] sm:$0xff] }
 0x21f   : > { %v1202_v12 = vpop.f32.mrf.mxu1 }
 0x220   : > { %v4461_v40 = vpop.f32.mrf.mxu0  ;;  %v2215_v12 = vld [vmem:[#allocation7 + $0x1f8] sm:$0xff] }
 0x221   : > { %2248 = vmatpush.msra.mxu1 %v2215_v12 }
 0x222   : > { %1249 = vmatmul.f32.gmra.mxu1 %v6103_v30 }
 0x223   : > { %1130 = vmatmul.f32.gmra.mxu0 %v6102_v44  ;;  %1348 = vmatmul.f32.gmra.mxu2 %v3402_v4 }
 0x224   : > { %1455 = vmatmul.f32.gmra.mxu3 %v3889_v34  ;;  %2249 = vmatpush.msra.mxu1 %v2214_v5  ;;  %v6113_v34 = vld [vmem:[#allocation54_spill] sm:$0xff]  ;;  %v6114_v5 = vld [vmem:[#allocation60_spill] sm:$0xff] }
 0x227   : > { %v4467_v56 = vpop.f32.mrf.mxu1 }
 0x228   : > { %v1086_v37 = vpop.f32.mrf.mxu0  ;;  %6105 = vst [vmem:[#allocation39_spill] sm:$0xff] %v4467_v56  ;;  %v6119_v56 = vld [vmem:[#allocation61_spill] sm:$0xff] }
 0x229   : > { %v6107_v37 = vld [vmem:[#allocation48_spill] sm:$0xff] }
 0x22a   : > { %1252 = vmatmul.f32.gmra.mxu1 %v6106_v20 }
 0x22b   : > { %1133 = vmatmul.f32.gmra.mxu0 %v6104_v42  ;;  %1351 = vmatmul.f32.gmra.mxu2 %v3403_v60  ;;  %v2213_v60 = vld [vmem:[#allocation7 + $0x1e8] sm:$0xff] }
 0x22c   : > { %1458 = vmatmul.f32.gmra.mxu3 %v3915_v2  ;;  %2250 = vmatpush.msra.mxu1 %v2213_v60  ;;  %v6116_v2 = vld [vmem:[#allocation57_spill] sm:$0xff] }
 0x22d   : > { %v2212_v60 = vld [vmem:[#allocation7 + $0x1e0] sm:$0xff] }
 0x22e   : > { %2251 = vmatpush.msra.mxu1 %v2212_v60  ;;  %v3408_v60 = vld [vmem:[#allocation2 + $0x70] sm:$0xff] }
 0x22f   : > { %v4474_v23 = vpop.f32.mrf.mxu1 }
 0x230   : > { %v4470_v7 = vpop.f32.mrf.mxu0  ;;  %6108 = vst [vmem:[#allocation42_spill] sm:$0xff] %v4474_v23 }
 0x232   : > { %1255 = vmatmul.f32.gmra.mxu1 %v6109_v43 }
 0x233   : > { %1136 = vmatmul.f32.gmra.mxu0 %v6107_v37 }
 0x234   : > { %1461 = vmatmul.f32.gmra.mxu3 %v3937_v16  ;;  %v2228_v16 = vld [vmem:[#allocation7 + $0x260] sm:$0xff] }
 0x235   : > { %2332 = vmatpush.msra.mxu2 %v2228_v16 }
 0x237   : > { %v1211_v21 = vpop.f32.mrf.mxu1 }
 0x238   : > { %v4477_v12 = vpop.f32.mrf.mxu0  ;;  %v3404_v21 = vld [vmem:[#allocation2 + $0x50] sm:$0xff] }
 0x239   : > { %1354 = vmatmul.f32.gmra.mxu2 %v3404_v21  ;;  %v6118_v21 = vld [vmem:[#allocation21_spill] sm:$0xff] }
 0x23a   : > { %1258 = vmatmul.f32.gmra.mxu1 %v6111_v17 }
 0x23b   : > { %1139 = vmatmul.f32.gmra.mxu0 %v6110_v58 }
 0x23c   : > { %1464 = vmatmul.f32.gmra.mxu3 %v3959_v33  ;;  %v6122_v33 = vld [vmem:[#allocation65_spill] sm:$0xff] }
 0x23f   : > { %v4484_v4 = vpop.f32.mrf.mxu1 }
 0x240   : > { %v1095_v24 = vpop.f32.mrf.mxu0  ;;  %6112 = vst [vmem:[#allocation41_spill] sm:$0xff] %v4484_v4  ;;  %v3405_v4 = vld [vmem:[#allocation2 + $0x58] sm:$0xff] }
 0x241   : > { %v1311_v24 = vld [vmem:[#allocation4 + $0x408] sm:$0xff]  ;;  %1357 = vmatmul.f32.gmra.mxu2 %v3405_v4 }
 0x242   : > { %1261 = vmatmul.f32.gmra.mxu1 %v6113_v34  ;;  %1554 = vmatpush.msrb.mxu0 %v1311_v24  ;;  %v6120_v24 = vld [vmem:[#allocation22_spill] sm:$0xff] }
 0x243   : > { %1142 = vmatmul.f32.gmra.mxu0 %v4118_v27 }
 0x244   : > { %1467 = vmatmul.f32.gmra.mxu3 %v3979_v62  ;;  %v2227_v62 = vld [vmem:[#allocation7 + $0x258] sm:$0xff] }
 0x245   : > { %2333 = vmatpush.msra.mxu2 %v2227_v62 }
 0x247   : > { %v4491_v57 = vpop.f32.mrf.mxu1 }
 0x248   : > { %v4487_v23 = vpop.f32.mrf.mxu0  ;;  %6115 = vst [vmem:[#allocation43_spill] sm:$0xff] %v4491_v57  ;;  %v3406_v57 = vld [vmem:[#allocation2 + $0x60] sm:$0xff] }
 0x249   : > { %1360 = vmatmul.f32.gmra.mxu2 %v3406_v57  ;;  %v6124_v57 = vld [vmem:[#allocation23_spill] sm:$0xff] }
 0x24a   : > { %1264 = vmatmul.f32.gmra.mxu1 %v6116_v2 }
 0x24b   : > { %1145 = vmatmul.f32.gmra.mxu0 %v6114_v5 }
 0x24c   : > { %1470 = vmatmul.f32.gmra.mxu3 %v3998_v14  ;;  %v3409_v14 = vld [vmem:[#allocation2 + $0x78] sm:$0xff] }
 0x24f   : > { %v1220_v45 = vpop.f32.mrf.mxu1 }
 0x250   : > { %v4494_v1 = vpop.f32.mrf.mxu0  ;;  %v3407_v45 = vld [vmem:[#allocation2 + $0x68] sm:$0xff] }
 0x251   : > { %6117 = vst [vmem:[#allocation45_spill] sm:$0xff] %v4494_v1  ;;  %v1310_v1 = vld [vmem:[#allocation4 + $0x400] sm:$0xff]  ;;  %1363 = vmatmul.f32.gmra.mxu2 %v3407_v45 }
 0x252   : > { %1267 = vmatmul.f32.gmra.mxu1 %v6119_v56  ;;  %1555 = vmatpush.msrb.mxu0 %v1310_v1  ;;  %v2211_v1 = vld [vmem:[#allocation7 + $0x1d8] sm:$0xff]  ;;  %v6127_v45 = vld [vmem:[#allocation25_spill] sm:$0xff] }
 0x253   : > { %1148 = vmatmul.f32.gmra.mxu0 %v6118_v21  ;;  %2252 = vmatpush.msra.mxu1 %v2211_v1 }
 0x254   : > { %1473 = vmatmul.f32.gmra.mxu3 %v4014_v48 }
 0x257   : > { %v4501_v4 = vpop.f32.mrf.mxu1 }
 0x258   : > { %v1104_v19 = vpop.f32.mrf.mxu0  ;;  %6121 = vst [vmem:[#allocation52_spill] sm:$0xff] %v4501_v4 }
 0x259   : > { %1366 = vmatmul.f32.gmra.mxu2 %v3408_v60  ;;  %v2210_v60 = vld [vmem:[#allocation7 + $0x1d0] sm:$0xff] }
 0x25a   : > { %1270 = vmatmul.f32.gmra.mxu1 %v6122_v33 }
 0x25b   : > { %1151 = vmatmul.f32.gmra.mxu0 %v6120_v24  ;;  %2253 = vmatpush.msra.mxu1 %v2210_v60 }
 0x25c   : > { %1476 = vmatmul.f32.gmra.mxu3 %v4030_v10  ;;  %v2225_v10 = vld [vmem:[#allocation7 + $0x248] sm:$0xff] }
 0x25f   : > { %v4508_v19 = vpop.f32.mrf.mxu1 }
 0x260   : > { %v4504_v16 = vpop.f32.mrf.mxu0  ;;  %6125 = vst [vmem:[#allocation54_spill] sm:$0xff] %v4508_v19  ;;  %v6128_v19 = vld [vmem:[#allocation27_spill] sm:$0xff] }
 0x261   : > { %6123 = vst [vmem:[#allocation49_spill] sm:$0xff] %v4504_v16  ;;  %1369 = vmatmul.f32.gmra.mxu2 %v3409_v14 }
 0x262   : > { %1273 = vmatmul.f32.gmra.mxu1 %v4167_v50  ;;  %v2226_v50 = vld [vmem:[#allocation7 + $0x250] sm:$0xff] }
 0x263   : > { %1154 = vmatmul.f32.gmra.mxu0 %v6124_v57  ;;  %2334 = vmatpush.msra.mxu2 %v2226_v50  ;;  %v6133_v50 = vld [vmem:[#allocation30_spill] sm:$0xff] }
 0x264   : > { %1479 = vmatmul.f32.gmra.mxu3 %v6097_v35 }
 0x265   : > { %2335 = vmatpush.msra.mxu2 %v2225_v10  ;;  %v2224_v10 = vld [vmem:[#allocation7 + $0x240] sm:$0xff] }
 0x267   : > { %v1229_v16 = vpop.f32.mrf.mxu1  ;;  %2336 = vmatpush.msra.mxu2 %v2224_v10 }
 0x268   : > { %v4511_v4 = vpop.f32.mrf.mxu0  ;;  %v6130_v16 = vld [vmem:[#allocation28_spill] sm:$0xff] }
 0x269   : > { %6126 = vst [vmem:[#allocation57_spill] sm:$0xff] %v4511_v4  ;;  %v3410_v4 = vld [vmem:[#allocation2 + $0x80] sm:$0xff] }
 0x26a   : > { %1372 = vmatmul.f32.gmra.mxu2 %v3410_v4  ;;  %v2209_v4 = vld [vmem:[#allocation7 + $0x1c8] sm:$0xff] }
 0x26b   : > { %1157 = vmatmul.f32.gmra.mxu0 %v6127_v45  ;;  %2254 = vmatpush.msra.mxu1 %v2209_v4 }
 0x26c   : > { %1482 = vmatmul.f32.gmra.mxu3 %v6102_v44 }
 0x26f   : > { %v4517_v62 = vpop.f32.mrf.mxu1 }
 0x270   : > { %v1113_v33 = vpop.f32.mrf.mxu0  ;;  %6129 = vst [vmem:[#allocation21_spill] sm:$0xff] %v4517_v62  ;;  %v3412_v62 = vld [vmem:[#allocation2 + $0x90] sm:$0xff] }
 0x271   : > { %v3411_v33 = vld [vmem:[#allocation2 + $0x88] sm:$0xff] }
 0x272   : > { %1375 = vmatmul.f32.gmra.mxu2 %v3411_v33  ;;  %v4533_v33 = vpop.f32.mrf.mxu2 }
 0x273   : > { %1160 = vmatmul.f32.gmra.mxu0 %v6128_v19  ;;  %6134 = vst [vmem:[#allocation30_spill] sm:$0xff] %v4533_v33  ;;  %v3418_v33 = vld [vmem:[#allocation2 + $0xc0] sm:$0xff] }
 0x274   : > { %1485 = vmatmul.f32.gmra.mxu3 %v6104_v42 }
 0x277   : > { %v4523_v14 = vpop.f32.mrf.mxu1 }
 0x278   : > { %v4519_v48 = vpop.f32.mrf.mxu0  ;;  %6131 = vst [vmem:[#allocation61_spill] sm:$0xff] %v4523_v14 }
 0x27a   : > { %1378 = vmatmul.f32.gmra.mxu2 %v3412_v62  ;;  %v4543_v4 = vpop.f32.mrf.mxu2 }
 0x27b   : > { %1163 = vmatmul.f32.gmra.mxu0 %v6130_v16  ;;  %6135 = vst [vmem:[#allocation126_spill] sm:$0xff] %v4543_v4  ;;  %v3416_v4 = vld [vmem:[#allocation2 + $0xb0] sm:$0xff] }
 0x27c   : > { %1488 = vmatmul.f32.gmra.mxu3 %v6107_v37  ;;  %v3415_v37 = vld [vmem:[#allocation2 + $0xa8] sm:$0xff] }
 0x27f   : > { %v1238_v60 = vpop.f32.mrf.mxu1 }
 0x280   : > { %v4525_v1 = vpop.f32.mrf.mxu0  ;;  %v3414_v60 = vld [vmem:[#allocation2 + $0xa0] sm:$0xff] }
 0x281   : > { %6132 = vst [vmem:[#allocation25_spill] sm:$0xff] %v4525_v1  ;;  %v3413_v1 = vld [vmem:[#allocation2 + $0x98] sm:$0xff] }
 0x282   : > { %1381 = vmatmul.f32.gmra.mxu2 %v3413_v1 }
 0x283   : > { %1166 = vmatmul.f32.gmra.mxu0 %v6133_v50 }
 0x284   : > { %1491 = vmatmul.f32.gmra.mxu3 %v6110_v58 }
 0x287   : > { %v4531_v14 = vpop.f32.mrf.mxu1 }
 0x288   : > { %v1122_v35 = vpop.f32.mrf.mxu0 }
 0x289   : > { %v2208_v35 = vld [vmem:[#allocation7 + $0x1c0] sm:$0xff] }
 0x28a   : > { %2255 = vmatpush.msra.mxu1 %v2208_v35  ;;  %1384 = vmatmul.f32.gmra.mxu2 %v3414_v60  ;;  %v2207_v60 = vld [vmem:[#allocation7 + $0x1b8] sm:$0xff] }
 0x28b   : > { %1556 = vmatmul.f32.vlgmr.msrb.gmra.mxu0 %v4281_v26 }
 0x28c   : > { %1494 = vmatmul.f32.gmra.mxu3 %v4118_v27  ;;  %2256 = vmatpush.msra.mxu1 %v2207_v60 }
 0x28e   : > { %v953_v42 = vpop.f32.mrf.mxu2 }
 0x28f   : > { %v4539_v62 = vpop.f32.mrf.mxu1 }
 0x290   : > { %v4535_v44 = vpop.f32.mrf.mxu0 }
 0x292   : > { %1387 = vmatmul.f32.gmra.mxu2 %v3415_v37 }
 0x293   : > { %1559 = vmatmul.f32.gmra.mxu0 %v4293_v53  ;;  %v2223_v53 = vld [vmem:[#allocation7 + $0x238] sm:$0xff] }
 0x294   : > { %2337 = vmatpush.msra.mxu2 %v2223_v53  ;;  %1497 = vmatmul.f32.gmra.mxu3 %v6114_v5  ;;  %v2206_v5 = vld [vmem:[#allocation7 + $0x1b0] sm:$0xff] }
 0x295   : > { %2257 = vmatpush.msra.mxu1 %v2206_v5 }
 0x296   : > { %v1343_v37 = vpop.f32.mrf.mxu2 }
 0x297   : > { %v1247_v1 = vpop.f32.mrf.mxu1  ;;  %v1450_v42 = vpop.f32.mrf.mxu3 }
 0x298   : > { %v4541_v26 = vpop.f32.mrf.mxu0  ;;  %v2222_v1 = vld [vmem:[#allocation7 + $0x230] sm:$0xff] }
 0x299   : > { %2338 = vmatpush.msra.mxu2 %v2222_v1 }
 0x29a   : > { %1390 = vmatmul.f32.gmra.mxu2 %v3416_v4 }
 0x29b   : > { %1562 = vmatmul.f32.gmra.mxu0 %v4303_v9 }
 0x29c   : > { %1500 = vmatmul.f32.gmra.mxu3 %v6118_v21  ;;  %v2221_v21 = vld [vmem:[#allocation7 + $0x228] sm:$0xff] }
 0x29d   : > { %2339 = vmatpush.msra.mxu2 %v2221_v21 }
 0x29e   : > { %v1346_v60 = vpop.f32.mrf.mxu2 }
 0x29f   : > { %v4549_v35 = vpop.f32.mrf.mxu1 }
 0x2a0   : > { %v1131_v10 = vpop.f32.mrf.mxu0 }
 0x2a1   : > { %v4557_v10 = vadd.f32 %v1450_v42, %v1343_v37 }
 0x2a3   : > { %1565 = vmatmul.f32.gmra.mxu0 %v4315_v46  ;;  %v3417_v46 = vld [vmem:[#allocation2 + $0xb8] sm:$0xff] }
 0x2a4   : > { %1393 = vmatmul.f32.gmra.mxu2 %v3417_v46  ;;  %1503 = vmatmul.f32.gmra.mxu3 %v6120_v24  ;;  %v3421_v24 = vld [vmem:[#allocation2 + $0xd8] sm:$0xff] }
 0x2a6   : > { %v1349_v42 = vpop.f32.mrf.mxu2 }
 0x2a7   : > { %v4555_v9 = vpop.f32.mrf.mxu1 }
 0x2a8   : > { %v4551_v58 = vpop.f32.mrf.mxu0  ;;  %6136 = vst [vmem:[#allocation127_spill] sm:$0xff] %v4555_v9  ;;  %v6153_v9 = vld [vmem:[#allocation51_spill] sm:$0xff] }
 0x2ab   : > { %1568 = vmatmul.f32.gmra.mxu0 %v4331_v31  ;;  %v1453_v31 = vpop.f32.mrf.mxu3 }
 0x2ac   : > { %v4563_v27 = vadd.f32 %v1453_v31, %v1346_v60  ;;  %1396 = vmatmul.f32.gmra.mxu2 %v3418_v33  ;;  %1506 = vmatmul.f32.gmra.mxu3 %v6124_v57  ;;  %v2205_v33 = vld [vmem:[#allocation7 + $0x1a8] sm:$0xff] }
 0x2ad   : > { %2258 = vmatpush.msra.mxu1 %v2205_v33 }
 0x2ae   : > { %v1352_v60 = vpop.f32.mrf.mxu2 }
 0x2af   : > { %v1256_v4 = vpop.f32.mrf.mxu1 }
 0x2b0   : > { %v4559_v53 = vpop.f32.mrf.mxu0 }
 0x2b3   : > { %1571 = vmatmul.f32.gmra.mxu0 %v4343_v18  ;;  %v1456_v46 = vpop.f32.mrf.mxu3  ;;  %v3419_v18 = vld [vmem:[#allocation2 + $0xc8] sm:$0xff] }
 0x2b4   : > { %1399 = vmatmul.f32.gmra.mxu2 %v3419_v18  ;;  %1509 = vmatmul.f32.gmra.mxu3 %v6127_v45  ;;  %v2220_v18 = vld [vmem:[#allocation7 + $0x220] sm:$0xff] }
 0x2b5   : > { %2340 = vmatpush.msra.mxu2 %v2220_v18 }
 0x2b7   : > { %v4567_v37 = vpop.f32.mrf.mxu1 }
 0x2b8   : > { %v1140_v1 = vpop.f32.mrf.mxu0  ;;  %6137 = vst [vmem:[#allocation128_spill] sm:$0xff] %v4567_v37  ;;  %v2243_v37 = vld [vmem:[#allocation7 + $0x2d8] sm:$0xff] }
 0x2b9   : > { %v3420_v1 = vld [vmem:[#allocation2 + $0xd0] sm:$0xff] }
 0x2bb   : > { %1574 = vmatmul.f32.gmra.mxu0 %v4355_v51  ;;  %v1459_v51 = vpop.f32.mrf.mxu3 }
 0x2bc   : > { %v4575_v31 = vadd.f32 %v1459_v51, %v1352_v60  ;;  %1402 = vmatmul.f32.gmra.mxu2 %v3420_v1  ;;  %v1355_v46 = vpop.f32.mrf.mxu2  ;;  %1512 = vmatmul.f32.gmra.mxu3 %v6128_v19  ;;  %v2204_v60 = vld [vmem:[#allocation7 + $0x1a0] sm:$0xff]  ;;  %v6144_v19 = vld [vmem:[#allocation32_spill] sm:$0xff] }
 0x2bd   : > { %2259 = vmatpush.msra.mxu1 %v2204_v60 }
 0x2bf   : > { %v4573_v5 = vpop.f32.mrf.mxu1 }
 0x2c0   : > { %v4569_v4 = vpop.f32.mrf.mxu0  ;;  %6138 = vst [vmem:[#allocation129_spill] sm:$0xff] %v4573_v5  ;;  %v3427_v5 = vld [vmem:[#allocation2 + $0x108] sm:$0xff] }
 0x2c3   : > { %1577 = vmatmul.f32.gmra.mxu0 %v3912_v0  ;;  %v1462_v0 = vpop.f32.mrf.mxu3 }
 0x2c4   : > { %v4581_v57 = vadd.f32 %v1462_v0, %v1355_v46  ;;  %1405 = vmatmul.f32.gmra.mxu2 %v3421_v24  ;;  %v1358_v45 = vpop.f32.mrf.mxu2  ;;  %1515 = vmatmul.f32.gmra.mxu3 %v6130_v16  ;;  %v2219_v0 = vld [vmem:[#allocation7 + $0x218] sm:$0xff]  ;;  %v3424_v16 = vld [vmem:[#allocation2 + $0xf0] sm:$0xff] }
 0x2c5   : > { %2341 = vmatpush.msra.mxu2 %v2219_v0  ;;  %v2203_v45 = vld [vmem:[#allocation7 + $0x198] sm:$0xff] }
 0x2c6   : > { %2260 = vmatpush.msra.mxu1 %v2203_v45 }
 0x2c7   : > { %v1265_v21 = vpop.f32.mrf.mxu1 }
 0x2c8   : > { %v4577_v42 = vpop.f32.mrf.mxu0  ;;  %v3422_v21 = vld [vmem:[#allocation2 + $0xe0] sm:$0xff] }
 0x2c9   : > { %6139 = vst [vmem:[#allocation130_spill] sm:$0xff] %v4577_v42  ;;  %v4637_v42 = vld [vmem:[#allocation2 + $0x118] sm:$0xff] }
 0x2cb   : > { %1580 = vmatmul.f32.gmra.mxu0 %v3934_v15  ;;  %v2247_v15 = vld [vmem:[#allocation7 + $0x2f8] sm:$0xff]  ;;  %v1465_v1 = vpop.f32.mrf.mxu3 }
 0x2cc   : > { %2410 = vmatpush.msrb.mxu3 %v2247_v15  ;;  %1408 = vmatmul.f32.gmra.mxu2 %v3422_v21  ;;  %v4593_v46 = vpop.f32.mrf.mxu2 }
 0x2cd   : > { %1518 = vmatmul.f32.gmra.mxu3 %v6133_v50  ;;  %v3425_v50 = vld [vmem:[#allocation2 + $0xf8] sm:$0xff] }
 0x2cf   : > { %v4585_v51 = vpop.f32.mrf.mxu1 }
 0x2d0   : > { %v1149_v33 = vpop.f32.mrf.mxu0  ;;  %6140 = vst [vmem:[#allocation131_spill] sm:$0xff] %v4585_v51  ;;  %v2218_v51 = vld [vmem:[#allocation7 + $0x210] sm:$0xff] }
 0x2d1   : > { %v3423_v33 = vld [vmem:[#allocation2 + $0xe8] sm:$0xff]  ;;  %2342 = vmatpush.msra.mxu2 %v2218_v51  ;;  %v4619_v51 = vld [vmem:[#allocation2 + $0x110] sm:$0xff] }
 0x2d3   : > { %1583 = vmatmul.f32.gmra.mxu0 %v3956_v32  ;;  %v4595_v32 = vpop.f32.mrf.mxu3 }
 0x2d4   : > { %1411 = vmatmul.f32.gmra.mxu2 %v3423_v33  ;;  %v4601_v15 = vpop.f32.mrf.mxu2 }
 0x2d5   : > { %1521 = vmatmul.f32.gmra.mxu3 %v6144_v19  ;;  %v2245_v19 = vld [vmem:[#allocation7 + $0x2e8] sm:$0xff] }
 0x2d7   : > { %v4591_v24 = vpop.f32.mrf.mxu1 }
 0x2d8   : > { %v4587_v18 = vpop.f32.mrf.mxu0  ;;  %6142 = vst [vmem:[#allocation133_spill] sm:$0xff] %v4591_v24 }
 0x2d9   : > { %6141 = vst [vmem:[#allocation132_spill] sm:$0xff] %v4587_v18 }
 0x2db   : > { %1586 = vmatmul.f32.gmra.mxu0 %v3976_v61  ;;  %v2246_v61 = vld [vmem:[#allocation7 + $0x2f0] sm:$0xff]  ;;  %v4603_v21 = vpop.f32.mrf.mxu3 }
 0x2dc   : > { %2411 = vmatpush.msrb.mxu3 %v2246_v61  ;;  %1414 = vmatmul.f32.gmra.mxu2 %v3424_v16  ;;  %v1367_v33 = vpop.f32.mrf.mxu2 }
 0x2dd   : > { %v6148_v33 = vld [vmem:[#allocation36_spill] sm:$0xff] }
 0x2de   : > { %2412 = vmatpush.msrb.mxu3 %v2245_v19  ;;  %v6150_v19 = vld [vmem:[#allocation47_spill] sm:$0xff] }
 0x2df   : > { %v1274_v1 = vpop.f32.mrf.mxu1 }
 0x2e0   : > { %v4597_v60 = vpop.f32.mrf.mxu0  ;;  %v2202_v1 = vld [vmem:[#allocation7 + $0x190] sm:$0xff] }
 0x2e1   : > { %6143 = vst [vmem:[#allocation134_spill] sm:$0xff] %v4597_v60  ;;  %2261 = vmatpush.msra.mxu1 %v2202_v1 }
 0x2e3   : > { %1589 = vmatmul.f32.gmra.mxu0 %v3995_v13  ;;  %v1474_v24 = vpop.f32.mrf.mxu3  ;;  %v6146_v13 = vld [vmem:[#allocation33_spill] sm:$0xff] }
 0x2e4   : > { %1417 = vmatmul.f32.gmra.mxu2 %v3425_v50  ;;  %1524 = vmatmul.f32.gmra.mxu3 %v6146_v13  ;;  %v4611_v16 = vpop.f32.mrf.mxu2  ;;  %v2201_v50 = vld [vmem:[#allocation7 + $0x188] sm:$0xff] }
 0x2e5   : > { %2262 = vmatpush.msra.mxu1 %v2201_v50 }
 0x2e8   : > { %v1158_v0 = vpop.f32.mrf.mxu0 }
 0x2e9   : > { %v2217_v0 = vld [vmem:[#allocation7 + $0x208] sm:$0xff] }
 0x2ea   : > { %2343 = vmatpush.msra.mxu2 %v2217_v0 }
 0x2eb   : > { %1592 = vmatmul.f32.gmra.mxu0 %v4011_v54  ;;  %v4613_v61 = vpop.f32.mrf.mxu3  ;;  %v3426_v54 = vld [vmem:[#allocation2 + $0x100] sm:$0xff] }
 0x2ec   : > { %1420 = vmatmul.f32.gmra.mxu2 %v3426_v54  ;;  %1527 = vmatmul.f32.gmra.mxu3 %v6148_v33  ;;  %v388_v54 = vrot.slane %v4619_v51, 1  ;;  %v6151_v33 = vrot.slane %v6098_v38, 1 }
 0x2ed   : > { %v4621_v13 = vpop.f32.mrf.mxu2 }
 0x2ee   : > { %v389_v0 = vsel %vm320_vm0, %v6151_v33, %v388_v54 }
 0x2f0   : > { %v4607_v45 = vpop.f32.mrf.mxu0 }
 0x2f1   : > { %6145 = vst [vmem:[#allocation32_spill] sm:$0xff] %v4607_v45 }
 0x2f3   : > { %1595 = vmatmul.f32.gmra.mxu0 %v4027_v63  ;;  %v2244_v63 = vld [vmem:[#allocation7 + $0x2e0] sm:$0xff]  ;;  %v4623_v1 = vpop.f32.mrf.mxu3 }
 0x2f4   : > { %2413 = vmatpush.msrb.mxu3 %v2244_v63  ;;  %1423 = vmatmul.f32.gmra.mxu2 %v3427_v5  ;;  %v2242_v63 = vld [vmem:[#allocation7 + $0x2d0] sm:$0xff] }
 0x2f5   : > { %1530 = vmatmul.f32.gmra.mxu3 %v389_v0  ;;  %v1376_v18 = vpop.f32.mrf.mxu2  ;;  %v4652_v0 = vstv %s3238_s3  ;;  %s3543_s3 = sshra.s32 %s3129_s9, 4  ;;  %s3544_s3 = int_to_ptr.hbm [resolvable:$true] %s3543_s3 }
 0x2f6   : > { %2414 = vmatpush.msrb.mxu3 %v2243_v37  ;;  %v390_v37 = vrot.slane %v4637_v42, 1  ;;  %vm1756_vm2 = vcmp.ge.s32.totalorder %v4652_v0, 0  ;;  %vm1766_vm3 = vcmp.lt.s32.totalorder %v4652_v0, 16  ;;  %s3545_s24 = scalar_lea.hbm %s3544_s3, 128  ;;  %p3550_p11 = scmp.lt.s32.totalorder %s3544_s3, %s5815_s5 }
 0x2f7   : > { %vm4664_vm4 = vmand %vm1756_vm2, %vm1766_vm3  ;;  %p3546_p7 = scmp.ne.s32.totalorder %s3544_s3, %s3545_s24  ;;  %p3551_p12 = scmp.lt.s32.totalorder %s3549_s11, %s3545_s24 }
 0x2f8   : > { %v4615_v24 = vpop.f32.mrf.mxu0  ;;  %2415 = vmatpush.msrb.mxu3 %v2242_v63  ;;  %v391_v18 = vsel %vm320_vm0, %v388_v54, %v390_v37  ;;  %v2238_v54 = vld [vmem:[#allocation7 + $0x2b0] sm:$0xff]  ;;  %v2200_v63 = vld [vmem:[#allocation7 + $0x180] sm:$0xff] }
 0x2f9   : > { %6147 = vst [vmem:[#allocation33_spill] sm:$0xff] %v4615_v24  ;;  %v6149_v24 = vld [vmem:[#allocation46_spill] sm:$0xff]  ;;  %2263 = vmatpush.msra.mxu1 %v2200_v63  ;;  %p3547_p9 = pnand %p3546_p7, %p3725_p3  ;;  %p3552_p13 = por %p3551_p12, %p3550_p11 }
 0x2fa   : > { %v760_v45 = vadd.f32 %v6150_v19, %v6149_v24  ;;  %v6152_v19 = vld [vmem:[#allocation50_spill] sm:$0xff] }
 0x2fb   : > { %1598 = vmatmul.f32.gmra.mxu0 %v6101_v36  ;;  %v1483_v24 = vpop.f32.mrf.mxu3  ;;  %v763_v33 = vadd.f32 %v6153_v9, %v6152_v19  ;;  %p3548_p10 = pneg %p3547_p9 }
 0x2fc   : > { %v867_v36 = vadd.f32 %v4390_v52, %v760_v45  ;;  %v2241_v45 = vld [vmem:[#allocation7 + $0x2c8] sm:$0xff]  ;;  %1426 = vmatmul.f32.gmra.mxu2 %v4619_v51 }
 0x2fd   : > { %2416 = vmatpush.msrb.mxu3 %v2241_v45  ;;  %v2236_v45 = vld [vmem:[#allocation7 + $0x2a0] sm:$0xff]  ;;  %p3553_p0 = pnand %p3552_p13, %p3548_p10 }
 0x2fe   : > { %v974_v50 = vadd.f32 %v4218_v3, %v867_v36  ;;  %v870_v3 = vadd.f32 %v4394_v47, %v763_v33  ;;  %1533 = vmatmul.f32.gmra.mxu3 %v391_v18  ;;  %v2239_v47 = vld [vmem:[#allocation7 + $0x2b8] sm:$0xff] }
 0x300   : > { %v1167_v60 = vpop.f32.mrf.mxu0  ;;  %v1081_v52 = vadd.f32 %v4446_v28, %v974_v50  ;;  %v977_v36 = vadd.f32 %v4224_v39, %v870_v3  ;;  %v2237_v39 = vld [vmem:[#allocation7 + $0x2a8] sm:$0xff] }
 0x301   : > { %v4650_v60 = vld [vmem:[%s5812_s2] ss:$0 sm:$0xff] }
 0x302   : > { %v1188_v9 = vadd.f32 %v4425_v6, %v1081_v52  ;;  %v4658_v6 = vpop.f32.mrf.mxu2  ;;  %v1084_v24 = vadd.f32 %v4461_v40, %v977_v36  ;;  %v2216_v52 = vld [vmem:[#allocation7 + $0x200] sm:$0xff] }
 0x303   : > { %1601 = vmatmul.f32.gmra.mxu0 %v6103_v30  ;;  %v2240_v30 = vld [vmem:[#allocation7 + $0x2c0] sm:$0xff]  ;;  %2344 = vmatpush.msra.mxu2 %v2216_v52  ;;  %v3640_v52 = vmov 0.0  }
 0x304   : > { %2417 = vmatpush.msrb.mxu3 %v2240_v30  ;;  %1429 = vmatmul.f32.gmra.mxu2 %v4637_v42  ;;  %v2235_v30 = vld [vmem:[#allocation7 + $0x298] sm:$0xff]  ;;  %v1191_v40 = vadd.f32 %v4431_v29, %v1084_v24  ;;  %v2233_v24 = vld [vmem:[#allocation7 + $0x288] sm:$0xff] }
 0x306   : > { %2418 = vmatpush.msrb.mxu3 %v2239_v47 }
 0x307   : > { %3236 = vmatmul.msk.f32.gmra.mxu3 %vm320_vm0, %v390_v37 }
 0x308   : > { %v1557_v5 = vpop.f32.mrf.mxu0  ;;  %2419 = vmatpush.msrb.mxu3 %v2238_v54 }
 0x309   : > { %v1558_v28 = vadd.f32 %v1557_v5, %v4557_v10  ;;  %v4660_v10 = vpop.f32.mrf.mxu3 }
 0x30a   : > { %2420 = vmatpush.msrb.mxu3 %v2237_v39  ;;  %v4677_v54 = vpop.f32.mrf.mxu2 }
 0x30b   : > { %v1647_v50 = vadd.f32 %v1558_v28, %v1188_v9  ;;  %1604 = vmatmul.f32.gmra.mxu0 %v6106_v20  ;;  %v6157_v9 = vld [vmem:[#allocation58_spill] sm:$0xff]  ;;  %v6158_v28 = vld [vmem:[#allocation59_spill] sm:$0xff] }
 0x30c   : > { %2421 = vmatpush.msrb.mxu3 %v2236_v45  ;;  %v769_v47 = vadd.f32 %v6158_v28, %v6157_v9 }
 0x30d   : > { %v1681_v19 = vadd.f32 %v4650_v60, %v1647_v50  ;;  %v2234_v50 = vld [vmem:[#allocation7 + $0x290] sm:$0xff] }
 0x30e   : > { %2422 = vmatpush.msrb.mxu3 %v2235_v30 }
 0x30f   : > { %v1711_v33 = vmax.f32 %v1681_v19, 0.0  ;;  %v2232_v19 = vld [vmem:[#allocation7 + $0x280] sm:$0xff] }
 0x310   : > { %v1560_v3 = vpop.f32.mrf.mxu0  ;;  %2423 = vmatpush.msrb.mxu3 %v2234_v50 }
 0x311   : > { %v1561_v5 = vadd.f32 %v1560_v3, %v4563_v27  ;;  %v1819_v18 = vsel %vm4664_vm4, %v1711_v33, 0.0  ;;  %v4679_v63 = vpop.f32.mrf.mxu3  ;;  %v876_v27 = vadd.f32 %v4404_v22, %v769_v47 }
 0x312   : > { %v4682_v29 = vrot.slane %v1819_v18, 7  ;;  %2424 = vmatpush.msrb.mxu3 %v2233_v24  ;;  %v1385_v28 = vpop.f32.mrf.mxu2 }
 0x313   : > { %v1648_v36 = vadd.f32 %v1561_v5, %v1191_v40  ;;  %1607 = vmatmul.f32.gmra.mxu0 %v6109_v43  ;;  %v4685_v43 = vrot.slane %v3640_v52, 7  ;;  %v983_v45 = vadd.f32 %v4242_v41, %v876_v27  ;;  %v6159_v40 = vld [vmem:[#allocation62_spill] sm:$0xff]  ;;  %v6160_v5 = vld [vmem:[#allocation63_spill] sm:$0xff] }
 0x314   : > { %2425 = vmatpush.msrb.mxu3 %v2232_v19  ;;  %v1969_v22 = vsel %vm1879_vm5, 0.0, %v4682_v29  ;;  %v772_v18 = vadd.f32 %v6160_v5, %v6159_v40  ;;  %v1743_v19 = vadd.s32 1, %v4652_v0  ;;  %v2166_v40 = vld [vmem:[#allocation7 + $0x78] sm:$0xff] }
 0x315   : > { %v1682_v37 = vadd.f32 %v4650_v60, %v1648_v36  ;;  %v1090_v9 = vadd.f32 %v4470_v7, %v983_v45  ;;  %v1971_v41 = vrot.slane %v1969_v22, 1  ;;  %v2061_v20 = vrot.slane %v1969_v22, 2  ;;  %2491 = vmatpush.msrb.mxu1 %v2166_v40 }
 0x316   : > { %v879_v24 = vadd.f32 %v4408_v25, %v772_v18  ;;  %v2182_v25 = vld [vmem:[#allocation7 + $0xf8] sm:$0xff]  ;;  %vm1757_vm6 = vcmp.ge.s32.totalorder %v1743_v19, 0  ;;  %vm1767_vm7 = vcmp.lt.s32.totalorder %v1743_v19, 16  ;;  %v2165_v19 = vld [vmem:[#allocation7 + $0x70] sm:$0xff] }
 0x317   : > { %v1712_v39 = vmax.f32 %v1682_v37, 0.0  ;;  %v1197_v22 = vadd.f32 %v4443_v49, %v1090_v9  ;;  %2572 = vmatpush.msrb.mxu2 %v2182_v25  ;;  %vm4732_vm8 = vmand %vm1757_vm6, %vm1767_vm7  ;;  %2492 = vmatpush.msrb.mxu1 %v2165_v19  ;;  %v6164_v25 = vld [vmem:[#allocation69_spill] sm:$0xff] }
 0x318   : > { %v1563_v33 = vpop.f32.mrf.mxu0  ;;  %v986_v5 = vadd.f32 %v4254_v55, %v879_v24  ;;  %v2181_v24 = vld [vmem:[#allocation7 + $0xf0] sm:$0xff]  ;;  %v6167_v19 = vld [vmem:[#allocation73_spill] sm:$0xff] }
 0x319   : > { %v1820_v3 = vsel %vm4664_vm4, %v1712_v39, 0.0  ;;  %v1492_v47 = vpop.f32.mrf.mxu3  ;;  %2573 = vmatpush.msrb.mxu2 %v2181_v24  ;;  %v6166_v24 = vld [vmem:[#allocation72_spill] sm:$0xff] }
 0x31a   : > { %v1881_v30 = vrot.slane %v1820_v3, 7  ;;  %v4726_v28 = vpop.f32.mrf.mxu2 }
 0x31b   : > { %1610 = vmatmul.f32.gmra.mxu0 %v6111_v17 }
 0x31c   : > { %v4698_v36 = vsel %vm1879_vm5, %v4682_v29, %v1881_v30  ;;  %v4702_v50 = vsel %vm1879_vm5, %v1881_v30, %v4685_v43 }
 0x31d   : > { %v1972_v27 = vrot.slane %v4698_v36, 1  ;;  %v2062_v37 = vrot.slane %v4698_v36, 2  ;;  %v1974_v7 = vrot.slane %v4702_v50, 1  ;;  %v2064_v17 = vrot.slane %v4702_v50, 2 }
 0x31f   : > { %v4711_v39 = vsel %vm320_vm0, %v1971_v41, %v1972_v27  ;;  %v4714_v33 = vsel %vm429_vm1, %v2061_v20, %v2062_v37  ;;  %v4717_v52 = vsel %vm320_vm0, %v1972_v27, %v1974_v7  ;;  %v4720_v45 = vsel %vm429_vm1, %v2062_v37, %v2064_v17 }
 0x320   : > { %v1566_v3 = vpop.f32.mrf.mxu0  ;;  %v1093_v41 = vadd.f32 %v4477_v12, %v986_v5 }
 0x321   : > { %v1567_v30 = vadd.f32 %v1566_v3, %v4575_v31  ;;  %v4728_v47 = vpop.f32.mrf.mxu3 }
 0x322   : > { %v1200_v20 = vadd.f32 %v4449_v59, %v1093_v41 }
 0x323   : > { %v1650_v18 = vadd.f32 %v1567_v30, %v1197_v22  ;;  %1613 = vmatmul.f32.gmra.mxu0 %v6113_v34  ;;  %v4745_v22 = vpop.f32.mrf.mxu2  ;;  %v6163_v30 = vld [vmem:[#allocation68_spill] sm:$0xff] }
 0x324   : > { %v778_v40 = vadd.f32 %v6164_v25, %v6163_v30 }
 0x325   : > { %v1684_v49 = vadd.f32 %v4650_v60, %v1650_v18 }
 0x327   : > { %v1714_v55 = vmax.f32 %v1684_v49, 0.0 }
 0x328   : > { %v1569_v9 = vpop.f32.mrf.mxu0 }
 0x329   : > { %v1822_v34 = vsel %vm4732_vm8, %v1714_v55, 0.0  ;;  %v1570_v27 = vadd.f32 %v1569_v9, %v4581_v57  ;;  %v4747_v59 = vpop.f32.mrf.mxu3 }
 0x32a   : > { %v1885_v37 = vrot.slane %v1822_v34, 7 }
 0x32b   : > { %v1651_v3 = vadd.f32 %v1570_v27, %v1200_v20  ;;  %1616 = vmatmul.f32.gmra.mxu0 %v6116_v2  ;;  %v885_v2 = vadd.f32 %v4422_v8, %v778_v40  ;;  %v6169_v40 = vld [vmem:[#allocation122_spill] sm:$0xff] }
 0x32c   : > { %v4743_v12 = vsel %vm1879_vm5, %v4685_v43, %v1885_v37 }
 0x32d   : > { %v1685_v57 = vadd.f32 %v4650_v60, %v1651_v3  ;;  %v1976_v5 = vrot.slane %v4743_v12, 1  ;;  %v2066_v18 = vrot.slane %v4743_v12, 2  ;;  %2264 = vmatmul.f32.vlgmr.msra.gmra.mxu1 %v4743_v12  ;;  %v992_v27 = vadd.f32 %v4278_v11, %v885_v2 }
 0x32e   : > { %v781_v3 = vadd.f32 %v6167_v19, %v6166_v24  ;;  %v6174_v24 = vld [vmem:[#allocation96_spill] sm:$0xff] }
 0x32f   : > { %v1715_v41 = vmax.f32 %v1685_v57, 0.0  ;;  %v4757_v49 = vsel %vm320_vm0, %v1974_v7, %v1976_v5  ;;  %v4760_v55 = vsel %vm429_vm1, %v2064_v17, %v2066_v18  ;;  %v1394_v7 = vpop.f32.mrf.mxu2  ;;  %v1099_v17 = vadd.f32 %v4487_v23, %v992_v27 }
 0x330   : > { %6165 = vst [vmem:[#allocation36_spill] sm:$0xff] %v4760_v55  ;;  %v1572_v9 = vpop.f32.mrf.mxu0  ;;  %v888_v11 = vadd.f32 %v6169_v40, %v781_v3  ;;  %v1469_v57 = vadd.f32 %v4595_v32, %v4593_v46  ;;  %v2180_v32 = vld [vmem:[#allocation7 + $0xe8] sm:$0xff]  ;;  %v6176_v40 = vld [vmem:[#allocation45_spill] sm:$0xff]  ;;  %v6214_v55 = vld [vmem:[#allocation88_spill] sm:$0xff] }
 0x331   : > { %v1823_v20 = vsel %vm4732_vm8, %v1715_v41, 0.0  ;;  %v1501_v30 = vpop.f32.mrf.mxu3  ;;  %v6173_v9 = vld [vmem:[#allocation39_spill] sm:$0xff]  ;;  %2574 = vmatpush.msrb.mxu2 %v2180_v32 }
 0x332   : > { %v1887_v34 = vrot.slane %v1823_v20, 7  ;;  %v1206_v20 = vadd.f32 %v6173_v9, %v1099_v17  ;;  %v995_v46 = vadd.f32 %v6174_v24, %v888_v11  ;;  %v2750_v17 = vld [vmem:[#allocation7 + $0x378] sm:$0xff]  ;;  %v2749_v9 = vld [vmem:[#allocation7 + $0x370] sm:$0xff] }
 0x333   : > { %1619 = vmatmul.f32.gmra.mxu0 %v6119_v56  ;;  %v1744_v56 = vadd.s32 2, %v4652_v0 }
 0x334   : > { %v4769_v8 = vsel %vm1879_vm5, %v1885_v37, %v1887_v34  ;;  %v4789_v41 = vsel %vm1879_vm5, %v1887_v34, %v4685_v43  ;;  %v1102_v11 = vadd.f32 %v6176_v40, %v995_v46  ;;  %2783 = vmatpush.msra.mxu0 %v2750_v17  ;;  %v2163_v17 = vld [vmem:[#allocation7 + $0x60] sm:$0xff] }
 0x335   : > { %6168 = vst [vmem:[#allocation46_spill] sm:$0xff] %v4769_v8  ;;  %v1978_v25 = vrot.slane %v4769_v8, 1  ;;  %v2068_v31 = vrot.slane %v4769_v8, 2  ;;  %2267 = vmatmul.f32.gmra.mxu1 %v4769_v8  ;;  %vm1758_vm9 = vcmp.ge.s32.totalorder %v1744_v56, 0  ;;  %vm1768_vm10 = vcmp.lt.s32.totalorder %v1744_v56, 16  ;;  %v2748_v56 = vld [vmem:[#allocation7 + $0x368] sm:$0xff] }
 0x336   : > { %6172 = vst [vmem:[#allocation51_spill] sm:$0xff] %v4789_v41  ;;  %v1980_v3 = vrot.slane %v4789_v41, 1  ;;  %v2070_v7 = vrot.slane %v4789_v41, 2  ;;  %vm4804_vm11 = vmand %vm1758_vm9, %vm1768_vm10  ;;  %2784 = vmatpush.msra.mxu0 %v2749_v9  ;;  %v2747_v40 = vld [vmem:[#allocation7 + $0x360] sm:$0xff]  ;;  %v2746_v9 = vld [vmem:[#allocation7 + $0x358] sm:$0xff] }
 0x337   : > { %v4780_v37 = vsel %vm320_vm0, %v1976_v5, %v1978_v25  ;;  %v4783_v2 = vsel %vm429_vm1, %v2066_v18, %v2068_v31  ;;  %v2164_v5 = vld [vmem:[#allocation7 + $0x68] sm:$0xff]  ;;  %v6175_v18 = vld [vmem:[#allocation65_spill] sm:$0xff]  ;;  %v4796_v34 = vpop.f32.mrf.mxu2 }
 0x338   : > { %6170 = vst [vmem:[#allocation47_spill] sm:$0xff] %v4780_v37  ;;  %v1575_v23 = vpop.f32.mrf.mxu0  ;;  %2345 = vmatmul.f32.vlgmr.msra.gmra.mxu2 %v4780_v37  ;;  %2426 = vmatmul.f32.vlgmr.msrb.gmra.mxu3 %v4783_v2  ;;  %v4811_v24 = vsel %vm320_vm0, %v1978_v25, %v1980_v3  ;;  %v4814_v46 = vsel %vm429_vm1, %v2068_v31, %v2070_v7  ;;  %v2179_v25 = vld [vmem:[#allocation7 + $0xe0] sm:$0xff]  ;;  %v6212_v8 = vld [vmem:[#allocation106_spill] sm:$0xff] }
 0x339   : > { %6171 = vst [vmem:[#allocation50_spill] sm:$0xff] %v4783_v2  ;;  %v1576_v27 = vadd.f32 %v1575_v23, %v1469_v57  ;;  %2493 = vmatpush.msrb.mxu1 %v2164_v5  ;;  %v4798_v30 = vpop.f32.mrf.mxu3  ;;  %v6181_v5 = vld [vmem:[#allocation42_spill] sm:$0xff]  ;;  %2785 = vmatpush.msra.mxu0 %v2748_v56  ;;  %v6192_v37 = vld [vmem:[#allocation49_spill] sm:$0xff] }
 0x33a   : > { %6179 = vst [vmem:[#allocation58_spill] sm:$0xff] %v4811_v24  ;;  %2575 = vmatpush.msrb.mxu2 %v2179_v25  ;;  %v6185_v25 = vld [vmem:[#allocation125_spill] sm:$0xff]  ;;  %v6191_v2 = vld [vmem:[#allocation82_spill] sm:$0xff] }
 0x33b   : > { %v1653_v19 = vadd.f32 %v1576_v27, %v1206_v20  ;;  %1622 = vmatmul.f32.gmra.mxu0 %v6175_v18  ;;  %v1472_v20 = vadd.f32 %v4603_v21, %v4601_v15  ;;  %6180 = vst [vmem:[#allocation59_spill] sm:$0xff] %v4814_v46  ;;  %2494 = vmatpush.msrb.mxu1 %v2163_v17 }
 0x33c   : > { %2786 = vmatpush.msra.mxu0 %v2747_v40 }
 0x33d   : > { %v1687_v57 = vadd.f32 %v4650_v60, %v1653_v19  ;;  %2270 = vmatmul.f32.gmra.mxu1 %v4789_v41  ;;  %v1209_v19 = vadd.f32 %v6181_v5, %v1102_v11  ;;  %v6188_v41 = vld [vmem:[#allocation100_spill] sm:$0xff] }
 0x33e   : > { %2787 = vmatpush.msra.mxu0 %v2746_v9  ;;  %v2744_v9 = vld [vmem:[#allocation7 + $0x348] sm:$0xff] }
 0x33f   : > { %v1717_v27 = vmax.f32 %v1687_v57, 0.0  ;;  %v6182_v57 = vld [vmem:[#allocation67_spill] sm:$0xff]  ;;  %v4826_v11 = vpop.f32.mrf.mxu2 }
 0x340   : > { %v1578_v32 = vpop.f32.mrf.mxu0  ;;  %2348 = vmatmul.f32.gmra.mxu2 %v4811_v24  ;;  %2429 = vmatmul.f32.gmra.mxu3 %v4814_v46 }
 0x341   : > { %v1825_v18 = vsel %vm4804_vm11, %v1717_v27, 0.0  ;;  %v1579_v15 = vadd.f32 %v1578_v32, %v1472_v20  ;;  %v4828_v27 = vpop.f32.mrf.mxu3  ;;  %v6183_v20 = vld [vmem:[#allocation78_spill] sm:$0xff]  ;;  %v6184_v32 = vld [vmem:[#allocation79_spill] sm:$0xff] }
 0x342   : > { %v1891_v21 = vrot.slane %v1825_v18, 7  ;;  %v787_v56 = vadd.f32 %v6184_v32, %v6183_v20 }
 0x343   : > { %v1654_v31 = vadd.f32 %v1579_v15, %v1209_v19  ;;  %1625 = vmatmul.f32.gmra.mxu0 %v6182_v57  ;;  %v2745_v15 = vld [vmem:[#allocation7 + $0x350] sm:$0xff] }
 0x344   : > { %v4824_v46 = vsel %vm1879_vm5, %v4685_v43, %v1891_v21  ;;  %v894_v17 = vadd.f32 %v6185_v25, %v787_v56  ;;  %2788 = vmatpush.msra.mxu0 %v2745_v15  ;;  %v6190_v25 = vld [vmem:[#allocation81_spill] sm:$0xff] }
 0x345   : > { %v1688_v5 = vadd.f32 %v4650_v60, %v1654_v31  ;;  %2272 = vmatmul.f32.gmra.mxu1 %v4824_v46  ;;  %v1982_v19 = vrot.slane %v4824_v46, 1  ;;  %v2072_v18 = vrot.slane %v4824_v46, 2 }
 0x346   : > { %v1001_v56 = vadd.f32 %v6188_v41, %v894_v17  ;;  %2789 = vmatpush.msra.mxu0 %v2744_v9  ;;  %v1745_v17 = vadd.s32 3, %v4652_v0 }
 0x347   : > { %v1718_v40 = vmax.f32 %v1688_v5, 0.0  ;;  %v4838_v57 = vsel %vm320_vm0, %v1980_v3, %v1982_v19  ;;  %v4841_v24 = vsel %vm429_vm1, %v2070_v7, %v2072_v18  ;;  %v6189_v5 = vld [vmem:[#allocation71_spill] sm:$0xff]  ;;  %v2743_v3 = vld [vmem:[#allocation7 + $0x340] sm:$0xff]  ;;  %v790_v7 = vadd.f32 %v6191_v2, %v6190_v25  ;;  %v2162_v25 = vld [vmem:[#allocation7 + $0x58] sm:$0xff] }
 0x348   : > { %6186 = vst [vmem:[#allocation62_spill] sm:$0xff] %v4838_v57  ;;  %v1581_v20 = vpop.f32.mrf.mxu0  ;;  %2351 = vmatmul.f32.gmra.mxu2 %v4838_v57  ;;  %2432 = vmatmul.f32.gmra.mxu3 %v4841_v24  ;;  %v1403_v57 = vpop.f32.mrf.mxu2  ;;  %v1108_v23 = vadd.f32 %v6192_v37, %v1001_v56  ;;  %v1478_v2 = vadd.f32 %v4613_v61, %v4611_v16  ;;  %v6195_v37 = vld [vmem:[#allocation70_spill] sm:$0xff]  ;;  %v6196_v56 = vld [vmem:[#allocation41_spill] sm:$0xff]  ;;  %v2741_v61 = vld [vmem:[#allocation7 + $0x330] sm:$0xff]  ;;  %vm1759_vm12 = vcmp.ge.s32.totalorder %v1745_v17, 0  ;;  %vm1769_vm13 = vcmp.lt.s32.totalorder %v1745_v17, 16 }
 0x349   : > { %6187 = vst [vmem:[#allocation63_spill] sm:$0xff] %v4841_v24  ;;  %v1826_v31 = vsel %vm4804_vm11, %v1718_v40, 0.0  ;;  %v1510_v24 = vpop.f32.mrf.mxu3  ;;  %2790 = vmatpush.msra.mxu0 %v2743_v3  ;;  %v2742_v40 = vld [vmem:[#allocation7 + $0x338] sm:$0xff]  ;;  %v897_v57 = vadd.f32 %v6195_v37, %v790_v7  ;;  %v6198_v37 = vld [vmem:[#allocation75_spill] sm:$0xff]  ;;  %2495 = vmatpush.msrb.mxu1 %v2162_v25  ;;  %vm4887_vm14 = vmand %vm1759_vm12, %vm1769_vm13 }
 0x34a   : > { %v1893_v32 = vrot.slane %v1826_v31, 7  ;;  %v6204_v17 = vld [vmem:[#allocation43_spill] sm:$0xff] }
 0x34b   : > { %1628 = vmatmul.f32.gmra.mxu0 %v6189_v5  ;;  %v1215_v5 = vadd.f32 %v6196_v56, %v1108_v23 }
 0x34c   : > { %v4852_v20 = vsel %vm1879_vm5, %v1891_v21, %v1893_v32  ;;  %v4872_v9 = vsel %vm1879_vm5, %v1893_v32, %v4685_v43  ;;  %2791 = vmatpush.msra.mxu0 %v2742_v40  ;;  %v2740_v32 = vld [vmem:[#allocation7 + $0x328] sm:$0xff] }
 0x34d   : > { %2275 = vmatmul.f32.gmra.mxu1 %v4852_v20  ;;  %v1984_v15 = vrot.slane %v4852_v20, 1  ;;  %v2074_v41 = vrot.slane %v4852_v20, 2 }
 0x34e   : > { %2792 = vmatpush.msra.mxu0 %v2741_v61 }
 0x34f   : > { %v4862_v21 = vsel %vm320_vm0, %v1982_v19, %v1984_v15  ;;  %v4865_v24 = vsel %vm429_vm1, %v2072_v18, %v2074_v41  ;;  %v6197_v19 = vld [vmem:[#allocation102_spill] sm:$0xff]  ;;  %v2178_v18 = vld [vmem:[#allocation7 + $0xd8] sm:$0xff] }
 0x350   : > { %6193 = vst [vmem:[#allocation68_spill] sm:$0xff] %v4862_v21  ;;  %v1584_v31 = vpop.f32.mrf.mxu0  ;;  %2353 = vmatmul.f32.gmra.mxu2 %v4862_v21  ;;  %2434 = vmatmul.f32.gmra.mxu3 %v4865_v24  ;;  %v1004_v3 = vadd.f32 %v6197_v19, %v897_v57  ;;  %v2076_v21 = vrot.slane %v4872_v9, 2  ;;  %v4879_v23 = vpop.f32.mrf.mxu2 }
 0x351   : > { %6194 = vst [vmem:[#allocation69_spill] sm:$0xff] %v4865_v24  ;;  %v1585_v16 = vadd.f32 %v1584_v31, %v1478_v2  ;;  %v1986_v24 = vrot.slane %v4872_v9, 1  ;;  %2576 = vmatpush.msrb.mxu2 %v2178_v18  ;;  %v4881_v40 = vpop.f32.mrf.mxu3  ;;  %v6199_v2 = vld [vmem:[#allocation57_spill] sm:$0xff]  ;;  %2793 = vmatpush.msra.mxu0 %v2740_v32  ;;  %v2177_v32 = vld [vmem:[#allocation7 + $0xd0] sm:$0xff] }
 0x352   : > { %v1111_v57 = vadd.f32 %v6199_v2, %v1004_v3  ;;  %v4897_v3 = vsel %vm429_vm1, %v2074_v41, %v2076_v21  ;;  %v2737_v41 = vld [vmem:[#allocation7 + $0x310] sm:$0xff] }
 0x353   : > { %v1656_v7 = vadd.f32 %v1585_v16, %v1215_v5  ;;  %1631 = vmatmul.f32.gmra.mxu0 %v6198_v37  ;;  %v2739_v5 = vld [vmem:[#allocation7 + $0x320] sm:$0xff]  ;;  %v1481_v16 = vadd.f32 %v4623_v1, %v4621_v13  ;;  %v4894_v19 = vsel %vm320_vm0, %v1984_v15, %v1986_v24  ;;  %6203 = vst [vmem:[#allocation73_spill] sm:$0xff] %v4897_v3  ;;  %v2738_v13 = vld [vmem:[#allocation7 + $0x318] sm:$0xff]  ;;  %v2161_v15 = vld [vmem:[#allocation7 + $0x50] sm:$0xff] }
 0x354   : > { %6202 = vst [vmem:[#allocation72_spill] sm:$0xff] %v4894_v19  ;;  %v1218_v25 = vadd.f32 %v6204_v17, %v1111_v57  ;;  %2794 = vmatpush.msra.mxu0 %v2739_v5  ;;  %2577 = vmatpush.msrb.mxu2 %v2177_v32  ;;  %v497_v57 = vrot.slane %v4619_v51, 2  ;;  %v2736_v32 = vld [vmem:[#allocation7 + $0x308] sm:$0xff] }
 0x355   : > { %v1690_v31 = vadd.f32 %v4650_v60, %v1656_v7  ;;  %2278 = vmatmul.f32.gmra.mxu1 %v4872_v9 }
 0x356   : > { %2795 = vmatpush.msra.mxu0 %v2738_v13  ;;  %2496 = vmatpush.msrb.mxu1 %v2161_v15 }
 0x357   : > { %v1720_v61 = vmax.f32 %v1690_v31, 0.0  ;;  %v6205_v31 = vld [vmem:[#allocation34_spill] sm:$0xff] }
 0x358   : > { %v1587_v18 = vpop.f32.mrf.mxu0  ;;  %2356 = vmatmul.f32.gmra.mxu2 %v4894_v19  ;;  %2437 = vmatmul.f32.gmra.mxu3 %v4897_v3 }
 0x359   : > { %v1828_v7 = vsel %vm4887_vm14, %v1720_v61, 0.0  ;;  %v1588_v37 = vadd.f32 %v1587_v18, %v1481_v16  ;;  %v4910_v61 = vpop.f32.mrf.mxu2  ;;  %v4912_v5 = vpop.f32.mrf.mxu3  ;;  %v6206_v16 = vld [vmem:[#allocation84_spill] sm:$0xff]  ;;  %v6207_v18 = vld [vmem:[#allocation85_spill] sm:$0xff]  ;;  %2796 = vmatpush.msra.mxu0 %v2737_v41 }
 0x35a   : > { %v1897_v1 = vrot.slane %v1828_v7, 7  ;;  %v796_v17 = vadd.f32 %v6207_v18, %v6206_v16  ;;  %v6211_v18 = vld [vmem:[#allocation76_spill] sm:$0xff] }
 0x35b   : > { %v1657_v2 = vadd.f32 %v1588_v37, %v1218_v25  ;;  %1634 = vmatmul.f32.gmra.mxu0 %v6205_v31 }
 0x35c   : > { %v4907_v19 = vsel %vm1879_vm5, %v4685_v43, %v1897_v1  ;;  %v903_v3 = vadd.f32 %v6211_v18, %v796_v17  ;;  %2797 = vmatpush.msra.mxu0 %v2736_v32 }
 0x35d   : > { %v1691_v25 = vadd.f32 %v4650_v60, %v1657_v2  ;;  %2280 = vmatmul.f32.gmra.mxu1 %v4907_v19  ;;  %v1988_v7 = vrot.slane %v4907_v19, 1  ;;  %v2078_v37 = vrot.slane %v4907_v19, 2  ;;  %v6210_v2 = vrot.slane %v6098_v38, 2 }
 0x35e   : > { %v499_v38 = vrot.slane %v4637_v42, 2 }
 0x35f   : > { %v1721_v51 = vmax.f32 %v1691_v25, 0.0  ;;  %v4921_v13 = vsel %vm320_vm0, %v1986_v24, %v1988_v7  ;;  %v4924_v15 = vsel %vm429_vm1, %v2076_v21, %v2078_v37  ;;  %v498_v16 = vsel %vm429_vm1, %v6210_v2, %v497_v57  ;;  %v2735_v24 = vld [vmem:[#allocation7 + $0x300] sm:$0xff] }
 0x360   : > { %6208 = vst [vmem:[#allocation122_spill] sm:$0xff] %v4921_v13  ;;  %v1590_v31 = vpop.f32.mrf.mxu0  ;;  %2359 = vmatmul.f32.gmra.mxu2 %v4921_v13  ;;  %2440 = vmatmul.f32.gmra.mxu3 %v4924_v15  ;;  %v1010_v21 = vadd.f32 %v6212_v8, %v903_v3  ;;  %v1746_v3 = vadd.s32 4, %v4652_v0  ;;  %v500_v18 = vsel %vm429_vm1, %v497_v57, %v499_v38 }
 0x361   : > { %6209 = vst [vmem:[#allocation39_spill] sm:$0xff] %v4924_v15  ;;  %v1829_v41 = vsel %vm4887_vm14, %v1721_v51, 0.0  ;;  %v6213_v31 = vld [vmem:[#allocation87_spill] sm:$0xff]  ;;  %2798 = vmatpush.msra.mxu0 %v2735_v24  ;;  %v1412_v2 = vpop.f32.mrf.mxu2  ;;  %v1519_v17 = vpop.f32.mrf.mxu3  ;;  %v6216_v51 = vld [vmem:[#allocation80_spill] sm:$0xff] }
 0x362   : > { %v1899_v25 = vrot.slane %v1829_v41, 7  ;;  %v799_v13 = vadd.f32 %v6214_v55, %v6213_v31  ;;  %v1117_v56 = vadd.f32 %v4519_v48, %v1010_v21  ;;  %v1487_v55 = vadd.f32 %v4660_v10, %v4658_v6  ;;  %v6217_v6 = vld [vmem:[#allocation52_spill] sm:$0xff]  ;;  %v6218_v24 = vld [vmem:[#allocation107_spill] sm:$0xff]  ;;  %v2160_v31 = vld [vmem:[#allocation7 + $0x48] sm:$0xff] }
 0x363   : > { %1637 = vmatmul.f32.gmra.mxu0 %v498_v16  ;;  %vm1760_vm15 = vcmp.ge.s32.totalorder %v1746_v3, 0  ;;  %vm1770_vm2 = vcmp.lt.s32.totalorder %v1746_v3, 16  ;;  %2497 = vmatpush.msrb.mxu1 %v2160_v31  ;;  %v6224_v3 = vld [vmem:[#allocation54_spill] sm:$0xff] }
 0x364   : > { %v4938_v15 = vsel %vm1879_vm5, %v1897_v1, %v1899_v25  ;;  %v906_v16 = vadd.f32 %v6216_v51, %v799_v13  ;;  %v4960_v41 = vsel %vm1879_vm5, %v1899_v25, %v4685_v43  ;;  %v1224_v10 = vadd.f32 %v6217_v6, %v1117_v56  ;;  %v6219_v56 = vld [vmem:[#allocation25_spill] sm:$0xff]  ;;  %vm4974_vm3 = vmand %vm1760_vm15, %vm1770_vm2 }
 0x365   : > { %2283 = vmatmul.f32.gmra.mxu1 %v4938_v15  ;;  %v1990_v32 = vrot.slane %v4938_v15, 1  ;;  %v2080_v8 = vrot.slane %v4938_v15, 2  ;;  %v1992_v2 = vrot.slane %v4960_v41, 1  ;;  %v2082_v17 = vrot.slane %v4960_v41, 2 }
 0x366   : > { %v1013_v21 = vadd.f32 %v6218_v24, %v906_v16 }
 0x367   : > { %v4949_v1 = vsel %vm320_vm0, %v1988_v7, %v1990_v32  ;;  %v4952_v42 = vsel %vm429_vm1, %v2078_v37, %v2080_v8  ;;  %v2176_v37 = vld [vmem:[#allocation7 + $0xc8] sm:$0xff]  ;;  %v4981_v6 = vsel %vm320_vm0, %v1990_v32, %v1992_v2 }
 0x368   : > { %6215 = vst [vmem:[#allocation96_spill] sm:$0xff] %v4952_v42  ;;  %v1593_v48 = vpop.f32.mrf.mxu0  ;;  %2361 = vmatmul.f32.gmra.mxu2 %v4949_v1  ;;  %2442 = vmatmul.f32.gmra.mxu3 %v4952_v42 }
 0x369   : > { %v1594_v7 = vadd.f32 %v1593_v48, %v1487_v55  ;;  %2578 = vmatpush.msrb.mxu2 %v2176_v37  ;;  %v4966_v57 = vpop.f32.mrf.mxu2  ;;  %v4968_v25 = vpop.f32.mrf.mxu3  ;;  %v1120_v55 = vadd.f32 %v6219_v56, %v1013_v21  ;;  %v1490_v48 = vadd.f32 %v4679_v63, %v4677_v54  ;;  %6222 = vst [vmem:[#allocation65_spill] sm:$0xff] %v4981_v6  ;;  %v2175_v54 = vld [vmem:[#allocation7 + $0xc0] sm:$0xff] }
 0x36a   : > { %v2159_v63 = vld [vmem:[#allocation7 + $0x40] sm:$0xff] }
 0x36b   : > { %v1659_v13 = vadd.f32 %v1594_v7, %v1224_v10  ;;  %1640 = vmatmul.f32.gmra.mxu0 %v500_v18  ;;  %v4984_v10 = vsel %vm429_vm1, %v2080_v8, %v2082_v17  ;;  %v1227_v24 = vadd.f32 %v6224_v3, %v1120_v55  ;;  %2579 = vmatpush.msrb.mxu2 %v2175_v54  ;;  %v6225_v55 = vld [vmem:[#allocation90_spill] sm:$0xff]  ;;  %v6229_v54 = vld [vmem:[#allocation83_spill] sm:$0xff] }
 0x36c   : > { %6223 = vst [vmem:[#allocation45_spill] sm:$0xff] %v4984_v10  ;;  %2498 = vmatpush.msrb.mxu1 %v2159_v63 }
 0x36d   : > { %v1693_v51 = vadd.f32 %v4650_v60, %v1659_v13  ;;  %2286 = vmatmul.f32.gmra.mxu1 %v4960_v41 }
 0x36f   : > { %v1723_v18 = vmax.f32 %v1693_v51, 0.0  ;;  %v6226_v51 = vld [vmem:[#allocation91_spill] sm:$0xff] }
 0x370   : > { %v1596_v7 = vpop.f32.mrf.mxu0  ;;  %2364 = vmatmul.f32.gmra.mxu2 %v4981_v6  ;;  %2445 = vmatmul.f32.gmra.mxu3 %v4984_v10 }
 0x371   : > { %v1831_v21 = vsel %vm4974_vm3, %v1723_v18, 0.0  ;;  %v1597_v37 = vadd.f32 %v1596_v7, %v1490_v48  ;;  %v4996_v8 = vpop.f32.mrf.mxu2  ;;  %v4998_v56 = vpop.f32.mrf.mxu3  ;;  %v805_v18 = vadd.f32 %v6226_v51, %v6225_v55  ;;  %v6230_v51 = vld [vmem:[#allocation110_spill] sm:$0xff] }
 0x372   : > { %v1903_v31 = vrot.slane %v1831_v21, 7 }
 0x373   : > { %v1660_v13 = vadd.f32 %v1597_v37, %v1227_v24  ;;  %3237 = vmatmul.msk.f32.gmra.mxu0 %vm429_vm1, %v499_v38  ;;  %v912_v63 = vadd.f32 %v6229_v54, %v805_v18  ;;  %v1496_v54 = vadd.f32 %v4728_v47, %v4726_v28  ;;  %v6237_v47 = vld [vmem:[#allocation111_spill] sm:$0xff] }
 0x374   : > { %v4994_v32 = vsel %vm1879_vm5, %v4685_v43, %v1903_v31 }
 0x375   : > { %v1694_v48 = vadd.f32 %v4650_v60, %v1660_v13  ;;  %2288 = vmatmul.f32.gmra.mxu1 %v4994_v32  ;;  %v1994_v7 = vrot.slane %v4994_v32, 1  ;;  %v2084_v38 = vrot.slane %v4994_v32, 2  ;;  %v1019_v10 = vadd.f32 %v6230_v51, %v912_v63  ;;  %v6236_v51 = vld [vmem:[#allocation21_spill] sm:$0xff] }
 0x377   : > { %v1724_v3 = vmax.f32 %v1694_v48, 0.0  ;;  %v5007_v24 = vsel %vm320_vm0, %v1992_v2, %v1994_v7  ;;  %v5010_v21 = vsel %vm429_vm1, %v2082_v17, %v2084_v38  ;;  %v6231_v2 = vld [vmem:[#allocation93_spill] sm:$0xff]  ;;  %v6232_v48 = vld [vmem:[#allocation94_spill] sm:$0xff] }
 0x378   : > { %6227 = vst [vmem:[#allocation42_spill] sm:$0xff] %v5007_v24  ;;  %v1599_v37 = vpop.f32.mrf.mxu0  ;;  %2367 = vmatmul.f32.gmra.mxu2 %v5007_v24  ;;  %2448 = vmatmul.f32.gmra.mxu3 %v5010_v21  ;;  %v808_v6 = vadd.f32 %v6232_v48, %v6231_v2  ;;  %v2174_v48 = vld [vmem:[#allocation7 + $0xb8] sm:$0xff] }
 0x379   : > { %6228 = vst [vmem:[#allocation67_spill] sm:$0xff] %v5010_v21  ;;  %v1832_v13 = vsel %vm4974_vm3, %v1724_v3, 0.0  ;;  %v1421_v37 = vpop.f32.mrf.mxu2  ;;  %v1528_v24 = vpop.f32.mrf.mxu3  ;;  %v1126_v21 = vadd.f32 %v4535_v44, %v1019_v10  ;;  %v1747_v3 = vadd.s32 5, %v4652_v0  ;;  %2580 = vmatpush.msrb.mxu2 %v2174_v48 }
 0x37a   : > { %v1905_v55 = vrot.slane %v1832_v13, 7  ;;  %v6235_v24 = vld [vmem:[#allocation86_spill] sm:$0xff] }
 0x37b   : > { %2799 = vmatmul.f32.vlgmr.msra.gmra.mxu0 %v4824_v46  ;;  %v915_v13 = vadd.f32 %v6235_v24, %v808_v6  ;;  %v1233_v2 = vadd.f32 %v6236_v51, %v1126_v21  ;;  %vm1761_vm4 = vcmp.ge.s32.totalorder %v1747_v3, 0  ;;  %vm1771_vm6 = vcmp.lt.s32.totalorder %v1747_v3, 16  ;;  %v6242_v3 = vld [vmem:[#allocation61_spill] sm:$0xff] }
 0x37c   : > { %v5022_v17 = vsel %vm1879_vm5, %v1903_v31, %v1905_v55  ;;  %v5042_v10 = vsel %vm1879_vm5, %v1905_v55, %v4685_v43  ;;  %vm5057_vm7 = vmand %vm1761_vm4, %vm1771_vm6 }
 0x37d   : > { %2291 = vmatmul.f32.gmra.mxu1 %v5022_v17  ;;  %v1996_v16 = vrot.slane %v5022_v17, 1  ;;  %v2086_v18 = vrot.slane %v5022_v17, 2  ;;  %v1998_v6 = vrot.slane %v5042_v10, 1  ;;  %v2088_v24 = vrot.slane %v5042_v10, 2 }
 0x37f   : > { %v5032_v63 = vsel %vm320_vm0, %v1994_v7, %v1996_v16  ;;  %v5035_v31 = vsel %vm429_vm1, %v2084_v38, %v2086_v18  ;;  %v1022_v7 = vadd.f32 %v6237_v47, %v915_v13  ;;  %v2158_v38 = vld [vmem:[#allocation7 + $0x38] sm:$0xff] }
 0x380   : > { %6233 = vst [vmem:[#allocation78_spill] sm:$0xff] %v5032_v63  ;;  %v1602_v44 = vpop.f32.mrf.mxu0  ;;  %2369 = vmatmul.f32.gmra.mxu2 %v5032_v63  ;;  %2450 = vmatmul.f32.gmra.mxu3 %v5035_v31 }
 0x381   : > { %6234 = vst [vmem:[#allocation79_spill] sm:$0xff] %v5035_v31  ;;  %v1603_v28 = vadd.f32 %v1602_v44, %v1496_v54  ;;  %2499 = vmatpush.msrb.mxu1 %v2158_v38  ;;  %v5049_v55 = vpop.f32.mrf.mxu2  ;;  %v5051_v31 = vpop.f32.mrf.mxu3  ;;  %v1129_v21 = vadd.f32 %v4541_v26, %v1022_v7  ;;  %v1499_v44 = vadd.f32 %v4747_v59, %v4745_v22  ;;  %v2173_v22 = vld [vmem:[#allocation7 + $0xb0] sm:$0xff] }
 0x382   : > { %v2157_v59 = vld [vmem:[#allocation7 + $0x30] sm:$0xff]  ;;  %2581 = vmatpush.msrb.mxu2 %v2173_v22 }
 0x383   : > { %v1662_v37 = vadd.f32 %v1603_v28, %v1233_v2  ;;  %2802 = vmatmul.f32.gmra.mxu0 %v4852_v20  ;;  %v5064_v2 = vsel %vm320_vm0, %v1996_v16, %v1998_v6  ;;  %v5067_v28 = vsel %vm429_vm1, %v2086_v18, %v2088_v24  ;;  %v1236_v47 = vadd.f32 %v6242_v3, %v1129_v21  ;;  %v6243_v21 = vld [vmem:[#allocation97_spill] sm:$0xff]  ;;  %v6244_v3 = vld [vmem:[#allocation118_spill] sm:$0xff] }
 0x384   : > { %6240 = vst [vmem:[#allocation125_spill] sm:$0xff] %v5064_v2  ;;  %2500 = vmatpush.msrb.mxu1 %v2157_v59 }
 0x385   : > { %v1696_v54 = vadd.f32 %v4650_v60, %v1662_v37  ;;  %2294 = vmatmul.f32.gmra.mxu1 %v5042_v10  ;;  %6241 = vst [vmem:[#allocation100_spill] sm:$0xff] %v5067_v28 }
 0x387   : > { %v1726_v51 = vmax.f32 %v1696_v54, 0.0 }
 0x388   : > { %v1605_v26 = vpop.f32.mrf.mxu0  ;;  %2372 = vmatmul.f32.gmra.mxu2 %v5064_v2  ;;  %2453 = vmatmul.f32.gmra.mxu3 %v5067_v28  ;;  %v6248_v2 = vld [vmem:[#allocation114_spill] sm:$0xff] }
 0x389   : > { %v1834_v7 = vsel %vm5057_vm7, %v1726_v51, 0.0  ;;  %v1606_v48 = vadd.f32 %v1605_v26, %v1499_v44  ;;  %v5079_v18 = vpop.f32.mrf.mxu2  ;;  %v5081_v54 = vpop.f32.mrf.mxu3  ;;  %v814_v51 = vadd.f32 %v6244_v3, %v6243_v21  ;;  %v6247_v21 = vld [vmem:[#allocation89_spill] sm:$0xff] }
 0x38a   : > { %v1909_v38 = vrot.slane %v1834_v7, 7 }
 0x38b   : > { %v1663_v37 = vadd.f32 %v1606_v48, %v1236_v47  ;;  %2805 = vmatmul.f32.gmra.mxu0 %v4872_v9 }
 0x38c   : > { %v5077_v16 = vsel %vm1879_vm5, %v4685_v43, %v1909_v38 }
 0x38d   : > { %v1697_v44 = vadd.f32 %v4650_v60, %v1663_v37  ;;  %2296 = vmatmul.f32.gmra.mxu1 %v5077_v16  ;;  %v2000_v26 = vrot.slane %v5077_v16, 1  ;;  %v2090_v47 = vrot.slane %v5077_v16, 2  ;;  %v921_v37 = vadd.f32 %v6247_v21, %v814_v51 }
 0x38f   : > { %v1727_v7 = vmax.f32 %v1697_v44, 0.0  ;;  %v5090_v48 = vsel %vm320_vm0, %v1998_v6, %v2000_v26  ;;  %v5093_v22 = vsel %vm429_vm1, %v2088_v24, %v2090_v47  ;;  %v1028_v63 = vadd.f32 %v6248_v2, %v921_v37  ;;  %v6249_v6 = vld [vmem:[#allocation99_spill] sm:$0xff]  ;;  %v6250_v44 = vld [vmem:[#allocation120_spill] sm:$0xff] }
 0x390   : > { %6245 = vst [vmem:[#allocation71_spill] sm:$0xff] %v5090_v48  ;;  %v1608_v59 = vpop.f32.mrf.mxu0  ;;  %2375 = vmatmul.f32.gmra.mxu2 %v5090_v48  ;;  %2456 = vmatmul.f32.gmra.mxu3 %v5093_v22  ;;  %v817_v42 = vadd.f32 %v6250_v44, %v6249_v6  ;;  %v1748_v2 = vadd.s32 6, %v4652_v0  ;;  %v2172_v6 = vld [vmem:[#allocation7 + $0xa8] sm:$0xff] }
 0x391   : > { %6246 = vst [vmem:[#allocation81_spill] sm:$0xff] %v5093_v22  ;;  %v1835_v3 = vsel %vm5057_vm7, %v1727_v7, 0.0  ;;  %v1430_v59 = vpop.f32.mrf.mxu2  ;;  %v1537_v48 = vpop.f32.mrf.mxu3  ;;  %v1135_v22 = vadd.f32 %v4551_v58, %v1028_v63  ;;  %v1505_v7 = vadd.f32 %v4798_v30, %v4796_v34  ;;  %v6252_v30 = vld [vmem:[#allocation115_spill] sm:$0xff]  ;;  %2582 = vmatpush.msrb.mxu2 %v2172_v6  ;;  %v6256_v6 = vld [vmem:[#allocation53_spill] sm:$0xff]  ;;  %vm3239_vm7 = vmneg %vm1879_vm5 }
 0x392   : > { %v1911_v28 = vrot.slane %v1835_v3, 7  ;;  %v6251_v48 = vld [vmem:[#allocation92_spill] sm:$0xff]  ;;  %vm1762_vm8 = vcmp.ge.s32.totalorder %v1748_v2, 0  ;;  %vm1772_vm9 = vcmp.lt.s32.totalorder %v1748_v2, 16  ;;  %v1508_v2 = vadd.f32 %v4828_v27, %v4826_v11  ;;  %v2171_v11 = vld [vmem:[#allocation7 + $0xa0] sm:$0xff] }
 0x393   : > { %2807 = vmatmul.f32.gmra.mxu0 %v4907_v19  ;;  %v924_v37 = vadd.f32 %v6251_v48, %v817_v42  ;;  %v1242_v3 = vadd.f32 %v4531_v14, %v1135_v22  ;;  %vm5135_vm10 = vmand %vm1762_vm8, %vm1772_vm9  ;;  %v2155_v27 = vld [vmem:[#allocation7 + $0x20] sm:$0xff]  ;;  %2583 = vmatpush.msrb.mxu2 %v2171_v11 }
 0x394   : > { %v5105_v24 = vsel %vm1879_vm5, %v1909_v38, %v1911_v28  ;;  %v5125_v63 = vsel %vm1879_vm5, %v1911_v28, %v4685_v43 }
 0x395   : > { %2299 = vmatmul.f32.gmra.mxu1 %v5105_v24  ;;  %v2002_v13 = vrot.slane %v5105_v24, 1  ;;  %v2092_v51 = vrot.slane %v5105_v24, 2  ;;  %v2004_v42 = vrot.slane %v5125_v63, 1  ;;  %v2094_v59 = vrot.slane %v5125_v63, 2 }
 0x397   : > { %v5115_v21 = vsel %vm320_vm0, %v2000_v26, %v2002_v13  ;;  %v5118_v38 = vsel %vm429_vm1, %v2090_v47, %v2092_v51  ;;  %v1031_v26 = vadd.f32 %v6252_v30, %v924_v37  ;;  %v2156_v47 = vld [vmem:[#allocation7 + $0x28] sm:$0xff]  ;;  %v5142_v48 = vsel %vm320_vm0, %v2002_v13, %v2004_v42 }
 0x398   : > { %v1611_v58 = vpop.f32.mrf.mxu0  ;;  %2377 = vmatmul.f32.gmra.mxu2 %v5115_v21  ;;  %2458 = vmatmul.f32.gmra.mxu3 %v5118_v38  ;;  %v5145_v37 = vsel %vm429_vm1, %v2092_v51, %v2094_v59  ;;  %v6255_v51 = vld [vmem:[#allocation103_spill] sm:$0xff] }
 0x399   : > { %v1612_v34 = vadd.f32 %v1611_v58, %v1505_v7  ;;  %2501 = vmatpush.msrb.mxu1 %v2156_v47  ;;  %v1138_v28 = vadd.f32 %v4559_v53, %v1031_v26  ;;  %v823_v47 = vadd.f32 %v6256_v6, %v6255_v51  ;;  %v6262_v51 = vld [vmem:[#allocation56_spill] sm:$0xff] }
 0x39b   : > { %v1665_v44 = vadd.f32 %v1612_v34, %v1242_v3  ;;  %2810 = vmatmul.f32.gmra.mxu0 %v4938_v15  ;;  %v1245_v53 = vadd.f32 %v4539_v62, %v1138_v28  ;;  %2502 = vmatpush.msrb.mxu1 %v2155_v27  ;;  %v6260_v27 = vld [vmem:[#allocation116_spill] sm:$0xff] }
 0x39d   : > { %v1699_v14 = vadd.f32 %v4650_v60, %v1665_v44  ;;  %2302 = vmatmul.f32.gmra.mxu1 %v5125_v63 }
 0x39f   : > { %v1729_v7 = vmax.f32 %v1699_v14, 0.0 }
 0x3a0   : > { %v1614_v58 = vpop.f32.mrf.mxu0  ;;  %2380 = vmatmul.f32.gmra.mxu2 %v5142_v48  ;;  %2461 = vmatmul.f32.gmra.mxu3 %v5145_v37 }
 0x3a1   : > { %v1837_v3 = vsel %vm5135_vm10, %v1729_v7, 0.0  ;;  %v1615_v34 = vadd.f32 %v1614_v58, %v1508_v2 }
 0x3a2   : > { %v1915_v30 = vrot.slane %v1837_v3, 7 }
 0x3a3   : > { %v1666_v26 = vadd.f32 %v1615_v34, %v1245_v53  ;;  %2813 = vmatmul.f32.gmra.mxu0 %v4960_v41  ;;  %v6259_v53 = vld [vmem:[#allocation95_spill] sm:$0xff] }
 0x3a4   : > { %v5155_v13 = vsel %vm1879_vm5, %v4685_v43, %v1915_v30 }
 0x3a5   : > { %v1700_v62 = vadd.f32 %v4650_v60, %v1666_v26  ;;  %2304 = vmatmul.f32.gmra.mxu1 %v5155_v13  ;;  %v2006_v44 = vrot.slane %v5155_v13, 1  ;;  %v2096_v28 = vrot.slane %v5155_v13, 2  ;;  %v930_v60 = vadd.f32 %v6259_v53, %v823_v47 }
 0x3a7   : > { %v1730_v14 = vmax.f32 %v1700_v62, 0.0  ;;  %v5164_v2 = vsel %vm320_vm0, %v2004_v42, %v2006_v44  ;;  %v5167_v7 = vsel %vm429_vm1, %v2094_v59, %v2096_v28  ;;  %v1037_v26 = vadd.f32 %v6260_v27, %v930_v60  ;;  %v6261_v42 = vld [vmem:[#allocation105_spill] sm:$0xff] }
 0x3a8   : > { %6257 = vst [vmem:[#allocation82_spill] sm:$0xff] %v5164_v2  ;;  %v1617_v58 = vpop.f32.mrf.mxu0  ;;  %2383 = vmatmul.f32.gmra.mxu2 %v5164_v2  ;;  %2464 = vmatmul.f32.gmra.mxu3 %v5167_v7  ;;  %v826_v59 = vadd.f32 %v6262_v51, %v6261_v42 }
 0x3a9   : > { %6258 = vst [vmem:[#allocation49_spill] sm:$0xff] %v5167_v7  ;;  %v1838_v3 = vsel %vm5135_vm10, %v1730_v14, 0.0  ;;  %v1144_v62 = vadd.f32 %v4569_v4, %v1037_v26  ;;  %v1749_v14 = vadd.s32 7, %v4652_v0  ;;  %v1514_v58 = vadd.f32 %v4881_v40, %v4879_v23  ;;  %v6265_v4 = vld [vmem:[#allocation98_spill] sm:$0xff] }
 0x3aa   : > { %v1917_v34 = vrot.slane %v1838_v3, 7  ;;  %v2265_v11 = vpop.f32.mrf.mxu1  ;;  %v2154_v3 = vld [vmem:[#allocation7 + $0x18] sm:$0xff]  ;;  %v933_v27 = vadd.f32 %v6265_v4, %v826_v59 }
 0x3ab   : > { %2815 = vmatmul.f32.gmra.mxu0 %v4994_v32  ;;  %v1251_v23 = vadd.f32 %v4549_v35, %v1144_v62  ;;  %2503 = vmatpush.msrb.mxu1 %v2154_v3  ;;  %vm1763_vm11 = vcmp.ge.s32.totalorder %v1749_v14, 0  ;;  %vm1773_vm12 = vcmp.lt.s32.totalorder %v1749_v14, 16  ;;  %v5212_v35 = vld [vmem:[%s5812_s2] ss:$0 sm:$0xff]  ;;  %v1517_v14 = vadd.f32 %v4912_v5, %v4910_v61 }
 0x3ac   : > { %v5179_v6 = vsel %vm1879_vm5, %v1915_v30, %v1917_v34  ;;  %v2170_v30 = vld [vmem:[#allocation7 + $0x98] sm:$0xff]  ;;  %v5199_v42 = vsel %vm1879_vm5, %v1917_v34, %v4685_v43  ;;  %v6267_v34 = vld [vmem:[#allocation130_spill] sm:$0xff]  ;;  %vm5216_vm13 = vmand %vm1763_vm11, %vm1773_vm12 }
 0x3ad   : > { %2307 = vmatmul.f32.gmra.mxu1 %v5179_v6  ;;  %v2008_v47 = vrot.slane %v5179_v6, 1  ;;  %v2098_v22 = vrot.slane %v5179_v6, 2  ;;  %2584 = vmatpush.msrb.mxu2 %v2170_v30  ;;  %v2010_v4 = vrot.slane %v5199_v42, 1 }
 0x3af   : > { %v5189_v53 = vsel %vm320_vm0, %v2006_v44, %v2008_v47  ;;  %v5192_v60 = vsel %vm429_vm1, %v2096_v28, %v2098_v22  ;;  %v6266_v44 = vld [vmem:[#allocation117_spill] sm:$0xff]  ;;  %v5223_v3 = vsel %vm320_vm0, %v2008_v47, %v2010_v4 }
 0x3b0   : > { %6263 = vst [vmem:[#allocation70_spill] sm:$0xff] %v5189_v53  ;;  %v1620_v26 = vpop.f32.mrf.mxu0  ;;  %2385 = vmatmul.f32.gmra.mxu2 %v5189_v53  ;;  %2466 = vmatmul.f32.gmra.mxu3 %v5192_v60  ;;  %v1040_v28 = vadd.f32 %v6266_v44, %v933_v27  ;;  %v2198_v44 = vld [vmem:[#allocation7 + $0x178] sm:$0xff] }
 0x3b1   : > { %6264 = vst [vmem:[#allocation41_spill] sm:$0xff] %v5192_v60  ;;  %v1621_v40 = vadd.f32 %v1620_v26, %v1514_v58  ;;  %v2100_v60 = vrot.slane %v5199_v42, 2  ;;  %v2169_v26 = vld [vmem:[#allocation7 + $0x90] sm:$0xff]  ;;  %2653 = vmatpush.msra.mxu3 %v2198_v44  ;;  %v2196_v44 = vld [vmem:[#allocation7 + $0x168] sm:$0xff] }
 0x3b2   : > { %v5203_v51 = vpop.f32.mrf.mxu1  ;;  %v1147_v53 = vadd.f32 %v6267_v34, %v1040_v28  ;;  %6270 = vst [vmem:[#allocation102_spill] sm:$0xff] %v5223_v3  ;;  %v6272_v28 = vld [vmem:[#allocation127_spill] sm:$0xff]  ;;  %2585 = vmatpush.msrb.mxu2 %v2169_v26 }
 0x3b3   : > { %v1668_v59 = vadd.f32 %v1621_v40, %v1251_v23  ;;  %2818 = vmatmul.f32.gmra.mxu0 %v5022_v17  ;;  %v5226_v27 = vsel %vm429_vm1, %v2098_v22, %v2100_v60  ;;  %v2153_v40 = vld [vmem:[#allocation7 + $0x10] sm:$0xff] }
 0x3b4   : > { %6271 = vst [vmem:[#allocation75_spill] sm:$0xff] %v5226_v27  ;;  %2504 = vmatpush.msrb.mxu1 %v2153_v40 }
 0x3b5   : > { %v1702_v62 = vadd.f32 %v5212_v35, %v1668_v59  ;;  %2310 = vmatmul.f32.gmra.mxu1 %v5199_v42  ;;  %v1254_v59 = vadd.f32 %v6272_v28, %v1147_v53  ;;  %v6273_v53 = vld [vmem:[#allocation108_spill] sm:$0xff] }
 0x3b7   : > { %v1732_v30 = vmax.f32 %v1702_v62, 0.0 }
 0x3b8   : > { %v1623_v23 = vpop.f32.mrf.mxu0  ;;  %2388 = vmatmul.f32.gmra.mxu2 %v5223_v3  ;;  %2469 = vmatmul.f32.gmra.mxu3 %v5226_v27  ;;  %v2197_v3 = vld [vmem:[#allocation7 + $0x170] sm:$0xff] }
 0x3b9   : > { %v1840_v61 = vsel %vm5216_vm13, %v1732_v30, 0.0  ;;  %v1624_v5 = vadd.f32 %v1623_v23, %v1517_v14  ;;  %2654 = vmatpush.msra.mxu3 %v2197_v3  ;;  %v6274_v30 = vld [vmem:[#allocation64_spill] sm:$0xff] }
 0x3ba   : > { %v1921_v47 = vrot.slane %v1840_v61, 7  ;;  %v2271_v34 = vpop.f32.mrf.mxu1  ;;  %v832_v14 = vadd.f32 %v6274_v30, %v6273_v53 }
 0x3bb   : > { %v1669_v22 = vadd.f32 %v1624_v5, %v1254_v59  ;;  %v2346_v62 = vpop.f32.mrf.mxu2  ;;  %v2427_v7 = vpop.f32.mrf.mxu3  ;;  %2821 = vmatmul.f32.gmra.mxu0 %v5042_v10  ;;  %2655 = vmatpush.msra.mxu3 %v2196_v44  ;;  %v6278_v34 = vld [vmem:[#allocation101_spill] sm:$0xff]  ;;  %v2193_v44 = vld [vmem:[#allocation7 + $0x150] sm:$0xff] }
 0x3bc   : > { %v2347_v27 = vadd.f32 %v2346_v62, %v2265_v11  ;;  %v5236_v2 = vsel %vm1879_vm5, %v4685_v43, %v1921_v47  ;;  %v2195_v11 = vld [vmem:[#allocation7 + $0x160] sm:$0xff] }
 0x3bd   : > { %v1703_v26 = vadd.f32 %v5212_v35, %v1669_v22  ;;  %2312 = vmatmul.f32.gmra.mxu1 %v5236_v2  ;;  %v2012_v23 = vrot.slane %v5236_v2, 1  ;;  %v2102_v40 = vrot.slane %v5236_v2, 2  ;;  %v939_v22 = vadd.f32 %v6278_v34, %v832_v14  ;;  %2656 = vmatpush.msra.mxu3 %v2195_v11  ;;  %v6282_v11 = vld [vmem:[#allocation132_spill] sm:$0xff] }
 0x3be   : > { %v5244_v28 = vadd.f32 %v2427_v7, %v2347_v27  ;;  %v2194_v27 = vld [vmem:[#allocation7 + $0x158] sm:$0xff] }
 0x3bf   : > { %v1733_v59 = vmax.f32 %v1703_v26, 0.0  ;;  %v5247_v61 = vsel %vm320_vm0, %v2010_v4, %v2012_v23  ;;  %v5250_v3 = vsel %vm429_vm1, %v2100_v60, %v2102_v40  ;;  %v6279_v4 = vld [vmem:[#allocation119_spill] sm:$0xff]  ;;  %2657 = vmatpush.msra.mxu3 %v2194_v27 }
 0x3c0   : > { %6275 = vst [vmem:[#allocation57_spill] sm:$0xff] %v5244_v28  ;;  %v1626_v5 = vpop.f32.mrf.mxu0  ;;  %2391 = vmatmul.f32.gmra.mxu2 %v5247_v61  ;;  %2472 = vmatmul.f32.gmra.mxu3 %v5250_v3  ;;  %v1046_v30 = vadd.f32 %v6279_v4, %v939_v22  ;;  %v1750_v4 = vadd.s32 8, %v4652_v0 }
 0x3c1   : > { %6276 = vst [vmem:[#allocation43_spill] sm:$0xff] %v5247_v61  ;;  %v1841_v7 = vsel %vm5216_vm13, %v1733_v59, 0.0  ;;  %v6280_v5 = vld [vmem:[#allocation109_spill] sm:$0xff]  ;;  %2658 = vmatpush.msra.mxu3 %v2193_v44 }
 0x3c2   : > { %6277 = vst [vmem:[#allocation34_spill] sm:$0xff] %v5250_v3  ;;  %v1923_v62 = vrot.slane %v1841_v7, 7  ;;  %v5257_v53 = vpop.f32.mrf.mxu1  ;;  %v6281_v3 = vld [vmem:[#allocation66_spill] sm:$0xff]  ;;  %v1153_v59 = vadd.f32 %v6282_v11, %v1046_v30  ;;  %v6286_v11 = vld [vmem:[#allocation104_spill] sm:$0xff]  ;;  %vm1764_vm14 = vcmp.ge.s32.totalorder %v1750_v4, 0  ;;  %vm1774_vm15 = vcmp.lt.s32.totalorder %v1750_v4, 16 }
 0x3c3   : > { %v2349_v26 = vpop.f32.mrf.mxu2  ;;  %v2430_v60 = vpop.f32.mrf.mxu3  ;;  %2823 = vmatmul.f32.gmra.mxu0 %v5077_v16  ;;  %v835_v61 = vadd.f32 %v6281_v3, %v6280_v5  ;;  %v2192_v7 = vld [vmem:[#allocation7 + $0x148] sm:$0xff]  ;;  %v2191_v5 = vld [vmem:[#allocation7 + $0x140] sm:$0xff]  ;;  %vm5300_vm2 = vmand %vm1764_vm14, %vm1774_vm15 }
 0x3c4   : > { %v2350_v14 = vadd.f32 %v2349_v26, %v5203_v51  ;;  %v5265_v58 = vsel %vm1879_vm5, %v1921_v47, %v1923_v62  ;;  %v1523_v51 = vadd.f32 %v4968_v25, %v4966_v57  ;;  %v2168_v30 = vld [vmem:[#allocation7 + $0x88] sm:$0xff]  ;;  %2659 = vmatpush.msra.mxu3 %v2192_v7  ;;  %v5287_v57 = vsel %vm1879_vm5, %v1923_v62, %v4685_v43  ;;  %v6287_v25 = vld [vmem:[#allocation128_spill] sm:$0xff]  ;;  %v6294_v4 = vld [vmem:[#allocation129_spill] sm:$0xff] }
 0x3c5   : > { %2315 = vmatmul.f32.gmra.mxu1 %v5265_v58  ;;  %v2014_v34 = vrot.slane %v5265_v58, 1  ;;  %v2104_v22 = vrot.slane %v5265_v58, 2  ;;  %v2152_v26 = vld [vmem:[#allocation7 + $0x8] sm:$0xff]  ;;  %v942_v44 = vadd.f32 %v6286_v11, %v835_v61  ;;  %2586 = vmatpush.msrb.mxu2 %v2168_v30  ;;  %v2016_v62 = vrot.slane %v5287_v57, 1 }
 0x3c6   : > { %v5271_v27 = vadd.f32 %v2430_v60, %v2350_v14  ;;  %2505 = vmatpush.msrb.mxu1 %v2152_v26  ;;  %v6288_v14 = vld [vmem:[#allocation121_spill] sm:$0xff]  ;;  %2660 = vmatpush.msra.mxu3 %v2191_v5 }
 0x3c7   : > { %v5277_v47 = vsel %vm320_vm0, %v2012_v23, %v2014_v34  ;;  %v5280_v3 = vsel %vm429_vm1, %v2102_v40, %v2104_v22  ;;  %v1260_v23 = vadd.f32 %v6287_v25, %v1153_v59  ;;  %v2190_v40 = vld [vmem:[#allocation7 + $0x138] sm:$0xff]  ;;  %v1049_v7 = vadd.f32 %v6288_v14, %v942_v44  ;;  %v2151_v59 = vld [vmem:[#allocation7] sm:$0xff] }
 0x3c8   : > { %6283 = vst [vmem:[#allocation84_spill] sm:$0xff] %v5271_v27  ;;  %v1629_v28 = vpop.f32.mrf.mxu0  ;;  %2393 = vmatmul.f32.gmra.mxu2 %v5277_v47  ;;  %2474 = vmatmul.f32.gmra.mxu3 %v5280_v3  ;;  %v1526_v44 = vadd.f32 %v4998_v56, %v4996_v8  ;;  %v2187_v8 = vld [vmem:[#allocation7 + $0x120] sm:$0xff] }
 0x3c9   : > { %6284 = vst [vmem:[#allocation85_spill] sm:$0xff] %v5277_v47  ;;  %v1630_v60 = vadd.f32 %v1629_v28, %v1523_v51  ;;  %v2189_v28 = vld [vmem:[#allocation7 + $0x130] sm:$0xff]  ;;  %2661 = vmatpush.msra.mxu3 %v2190_v40  ;;  %v6289_v51 = vld [vmem:[#allocation134_spill] sm:$0xff]  ;;  %2506 = vmatpush.msrb.mxu1 %v2151_v59 }
 0x3ca   : > { %6285 = vst [vmem:[#allocation76_spill] sm:$0xff] %v5280_v3  ;;  %v5291_v27 = vpop.f32.mrf.mxu1  ;;  %v2106_v3 = vrot.slane %v5287_v57, 2  ;;  %v1156_v30 = vadd.f32 %v6289_v51, %v1049_v7  ;;  %v2186_v51 = vld [vmem:[#allocation7 + $0x118] sm:$0xff] }
 0x3cb   : > { %v1671_v61 = vadd.f32 %v1630_v60, %v1260_v23  ;;  %v2352_v11 = vpop.f32.mrf.mxu2  ;;  %v2433_v47 = vpop.f32.mrf.mxu3  ;;  %2826 = vmatmul.f32.gmra.mxu0 %v5105_v24  ;;  %2662 = vmatpush.msra.mxu3 %v2189_v28  ;;  %v5307_v23 = vsel %vm320_vm0, %v2014_v34, %v2016_v62  ;;  %v2167_v34 = vld [vmem:[#allocation7 + $0x80] sm:$0xff] }
 0x3cc   : > { %v2188_v47 = vld [vmem:[#allocation7 + $0x128] sm:$0xff]  ;;  %6292 = vst [vmem:[#allocation106_spill] sm:$0xff] %v5307_v23  ;;  %v5310_v60 = vsel %vm429_vm1, %v2104_v22, %v2106_v3  ;;  %v1263_v14 = vadd.f32 %v6294_v4, %v1156_v30  ;;  %2587 = vmatpush.msrb.mxu2 %v2167_v34 }
 0x3cd   : > { %v1705_v26 = vadd.f32 %v5212_v35, %v1671_v61  ;;  %2318 = vmatmul.f32.gmra.mxu1 %v5287_v57  ;;  %6293 = vst [vmem:[#allocation87_spill] sm:$0xff] %v5310_v60  ;;  %2663 = vmatpush.msra.mxu3 %v2188_v47  ;;  %v6296_v47 = vld [vmem:[#allocation74_spill] sm:$0xff] }
 0x3cf   : > { %v1735_v25 = vmax.f32 %v1705_v26, 0.0  ;;  %2664 = vmatpush.msra.mxu3 %v2187_v8 }
 0x3d0   : > { %v1632_v40 = vpop.f32.mrf.mxu0  ;;  %2396 = vmatmul.f32.gmra.mxu2 %v5307_v23  ;;  %2477 = vmatmul.f32.gmra.mxu3 %v5310_v60  ;;  %v6302_v23 = vld [vmem:[#allocation77_spill] sm:$0xff] }
 0x3d1   : > { %v1633_v7 = vadd.f32 %v1632_v40, %v1526_v44  ;;  %v1843_v61 = vsel %vm5300_vm2, %v1735_v25, 0.0  ;;  %v6295_v44 = vld [vmem:[#allocation112_spill] sm:$0xff]  ;;  %2665 = vmatpush.msra.mxu3 %v2186_v51 }
 0x3d2   : > { %v2279_v56 = vpop.f32.mrf.mxu1  ;;  %v1927_v11 = vrot.slane %v1843_v61, 7  ;;  %v841_v25 = vadd.f32 %v6296_v47, %v6295_v44  ;;  %v6299_v44 = vld [vmem:[#allocation30_spill] sm:$0xff] }
 0x3d3   : > { %v1672_v28 = vadd.f32 %v1633_v7, %v1263_v14  ;;  %v2354_v59 = vpop.f32.mrf.mxu2  ;;  %v2435_v22 = vpop.f32.mrf.mxu3  ;;  %2829 = vmatmul.f32.gmra.mxu0 %v5125_v63 }
 0x3d4   : > { %v2355_v26 = vadd.f32 %v2354_v59, %v5257_v53  ;;  %v5321_v30 = vsel %vm1879_vm5, %v4685_v43, %v1927_v11  ;;  %v2185_v53 = vld [vmem:[#allocation7 + $0x110] sm:$0xff]  ;;  %v2782_v59 = vld [vmem:[#allocation7 + $0x478] sm:$0xff]  ;;  %v948_v47 = vadd.f32 %v6299_v44, %v841_v25 }
 0x3d5   : > { %v1706_v40 = vadd.f32 %v5212_v35, %v1672_v28  ;;  %2320 = vmatmul.f32.gmra.mxu1 %v5321_v30  ;;  %v2018_v4 = vrot.slane %v5321_v30, 1  ;;  %v2108_v14 = vrot.slane %v5321_v30, 2  ;;  %v2184_v28 = vld [vmem:[#allocation7 + $0x108] sm:$0xff]  ;;  %2666 = vmatpush.msra.mxu3 %v2185_v53 }
 0x3d6   : > { %v5329_v7 = vadd.f32 %v2435_v22, %v2355_v26  ;;  %2945 = vmatpush.msra.mxu2 %v2782_v59  ;;  %v2183_v26 = vld [vmem:[#allocation7 + $0x100] sm:$0xff] }
 0x3d7   : > { %v1736_v61 = vmax.f32 %v1706_v40, 0.0  ;;  %v5332_v56 = vsel %vm320_vm0, %v2016_v62, %v2018_v4  ;;  %v5335_v8 = vsel %vm429_vm1, %v2106_v3, %v2108_v14  ;;  %v6300_v3 = vld [vmem:[#allocation123_spill] sm:$0xff]  ;;  %2667 = vmatpush.msra.mxu3 %v2184_v28 }
 0x3d8   : > { %6297 = vst [vmem:[#allocation88_spill] sm:$0xff] %v5332_v56  ;;  %v1635_v34 = vpop.f32.mrf.mxu0  ;;  %2399 = vmatmul.f32.gmra.mxu2 %v5332_v56  ;;  %2480 = vmatmul.f32.gmra.mxu3 %v5335_v8  ;;  %v1055_v40 = vadd.f32 %v6300_v3, %v948_v47  ;;  %v6301_v56 = vld [vmem:[#allocation113_spill] sm:$0xff] }
 0x3d9   : > { %6298 = vst [vmem:[#allocation80_spill] sm:$0xff] %v5335_v8  ;;  %v1844_v22 = vsel %vm5300_vm2, %v1736_v61, 0.0  ;;  %v2766_v8 = vld [vmem:[#allocation7 + $0x3f8] sm:$0xff]  ;;  %v844_v25 = vadd.f32 %v6302_v23, %v6301_v56  ;;  %2668 = vmatpush.msra.mxu3 %v2183_v26 }
 0x3da   : > { %v5342_v51 = vpop.f32.mrf.mxu1  ;;  %v1929_v62 = vrot.slane %v1844_v22, 7  ;;  %2864 = vmatpush.msra.mxu1 %v2766_v8  ;;  %v6303_v61 = vld [vmem:[#allocation32_spill] sm:$0xff]  ;;  %v1751_v22 = vadd.s32 9, %v4652_v0  ;;  %v6306_v8 = vld [vmem:[#allocation126_spill] sm:$0xff] }
 0x3db   : > { %v2357_v34 = vpop.f32.mrf.mxu2  ;;  %v2438_v60 = vpop.f32.mrf.mxu3  ;;  %2831 = vmatmul.f32.gmra.mxu0 %v5155_v13  ;;  %v1162_v59 = vadd.f32 %v6303_v61, %v1055_v40  ;;  %v3429_v23 = vld [vmem:[#allocation7 + $0x378] sm:$0xff]  ;;  %v951_v3 = vadd.f32 %v6306_v8, %v844_v25  ;;  %v3431_v8 = vld [vmem:[#allocation7 + $0x368] sm:$0xff] }
 0x3dc   : > { %v2358_v5 = vadd.f32 %v2357_v34, %v5291_v27  ;;  %v5350_v53 = vsel %vm1879_vm5, %v1927_v11, %v1929_v62  ;;  %3284 = vmatpush.msrb.mxu3 %v3429_v23  ;;  %v1532_v27 = vadd.f32 %v5051_v31, %v5049_v55  ;;  %v5372_v0 = vsel %vm1879_vm5, %v1929_v62, %v4685_v43  ;;  %v3430_v55 = vld [vmem:[#allocation7 + $0x370] sm:$0xff] }
 0x3dd   : > { %2323 = vmatmul.f32.gmra.mxu1 %v5350_v53  ;;  %v2020_v44 = vrot.slane %v5350_v53, 1  ;;  %v2110_v47 = vrot.slane %v5350_v53, 2  ;;  %vm1765_vm3 = vcmp.ge.s32.totalorder %v1751_v22, 0  ;;  %vm1775_vm4 = vcmp.lt.s32.totalorder %v1751_v22, 16  ;;  %v2765_v22 = vld [vmem:[#allocation7 + $0x3f0] sm:$0xff] }
 0x3de   : > { %v5356_v28 = vadd.f32 %v2438_v60, %v2358_v5  ;;  %v6307_v60 = vld [vmem:[#allocation131_spill] sm:$0xff]  ;;  %3285 = vmatpush.msrb.mxu3 %v3430_v55  ;;  %v2022_v23 = vrot.slane %v5372_v0, 1  ;;  %v2112_v62 = vrot.slane %v5372_v0, 2  ;;  %vm5385_vm6 = vmand %vm1765_vm3, %vm1775_vm4  ;;  %2865 = vmatpush.msra.mxu1 %v2765_v22 }
 0x3df   : > { %v5362_v11 = vsel %vm320_vm0, %v2018_v4, %v2020_v44  ;;  %v5365_v56 = vsel %vm429_vm1, %v2108_v14, %v2110_v47  ;;  %v1269_v26 = vadd.f32 %v6307_v60, %v1162_v59  ;;  %v6308_v4 = vld [vmem:[#allocation124_spill] sm:$0xff]  ;;  %v6309_v59 = vld [vmem:[#allocation33_spill] sm:$0xff] }
 0x3e0   : > { %6304 = vst [vmem:[#allocation52_spill] sm:$0xff] %v5362_v11  ;;  %v1638_v40 = vpop.f32.mrf.mxu0  ;;  %2401 = vmatmul.f32.gmra.mxu2 %v5362_v11  ;;  %2482 = vmatmul.f32.gmra.mxu3 %v5365_v56  ;;  %v1058_v34 = vadd.f32 %v6308_v4, %v951_v3  ;;  %v3432_v3 = vld [vmem:[#allocation7 + $0x360] sm:$0xff]  ;;  %v5392_v4 = vsel %vm320_vm0, %v2020_v44, %v2022_v23 }
 0x3e1   : > { %6305 = vst [vmem:[#allocation107_spill] sm:$0xff] %v5365_v56  ;;  %v1639_v31 = vadd.f32 %v1638_v40, %v1532_v27  ;;  %3286 = vmatpush.msrb.mxu3 %v3431_v8  ;;  %v2754_v56 = vld [vmem:[#allocation7 + $0x398] sm:$0xff] }
 0x3e2   : > { %v5376_v14 = vpop.f32.mrf.mxu1  ;;  %v1165_v27 = vadd.f32 %v6309_v59, %v1058_v34  ;;  %6312 = vst [vmem:[#allocation25_spill] sm:$0xff] %v5392_v4  ;;  %v5395_v34 = vsel %vm429_vm1, %v2110_v47, %v2112_v62 }
 0x3e3   : > { %v1674_v25 = vadd.f32 %v1639_v31, %v1269_v26  ;;  %v2360_v5 = vpop.f32.mrf.mxu2  ;;  %v2441_v61 = vpop.f32.mrf.mxu3  ;;  %2834 = vmatmul.f32.gmra.mxu0 %v5179_v6  ;;  %3287 = vmatpush.msrb.mxu3 %v3432_v3  ;;  %v2781_v26 = vld [vmem:[#allocation7 + $0x470] sm:$0xff]  ;;  %v1535_v31 = vadd.f32 %v5081_v54, %v5079_v18  ;;  %6313 = vst [vmem:[#allocation54_spill] sm:$0xff] %v5395_v34 }
 0x3e4   : > { %2946 = vmatpush.msra.mxu2 %v2781_v26  ;;  %v6314_v61 = vld [vmem:[#allocation133_spill] sm:$0xff]  ;;  %v3434_v54 = vld [vmem:[#allocation7 + $0x350] sm:$0xff] }
 0x3e5   : > { %v1708_v40 = vadd.f32 %v5212_v35, %v1674_v25  ;;  %2326 = vmatmul.f32.gmra.mxu1 %v5372_v0  ;;  %v3433_v25 = vld [vmem:[#allocation7 + $0x358] sm:$0xff]  ;;  %v1272_v8 = vadd.f32 %v6314_v61, %v1165_v27  ;;  %v3436_v61 = vld [vmem:[#allocation7 + $0x340] sm:$0xff] }
 0x3e6   : > { %3288 = vmatpush.msrb.mxu3 %v3433_v25  ;;  %v3435_v25 = vld [vmem:[#allocation7 + $0x348] sm:$0xff] }
 0x3e7   : > { %v1738_v55 = vmax.f32 %v1708_v40, 0.0 }
 0x3e8   : > { %v1641_v5 = vpop.f32.mrf.mxu0  ;;  %2404 = vmatmul.f32.gmra.mxu2 %v5392_v4  ;;  %2485 = vmatmul.f32.gmra.mxu3 %v5395_v34 }
 0x3e9   : > { %v1642_v59 = vadd.f32 %v1641_v5, %v1535_v31  ;;  %v1846_v18 = vsel %vm5385_vm6, %v1738_v55, 0.0  ;;  %3289 = vmatpush.msrb.mxu3 %v3434_v54  ;;  %v2780_v54 = vld [vmem:[#allocation7 + $0x468] sm:$0xff] }
 0x3ea   : > { %v1933_v44 = vrot.slane %v1846_v18, 7  ;;  %v2287_v47 = vpop.f32.mrf.mxu1  ;;  %2947 = vmatpush.msra.mxu2 %v2780_v54 }
 0x3eb   : > { %v1675_v40 = vadd.f32 %v1642_v59, %v1272_v8  ;;  %v2362_v3 = vpop.f32.mrf.mxu2  ;;  %v2443_v26 = vpop.f32.mrf.mxu3  ;;  %2837 = vmatmul.f32.gmra.mxu0 %v5199_v42  ;;  %3290 = vmatpush.msrb.mxu3 %v3435_v25  ;;  %v2764_v25 = vld [vmem:[#allocation7 + $0x3e8] sm:$0xff] }
 0x3ec   : > { %v2363_v27 = vadd.f32 %v2362_v3, %v5342_v51  ;;  %v5407_v31 = vsel %vm1879_vm5, %v4685_v43, %v1933_v44  ;;  %2866 = vmatpush.msra.mxu1 %v2764_v25 }
 0x3ed   : > { %6315 = vst [vmem:[#allocation90_spill] sm:$0xff] %v5407_v31  ;;  %v1709_v55 = vadd.f32 %v5212_v35, %v1675_v40  ;;  %3240 = vmatmul.msk.f32.vlgmr.msrb.gmra.mxu1 %vm3239_vm7, %v4682_v29  ;;  %v5967_v5 = vrot.slane %v5407_v31, 1  ;;  %v5966_v22 = vrot.slane %v5407_v31, 2  ;;  %3291 = vmatpush.msrb.mxu3 %v3436_v61  ;;  %v3437_v29 = vld [vmem:[#allocation7 + $0x338] sm:$0xff]  ;;  %v3440_v61 = vld [vmem:[#allocation7 + $0x320] sm:$0xff] }
 0x3ee   : > { %v5413_v8 = vadd.f32 %v2443_v26, %v2363_v27  ;;  %v3439_v27 = vld [vmem:[#allocation7 + $0x328] sm:$0xff] }
 0x3ef   : > { %v1739_v59 = vmax.f32 %v1709_v55, 0.0  ;;  %v5418_v51 = vsel %vm320_vm0, %v2022_v23, %v5967_v5  ;;  %v5423_v35 = vsel %vm429_vm1, %v2112_v62, %v5966_v22  ;;  %3292 = vmatpush.msrb.mxu3 %v3437_v29  ;;  %v3438_v23 = vld [vmem:[#allocation7 + $0x330] sm:$0xff]  ;;  %v3441_v29 = vld [vmem:[#allocation7 + $0x318] sm:$0xff] }
 0x3f0   : > { %6316 = vst [vmem:[#allocation91_spill] sm:$0xff] %v5418_v51  ;;  %v1644_v18 = vpop.f32.mrf.mxu0  ;;  %2407 = vmatmul.f32.gmra.mxu2 %v5418_v51  ;;  %2488 = vmatmul.f32.gmra.mxu3 %v5423_v35 }
 0x3f1   : > { %6317 = vst [vmem:[#allocation83_spill] sm:$0xff] %v5423_v35  ;;  %v5429_v47 = vsel %vm5385_vm6, %v1739_v59, 0.0  ;;  %3293 = vmatpush.msrb.mxu3 %v3438_v23  ;;  %v2756_v35 = vld [vmem:[#allocation7 + $0x3a8] sm:$0xff] }
 0x3f2   : > { %v5968_v40 = vrot.slane %v5429_v47, 7  ;;  %v2289_v3 = vpop.f32.mrf.mxu1 }
 0x3f3   : > { %v2365_v62 = vpop.f32.mrf.mxu2  ;;  %v2446_v26 = vpop.f32.mrf.mxu3  ;;  %2839 = vmatmul.f32.gmra.mxu0 %v5236_v2  ;;  %3294 = vmatpush.msrb.mxu3 %v3439_v27 }
 0x3f4   : > { %v2366_v55 = vadd.f32 %v2365_v62, %v5376_v14  ;;  %v5437_v60 = vsel %vm1879_vm5, %v1933_v44, %v5968_v40  ;;  %v3442_v14 = vld [vmem:[#allocation7 + $0x310] sm:$0xff]  ;;  %v3444_v62 = vld [vmem:[#allocation7 + $0x300] sm:$0xff]  ;;  %v2758_v40 = vld [vmem:[#allocation7 + $0x3b8] sm:$0xff] }
 0x3f5   : > { %2510 = vmatmul.f32.gmra.mxu1 %v4698_v36  ;;  %3295 = vmatpush.msrb.mxu3 %v3440_v61  ;;  %v3443_v36 = vld [vmem:[#allocation7 + $0x308] sm:$0xff] }
 0x3f6   : > { %v5440_v59 = vadd.f32 %v2446_v26, %v2366_v55  ;;  %v2779_v26 = vld [vmem:[#allocation7 + $0x460] sm:$0xff] }
 0x3f7   : > { %3296 = vmatpush.msrb.mxu3 %v3441_v29  ;;  %2948 = vmatpush.msra.mxu2 %v2779_v26  ;;  %v6320_v29 = vld [vmem:[#allocation36_spill] sm:$0xff]  ;;  %v6322_v26 = vld [vmem:[#allocation47_spill] sm:$0xff] }
 0x3f8   : > { %2588 = vmatmul.f32.vlgmr.msrb.gmra.mxu2 %v4711_v39  ;;  %2669 = vmatmul.f32.vlgmr.msra.gmra.mxu3 %v4714_v33  ;;  %v5444_v18 = vpop.f32.mrf.mxu0  ;;  %v2763_v33 = vld [vmem:[#allocation7 + $0x3e0] sm:$0xff] }
 0x3f9   : > { %6318 = vst [vmem:[#allocation110_spill] sm:$0xff] %v5444_v18  ;;  %3297 = vmatpush.msrb.mxu3 %v3442_v14  ;;  %2867 = vmatpush.msra.mxu1 %v2763_v33 }
 0x3fa   : > { %v2292_v54 = vpop.f32.mrf.mxu1 }
 0x3fb   : > { %v2368_v23 = vpop.f32.mrf.mxu2  ;;  %v2449_v44 = vpop.f32.mrf.mxu3  ;;  %2842 = vmatmul.f32.gmra.mxu0 %v5265_v58  ;;  %3298 = vmatpush.msrb.mxu3 %v3443_v36  ;;  %v2762_v36 = vld [vmem:[#allocation7 + $0x3d8] sm:$0xff] }
 0x3fc   : > { %2868 = vmatpush.msra.mxu1 %v2762_v36 }
 0x3fd   : > { %2513 = vmatmul.f32.gmra.mxu1 %v4702_v50  ;;  %3299 = vmatpush.msrb.mxu3 %v3444_v62 }
 0x400   : > { %2591 = vmatmul.f32.gmra.mxu2 %v4717_v52  ;;  %2672 = vmatmul.f32.gmra.mxu3 %v4720_v45  ;;  %v5450_v39 = vpop.f32.mrf.mxu0  ;;  %v2778_v45 = vld [vmem:[#allocation7 + $0x458] sm:$0xff] }
 0x401   : > { %6319 = vst [vmem:[#allocation93_spill] sm:$0xff] %v5450_v39  ;;  %2949 = vmatpush.msra.mxu2 %v2778_v45  ;;  %v2761_v45 = vld [vmem:[#allocation7 + $0x3d0] sm:$0xff] }
 0x402   : > { %v2295_v25 = vpop.f32.mrf.mxu1  ;;  %2869 = vmatpush.msra.mxu1 %v2761_v45 }
 0x403   : > { %v2370_v27 = vpop.f32.mrf.mxu2  ;;  %v2451_v55 = vpop.f32.mrf.mxu3  ;;  %2845 = vmatmul.f32.gmra.mxu0 %v5287_v57 }
 0x404   : > { %v2371_v61 = vadd.f32 %v2370_v27, %v2289_v3  ;;  %v6321_v3 = vld [vmem:[#allocation46_spill] sm:$0xff] }
 0x405   : > { %2515 = vmatmul.f32.gmra.mxu1 %v4743_v12 }
 0x406   : > { %v5454_v50 = vadd.f32 %v2451_v55, %v2371_v61  ;;  %v6325_v61 = vld [vmem:[#allocation51_spill] sm:$0xff] }
 0x408   : > { %2594 = vmatmul.f32.gmra.mxu2 %v4757_v49  ;;  %2675 = vmatmul.f32.gmra.mxu3 %v6320_v29  ;;  %v2806_v52 = vpop.f32.mrf.mxu0  ;;  %v6323_v49 = vld [vmem:[#allocation50_spill] sm:$0xff]  ;;  %v6327_v29 = vld [vmem:[#allocation59_spill] sm:$0xff] }
 0x40a   : > { %v2297_v14 = vpop.f32.mrf.mxu1 }
 0x40b   : > { %v2373_v23 = vpop.f32.mrf.mxu2  ;;  %v2454_v44 = vpop.f32.mrf.mxu3  ;;  %2847 = vmatmul.f32.gmra.mxu0 %v5321_v30  ;;  %v2777_v30 = vld [vmem:[#allocation7 + $0x450] sm:$0xff] }
 0x40c   : > { %v2374_v62 = vadd.f32 %v2373_v23, %v2292_v54  ;;  %2950 = vmatpush.msra.mxu2 %v2777_v30  ;;  %v6326_v54 = vld [vmem:[#allocation58_spill] sm:$0xff] }
 0x40d   : > { %2518 = vmatmul.f32.gmra.mxu1 %v6321_v3  ;;  %v6329_v3 = vld [vmem:[#allocation62_spill] sm:$0xff] }
 0x40e   : > { %v5460_v12 = vadd.f32 %v2454_v44, %v2374_v62 }
 0x410   : > { %2596 = vmatmul.f32.gmra.mxu2 %v6322_v26  ;;  %2677 = vmatmul.f32.gmra.mxu3 %v6323_v49  ;;  %v5464_v33 = vpop.f32.mrf.mxu0  ;;  %v6330_v26 = vld [vmem:[#allocation63_spill] sm:$0xff] }
 0x411   : > { %6324 = vst [vmem:[#allocation94_spill] sm:$0xff] %v5464_v33 }
 0x412   : > { %v2300_v25 = vpop.f32.mrf.mxu1 }
 0x413   : > { %v2376_v27 = vpop.f32.mrf.mxu2  ;;  %v2457_v55 = vpop.f32.mrf.mxu3  ;;  %2850 = vmatmul.f32.gmra.mxu0 %v5350_v53 }
 0x414   : > { %v2776_v27 = vld [vmem:[#allocation7 + $0x448] sm:$0xff] }
 0x415   : > { %2521 = vmatmul.f32.gmra.mxu1 %v6325_v61  ;;  %2951 = vmatpush.msra.mxu2 %v2776_v27 }
 0x418   : > { %2599 = vmatmul.f32.gmra.mxu2 %v6326_v54  ;;  %2680 = vmatmul.f32.gmra.mxu3 %v6327_v29  ;;  %v5470_v52 = vpop.f32.mrf.mxu0  ;;  %v2760_v54 = vld [vmem:[#allocation7 + $0x3c8] sm:$0xff] }
 0x419   : > { %6328 = vst [vmem:[#allocation86_spill] sm:$0xff] %v5470_v52  ;;  %2870 = vmatpush.msra.mxu1 %v2760_v54 }
 0x41a   : > { %v2303_v23 = vpop.f32.mrf.mxu1 }
 0x41b   : > { %v2378_v44 = vpop.f32.mrf.mxu2  ;;  %v2459_v36 = vpop.f32.mrf.mxu3  ;;  %2853 = vmatmul.f32.gmra.mxu0 %v5372_v0  ;;  %v6331_v0 = vld [vmem:[#allocation68_spill] sm:$0xff] }
 0x41c   : > { %v2379_v62 = vadd.f32 %v2378_v44, %v2297_v14  ;;  %v6332_v14 = vld [vmem:[#allocation69_spill] sm:$0xff] }
 0x41d   : > { %2523 = vmatmul.f32.gmra.mxu1 %v4824_v46 }
 0x41e   : > { %v5474_v53 = vadd.f32 %v2459_v36, %v2379_v62  ;;  %v2775_v62 = vld [vmem:[#allocation7 + $0x440] sm:$0xff] }
 0x41f   : > { %2952 = vmatpush.msra.mxu2 %v2775_v62 }
 0x420   : > { %2602 = vmatmul.f32.gmra.mxu2 %v6329_v3  ;;  %2683 = vmatmul.f32.gmra.mxu3 %v6330_v26  ;;  %v2814_v49 = vpop.f32.mrf.mxu0  ;;  %v6334_v3 = vld [vmem:[#allocation72_spill] sm:$0xff]  ;;  %v2759_v26 = vld [vmem:[#allocation7 + $0x3c0] sm:$0xff] }
 0x421   : > { %2871 = vmatpush.msra.mxu1 %v2759_v26 }
 0x422   : > { %v2305_v55 = vpop.f32.mrf.mxu1 }
 0x423   : > { %v2381_v61 = vpop.f32.mrf.mxu2  ;;  %v2462_v30 = vpop.f32.mrf.mxu3  ;;  %2855 = vmatmul.f32.gmra.mxu0 %v5407_v31  ;;  %2872 = vmatpush.msra.mxu1 %v2758_v40  ;;  %v6349_v31 = vld [vmem:[#allocation125_spill] sm:$0xff] }
 0x424   : > { %v2382_v29 = vadd.f32 %v2381_v61, %v2300_v25  ;;  %v6335_v25 = vld [vmem:[#allocation73_spill] sm:$0xff] }
 0x425   : > { %2526 = vmatmul.f32.gmra.mxu1 %v4852_v20 }
 0x426   : > { %v5480_v46 = vadd.f32 %v2462_v30, %v2382_v29  ;;  %v6337_v29 = vld [vmem:[#allocation122_spill] sm:$0xff] }
 0x428   : > { %2604 = vmatmul.f32.gmra.mxu2 %v6331_v0  ;;  %2685 = vmatmul.f32.gmra.mxu3 %v6332_v14  ;;  %v5484_v45 = vpop.f32.mrf.mxu0 }
 0x429   : > { %6333 = vst [vmem:[#allocation21_spill] sm:$0xff] %v5484_v45 }
 0x42a   : > { %v2308_v23 = vpop.f32.mrf.mxu1 }
 0x42b   : > { %v2384_v44 = vpop.f32.mrf.mxu2  ;;  %v2465_v36 = vpop.f32.mrf.mxu3 }
 0x42c   : > { %v2774_v36 = vld [vmem:[#allocation7 + $0x438] sm:$0xff] }
 0x42d   : > { %2529 = vmatmul.f32.gmra.mxu1 %v4872_v9  ;;  %v6338_v9 = vld [vmem:[#allocation39_spill] sm:$0xff]  ;;  %2953 = vmatpush.msra.mxu2 %v2774_v36  ;;  %v6341_v36 = vld [vmem:[#allocation65_spill] sm:$0xff] }
 0x430   : > { %2607 = vmatmul.f32.gmra.mxu2 %v6334_v3  ;;  %2688 = vmatmul.f32.gmra.mxu3 %v6335_v25  ;;  %v5489_v20 = vpop.f32.mrf.mxu0 }
 0x431   : > { %6336 = vst [vmem:[#allocation111_spill] sm:$0xff] %v5489_v20 }
 0x432   : > { %v2311_v49 = vpop.f32.mrf.mxu1 }
 0x433   : > { %v2386_v27 = vpop.f32.mrf.mxu2  ;;  %v2467_v61 = vpop.f32.mrf.mxu3 }
 0x434   : > { %v2387_v30 = vadd.f32 %v2386_v27, %v2305_v55 }
 0x435   : > { %2531 = vmatmul.f32.gmra.mxu1 %v4907_v19  ;;  %v6339_v19 = vld [vmem:[#allocation96_spill] sm:$0xff] }
 0x436   : > { %v5492_v54 = vadd.f32 %v2467_v61, %v2387_v30 }
 0x438   : > { %2610 = vmatmul.f32.gmra.mxu2 %v6337_v29  ;;  %2691 = vmatmul.f32.gmra.mxu3 %v6338_v9  ;;  %v2822_v44 = vpop.f32.mrf.mxu0 }
 0x439   : > { %v2773_v44 = vld [vmem:[#allocation7 + $0x430] sm:$0xff] }
 0x43a   : > { %v2313_v62 = vpop.f32.mrf.mxu1  ;;  %2954 = vmatpush.msra.mxu2 %v2773_v44 }
 0x43b   : > { %v2389_v22 = vpop.f32.mrf.mxu2  ;;  %v2470_v5 = vpop.f32.mrf.mxu3 }
 0x43c   : > { %v2390_v26 = vadd.f32 %v2389_v22, %v2308_v23  ;;  %v6342_v22 = vld [vmem:[#allocation45_spill] sm:$0xff] }
 0x43d   : > { %2534 = vmatmul.f32.gmra.mxu1 %v4938_v15 }
 0x43e   : > { %v5497_v55 = vadd.f32 %v2470_v5, %v2390_v26  ;;  %v2757_v5 = vld [vmem:[#allocation7 + $0x3b0] sm:$0xff] }
 0x43f   : > { %2873 = vmatpush.msra.mxu1 %v2757_v5 }
 0x440   : > { %2612 = vmatmul.f32.gmra.mxu2 %v4949_v1  ;;  %2693 = vmatmul.f32.gmra.mxu3 %v6339_v19  ;;  %v5501_v49 = vpop.f32.mrf.mxu0 }
 0x441   : > { %6340 = vst [vmem:[#allocation61_spill] sm:$0xff] %v5501_v49  ;;  %v2772_v49 = vld [vmem:[#allocation7 + $0x428] sm:$0xff]  ;;  %2874 = vmatpush.msra.mxu1 %v2756_v35  ;;  %v6350_v35 = vld [vmem:[#allocation100_spill] sm:$0xff] }
 0x442   : > { %v2316_v27 = vpop.f32.mrf.mxu1  ;;  %2955 = vmatpush.msra.mxu2 %v2772_v49  ;;  %v2771_v49 = vld [vmem:[#allocation7 + $0x420] sm:$0xff] }
 0x443   : > { %v2392_v61 = vpop.f32.mrf.mxu2  ;;  %v2473_v30 = vpop.f32.mrf.mxu3 }
 0x444   : > { %v6344_v30 = vld [vmem:[#allocation42_spill] sm:$0xff]  ;;  %2956 = vmatpush.msra.mxu2 %v2771_v49 }
 0x445   : > { %2537 = vmatmul.f32.gmra.mxu1 %v4960_v41  ;;  %v6345_v41 = vld [vmem:[#allocation67_spill] sm:$0xff] }
 0x448   : > { %2615 = vmatmul.f32.gmra.mxu2 %v6341_v36  ;;  %2696 = vmatmul.f32.gmra.mxu3 %v6342_v22  ;;  %v5506_v15 = vpop.f32.mrf.mxu0 }
 0x449   : > { %6343 = vst [vmem:[#allocation97_spill] sm:$0xff] %v5506_v15 }
 0x44a   : > { %v2319_v40 = vpop.f32.mrf.mxu1 }
 0x44b   : > { %v2394_v23 = vpop.f32.mrf.mxu2  ;;  %v2475_v26 = vpop.f32.mrf.mxu3 }
 0x44c   : > { %v2395_v20 = vadd.f32 %v2394_v23, %v2313_v62 }
 0x44d   : > { %2539 = vmatmul.f32.gmra.mxu1 %v4994_v32  ;;  %v6346_v32 = vld [vmem:[#allocation78_spill] sm:$0xff] }
 0x44e   : > { %v5509_v61 = vadd.f32 %v2475_v26, %v2395_v20  ;;  %v6347_v20 = vld [vmem:[#allocation79_spill] sm:$0xff] }
 0x450   : > { %2618 = vmatmul.f32.gmra.mxu2 %v6344_v30  ;;  %2699 = vmatmul.f32.gmra.mxu3 %v6345_v41  ;;  %v2830_v44 = vpop.f32.mrf.mxu0 }
 0x452   : > { %v2321_v45 = vpop.f32.mrf.mxu1 }
 0x453   : > { %v2397_v52 = vpop.f32.mrf.mxu2  ;;  %v2478_v15 = vpop.f32.mrf.mxu3 }
 0x454   : > { %v2398_v5 = vadd.f32 %v2397_v52, %v2316_v27  ;;  %v2755_v52 = vld [vmem:[#allocation7 + $0x3a0] sm:$0xff] }
 0x455   : > { %2542 = vmatmul.f32.gmra.mxu1 %v5022_v17 }
 0x456   : > { %v5514_v62 = vadd.f32 %v2478_v15, %v2398_v5  ;;  %2875 = vmatpush.msra.mxu1 %v2755_v52 }
 0x458   : > { %2620 = vmatmul.f32.gmra.mxu2 %v6346_v32  ;;  %2701 = vmatmul.f32.gmra.mxu3 %v6347_v20  ;;  %v5518_v40 = vpop.f32.mrf.mxu0 }
 0x459   : > { %6348 = vst [vmem:[#allocation118_spill] sm:$0xff] %v5518_v40  ;;  %v2770_v40 = vld [vmem:[#allocation7 + $0x418] sm:$0xff]  ;;  %2876 = vmatpush.msra.mxu1 %v2754_v56  ;;  %v2753_v56 = vld [vmem:[#allocation7 + $0x390] sm:$0xff] }
 0x45a   : > { %v2324_v23 = vpop.f32.mrf.mxu1  ;;  %2957 = vmatpush.msra.mxu2 %v2770_v40  ;;  %v2769_v40 = vld [vmem:[#allocation7 + $0x410] sm:$0xff] }
 0x45b   : > { %v2400_v26 = vpop.f32.mrf.mxu2  ;;  %v2481_v44 = vpop.f32.mrf.mxu3  ;;  %2877 = vmatpush.msra.mxu1 %v2753_v56 }
 0x45c   : > { %v6352_v44 = vld [vmem:[#allocation71_spill] sm:$0xff]  ;;  %2958 = vmatpush.msra.mxu2 %v2769_v40 }
 0x45d   : > { %2545 = vmatmul.f32.gmra.mxu1 %v5042_v10  ;;  %v6353_v10 = vld [vmem:[#allocation81_spill] sm:$0xff] }
 0x460   : > { %2623 = vmatmul.f32.gmra.mxu2 %v6349_v31  ;;  %2704 = vmatmul.f32.gmra.mxu3 %v6350_v35  ;;  %v5523_v17 = vpop.f32.mrf.mxu0 }
 0x461   : > { %6351 = vst [vmem:[#allocation89_spill] sm:$0xff] %v5523_v17 }
 0x462   : > { %v2327_v27 = vpop.f32.mrf.mxu1 }
 0x463   : > { %v2402_v15 = vpop.f32.mrf.mxu2  ;;  %v2483_v5 = vpop.f32.mrf.mxu3 }
 0x464   : > { %v2403_v33 = vadd.f32 %v2402_v15, %v2321_v45 }
 0x465   : > { %2547 = vmatmul.f32.gmra.mxu1 %v5077_v16 }
 0x466   : > { %v5526_v26 = vadd.f32 %v2483_v5, %v2403_v33 }
 0x468   : > { %2626 = vmatmul.f32.gmra.mxu2 %v6352_v44  ;;  %2707 = vmatmul.f32.gmra.mxu3 %v6353_v10  ;;  %v2838_v49 = vpop.f32.mrf.mxu0 }
 0x46a   : > { %v2508_v34 = vpop.f32.mrf.mxu1 }
 0x46b   : > { %v2405_v51 = vpop.f32.mrf.mxu2  ;;  %v2486_v17 = vpop.f32.mrf.mxu3 }
 0x46c   : > { %v2406_v52 = vadd.f32 %v2405_v51, %v2324_v23  ;;  %v6356_v51 = vld [vmem:[#allocation57_spill] sm:$0xff] }
 0x46d   : > { %2550 = vmatmul.f32.gmra.mxu1 %v5105_v24  ;;  %v2509_v23 = vadd.f32 %v2508_v34, %v6356_v51  ;;  %v2752_v51 = vld [vmem:[#allocation7 + $0x388] sm:$0xff] }
 0x46e   : > { %v5531_v45 = vadd.f32 %v2486_v17, %v2406_v52  ;;  %2878 = vmatpush.msra.mxu1 %v2752_v51 }
 0x470   : > { %2628 = vmatmul.f32.gmra.mxu2 %v5115_v21  ;;  %2709 = vmatmul.f32.gmra.mxu3 %v5118_v38  ;;  %v5535_v16 = vpop.f32.mrf.mxu0 }
 0x471   : > { %6354 = vst [vmem:[#allocation114_spill] sm:$0xff] %v5535_v16  ;;  %v2768_v16 = vld [vmem:[#allocation7 + $0x408] sm:$0xff] }
 0x472   : > { %v2511_v33 = vpop.f32.mrf.mxu1  ;;  %2959 = vmatpush.msra.mxu2 %v2768_v16 }
 0x473   : > { %v2408_v27 = vpop.f32.mrf.mxu2  ;;  %v2489_v15 = vpop.f32.mrf.mxu3 }
 0x474   : > { %v6359_v15 = vld [vmem:[#allocation49_spill] sm:$0xff] }
 0x475   : > { %2553 = vmatmul.f32.gmra.mxu1 %v5125_v63  ;;  %v6358_v63 = vld [vmem:[#allocation82_spill] sm:$0xff] }
 0x478   : > { %2631 = vmatmul.f32.gmra.mxu2 %v5142_v48  ;;  %2712 = vmatmul.f32.gmra.mxu3 %v5145_v37  ;;  %v5540_v24 = vpop.f32.mrf.mxu0 }
 0x479   : > { %6355 = vst [vmem:[#allocation99_spill] sm:$0xff] %v5540_v24  ;;  %v6360_v24 = vld [vmem:[#allocation84_spill] sm:$0xff] }
 0x47a   : > { %v2514_v17 = vpop.f32.mrf.mxu1  ;;  %v2512_v4 = vadd.f32 %v2511_v33, %v6360_v24  ;;  %v2751_v33 = vld [vmem:[#allocation7 + $0x380] sm:$0xff] }
 0x47b   : > { %v2589_v5 = vpop.f32.mrf.mxu2  ;;  %v2670_v49 = vpop.f32.mrf.mxu3  ;;  %2879 = vmatpush.msra.mxu1 %v2751_v33  ;;  %v2767_v24 = vld [vmem:[#allocation7 + $0x400] sm:$0xff] }
 0x47c   : > { %v2590_v52 = vadd.f32 %v2589_v5, %v2509_v23  ;;  %v6362_v23 = vld [vmem:[#allocation70_spill] sm:$0xff]  ;;  %v6363_v5 = vld [vmem:[#allocation41_spill] sm:$0xff]  ;;  %2960 = vmatpush.msra.mxu2 %v2767_v24 }
 0x47d   : > { %2555 = vmatmul.f32.gmra.mxu1 %v5155_v13 }
 0x47e   : > { %v5544_v27 = vadd.f32 %v2670_v49, %v2590_v52 }
 0x480   : > { %6357 = vst [vmem:[#allocation120_spill] sm:$0xff] %v5544_v27  ;;  %2634 = vmatmul.f32.gmra.mxu2 %v6358_v63  ;;  %2715 = vmatmul.f32.gmra.mxu3 %v6359_v15  ;;  %v2846_v40 = vpop.f32.mrf.mxu0 }
 0x482   : > { %v2516_v56 = vpop.f32.mrf.mxu1 }
 0x483   : > { %v2592_v39 = vpop.f32.mrf.mxu2  ;;  %v2673_v34 = vpop.f32.mrf.mxu3 }
 0x484   : > { %v2593_v17 = vadd.f32 %v2592_v39, %v2512_v4  ;;  %v6365_v4 = vld [vmem:[#allocation102_spill] sm:$0xff] }
 0x485   : > { %2558 = vmatmul.f32.gmra.mxu1 %v5179_v6  ;;  %v6366_v6 = vld [vmem:[#allocation75_spill] sm:$0xff] }
 0x486   : > { %v5550_v13 = vadd.f32 %v2673_v34, %v2593_v17  ;;  %v2517_v34 = vadd.f32 %v2516_v56, %v5329_v7  ;;  %v6372_v56 = vld [vmem:[#allocation85_spill] sm:$0xff] }
 0x488   : > { %6361 = vst [vmem:[#allocation92_spill] sm:$0xff] %v5550_v13  ;;  %2636 = vmatmul.f32.gmra.mxu2 %v6362_v23  ;;  %2717 = vmatmul.f32.gmra.mxu3 %v6363_v5  ;;  %v5554_v49 = vpop.f32.mrf.mxu0 }
 0x489   : > { %6364 = vst [vmem:[#allocation115_spill] sm:$0xff] %v5554_v49 }
 0x48a   : > { %v2519_v52 = vpop.f32.mrf.mxu1 }
 0x48b   : > { %v2595_v16 = vpop.f32.mrf.mxu2  ;;  %v2676_v40 = vpop.f32.mrf.mxu3  ;;  %v2520_v24 = vadd.f32 %v2519_v52, %v5356_v28  ;;  %v6375_v28 = vld [vmem:[#allocation87_spill] sm:$0xff] }
 0x48c   : > { %v6370_v40 = vld [vmem:[#allocation34_spill] sm:$0xff] }
 0x48d   : > { %2561 = vmatmul.f32.gmra.mxu1 %v5199_v42  ;;  %v6369_v42 = vld [vmem:[#allocation43_spill] sm:$0xff] }
 0x490   : > { %2639 = vmatmul.f32.gmra.mxu2 %v6365_v4  ;;  %2720 = vmatmul.f32.gmra.mxu3 %v6366_v6  ;;  %v5559_v39 = vpop.f32.mrf.mxu0 }
 0x491   : > { %6367 = vst [vmem:[#allocation103_spill] sm:$0xff] %v5559_v39 }
 0x492   : > { %v2522_v51 = vpop.f32.mrf.mxu1 }
 0x493   : > { %v2597_v17 = vpop.f32.mrf.mxu2  ;;  %v2678_v49 = vpop.f32.mrf.mxu3  ;;  %v6374_v51 = vld [vmem:[#allocation106_spill] sm:$0xff] }
 0x494   : > { %v2598_v13 = vadd.f32 %v2597_v17, %v2517_v34 }
 0x495   : > { %2563 = vmatmul.f32.gmra.mxu1 %v5236_v2  ;;  %v6373_v2 = vld [vmem:[#allocation76_spill] sm:$0xff] }
 0x496   : > { %v5563_v16 = vadd.f32 %v2678_v49, %v2598_v13 }
 0x498   : > { %6368 = vst [vmem:[#allocation53_spill] sm:$0xff] %v5563_v16  ;;  %2642 = vmatmul.f32.gmra.mxu2 %v6369_v42  ;;  %2723 = vmatmul.f32.gmra.mxu3 %v6370_v40  ;;  %v2854_v33 = vpop.f32.mrf.mxu0 }
 0x499   : > { %v6376_v33 = vld [vmem:[#allocation88_spill] sm:$0xff] }
 0x49a   : > { %v2524_v27 = vpop.f32.mrf.mxu1 }
 0x49b   : > { %v2600_v11 = vpop.f32.mrf.mxu2  ;;  %v2681_v39 = vpop.f32.mrf.mxu3  ;;  %v2525_v52 = vadd.f32 %v2524_v27, %v5413_v8 }
 0x49c   : > { %v2601_v18 = vadd.f32 %v2600_v11, %v2520_v24  ;;  %v6377_v24 = vld [vmem:[#allocation80_spill] sm:$0xff] }
 0x49d   : > { %2566 = vmatmul.f32.gmra.mxu1 %v5265_v58 }
 0x49e   : > { %v5569_v7 = vadd.f32 %v2681_v39, %v2601_v18 }
 0x4a0   : > { %6371 = vst [vmem:[#allocation95_spill] sm:$0xff] %v5569_v7  ;;  %2644 = vmatmul.f32.gmra.mxu2 %v6372_v56  ;;  %2725 = vmatmul.f32.gmra.mxu3 %v6373_v2 }
 0x4a2   : > { %v2527_v13 = vpop.f32.mrf.mxu1 }
 0x4a3   : > { %v2603_v49 = vpop.f32.mrf.mxu2  ;;  %v2684_v34 = vpop.f32.mrf.mxu3 }
 0x4a5   : > { %2569 = vmatmul.f32.gmra.mxu1 %v5287_v57  ;;  %v2528_v57 = vadd.f32 %v2527_v13, %v5440_v59  ;;  %v6378_v59 = vrot.slane %v5429_v47, 7 }
 0x4a7   : > { %v5593_v13 = vsel %vm1879_vm5, %v6378_v59, %v4685_v43 }
 0x4a8   : > { %2647 = vmatmul.f32.gmra.mxu2 %v6374_v51  ;;  %2728 = vmatmul.f32.gmra.mxu3 %v6375_v28 }
 0x4aa   : > { %v2530_v11 = vpop.f32.mrf.mxu1 }
 0x4ab   : > { %v2605_v17 = vpop.f32.mrf.mxu2  ;;  %v2686_v58 = vpop.f32.mrf.mxu3 }
 0x4ac   : > { %v2606_v18 = vadd.f32 %v2605_v17, %v2525_v52 }
 0x4ad   : > { %2880 = vmatmul.f32.vlgmr.msra.gmra.mxu1 %v6331_v0 }
 0x4ae   : > { %v5578_v39 = vadd.f32 %v2686_v58, %v2606_v18 }
 0x4b0   : > { %2650 = vmatmul.f32.gmra.mxu2 %v6376_v33  ;;  %2731 = vmatmul.f32.gmra.mxu3 %v6377_v24 }
 0x4b2   : > { %v2532_v49 = vpop.f32.mrf.mxu1 }
 0x4b3   : > { %v2608_v34 = vpop.f32.mrf.mxu2  ;;  %v2689_v7 = vpop.f32.mrf.mxu3 }
 0x4b4   : > { %v2609_v16 = vadd.f32 %v2608_v34, %v2528_v57 }
 0x4b5   : > { %2883 = vmatmul.f32.gmra.mxu1 %v6334_v3  ;;  %v2533_v3 = vadd.f32 %v2532_v49, %v5454_v50 }
 0x4b6   : > { %v5584_v8 = vadd.f32 %v2689_v7, %v2609_v16 }
 0x4b8   : > { %2858 = vmatmul.f32.vlgmr.msrb.gmra.mxu3 %v5437_v60  ;;  %2961 = vmatmul.f32.vlgmr.msra.gmra.mxu2 %v6332_v14 }
 0x4ba   : > { %v2535_v0 = vpop.f32.mrf.mxu1 }
 0x4bb   : > { %v2611_v27 = vpop.f32.mrf.mxu2  ;;  %v2692_v52 = vpop.f32.mrf.mxu3  ;;  %v2536_v47 = vadd.f32 %v2535_v0, %v5460_v12 }
 0x4bd   : > { %2886 = vmatmul.f32.gmra.mxu1 %v6337_v29 }
 0x4c0   : > { %2861 = vmatmul.f32.gmra.mxu3 %v5593_v13  ;;  %2964 = vmatmul.f32.gmra.mxu2 %v6335_v25 }
 0x4c2   : > { %v2538_v16 = vpop.f32.mrf.mxu1 }
 0x4c3   : > { %v2613_v7 = vpop.f32.mrf.mxu2  ;;  %v2694_v14 = vpop.f32.mrf.mxu3 }
 0x4c4   : > { %v2614_v11 = vadd.f32 %v2613_v7, %v2533_v3 }
 0x4c5   : > { %2888 = vmatmul.f32.gmra.mxu1 %v4949_v1 }
 0x4c6   : > { %v5599_v17 = vadd.f32 %v2694_v14, %v2614_v11 }
 0x4c8   : > { %2967 = vmatmul.f32.gmra.mxu2 %v6338_v9 }
 0x4ca   : > { %v2540_v43 = vpop.f32.mrf.mxu1 }
 0x4cb   : > { %v2616_v29 = vpop.f32.mrf.mxu2  ;;  %v2697_v58 = vpop.f32.mrf.mxu3  ;;  %v2541_v1 = vadd.f32 %v2540_v43, %v5474_v53 }
 0x4cc   : > { %v2617_v18 = vadd.f32 %v2616_v29, %v2536_v47 }
 0x4cd   : > { %2891 = vmatmul.f32.gmra.mxu1 %v6341_v36 }
 0x4ce   : > { %v5604_v25 = vadd.f32 %v2697_v58, %v2617_v18 }
 0x4d0   : > { %2969 = vmatmul.f32.gmra.mxu2 %v6339_v19 }
 0x4d2   : > { %v2543_v50 = vpop.f32.mrf.mxu1 }
 0x4d3   : > { %v2619_v57 = vpop.f32.mrf.mxu2  ;;  %v2700_v49 = vpop.f32.mrf.mxu3  ;;  %v2544_v19 = vadd.f32 %v2543_v50, %v5480_v46 }
 0x4d5   : > { %2894 = vmatmul.f32.gmra.mxu1 %v6344_v30 }
 0x4d8   : > { %2972 = vmatmul.f32.gmra.mxu2 %v6342_v22 }
 0x4da   : > { %v2546_v12 = vpop.f32.mrf.mxu1 }
 0x4db   : > { %v2621_v9 = vpop.f32.mrf.mxu2  ;;  %v2702_v34 = vpop.f32.mrf.mxu3 }
 0x4dc   : > { %v2622_v0 = vadd.f32 %v2621_v9, %v2541_v1 }
 0x4dd   : > { %2896 = vmatmul.f32.gmra.mxu1 %v6346_v32 }
 0x4de   : > { %v5611_v36 = vadd.f32 %v2702_v34, %v2622_v0 }
 0x4e0   : > { %2975 = vmatmul.f32.gmra.mxu2 %v6345_v41 }
 0x4e2   : > { %v2548_v27 = vpop.f32.mrf.mxu1 }
 0x4e3   : > { %v2624_v52 = vpop.f32.mrf.mxu2  ;;  %v2705_v59 = vpop.f32.mrf.mxu3  ;;  %v2549_v41 = vadd.f32 %v2548_v27, %v5492_v54 }
 0x4e4   : > { %v2625_v30 = vadd.f32 %v2624_v52, %v2544_v19 }
 0x4e5   : > { %2899 = vmatmul.f32.gmra.mxu1 %v6349_v31 }
 0x4e6   : > { %v5616_v22 = vadd.f32 %v2705_v59, %v2625_v30 }
 0x4e8   : > { %2977 = vmatmul.f32.gmra.mxu2 %v6347_v20 }
 0x4ea   : > { %v2551_v53 = vpop.f32.mrf.mxu1 }
 0x4eb   : > { %v2627_v3 = vpop.f32.mrf.mxu2  ;;  %v2708_v16 = vpop.f32.mrf.mxu3  ;;  %v2552_v20 = vadd.f32 %v2551_v53, %v5497_v55 }
 0x4ed   : > { %2902 = vmatmul.f32.gmra.mxu1 %v6352_v44 }
 0x4f0   : > { %2980 = vmatmul.f32.gmra.mxu2 %v6350_v35 }
 0x4f2   : > { %v2554_v46 = vpop.f32.mrf.mxu1 }
 0x4f3   : > { %v2629_v32 = vpop.f32.mrf.mxu2  ;;  %v2710_v7 = vpop.f32.mrf.mxu3 }
 0x4f4   : > { %v2630_v14 = vadd.f32 %v2629_v32, %v2549_v41  ;;  %v6381_v41 = vld [vmem:[#allocation120_spill] sm:$0xff] }
 0x4f5   : > { %2904 = vmatmul.f32.gmra.mxu1 %v5115_v21 }
 0x4f6   : > { %v5623_v31 = vadd.f32 %v2710_v7, %v2630_v14 }
 0x4f8   : > { %2983 = vmatmul.f32.gmra.mxu2 %v6353_v10 }
 0x4fa   : > { %v2556_v11 = vpop.f32.mrf.mxu1 }
 0x4fb   : > { %v2632_v47 = vpop.f32.mrf.mxu2  ;;  %v2713_v43 = vpop.f32.mrf.mxu3  ;;  %v2557_v21 = vadd.f32 %v2556_v11, %v5509_v61 }
 0x4fc   : > { %v2633_v44 = vadd.f32 %v2632_v47, %v2552_v20  ;;  %v6383_v47 = vld [vmem:[#allocation24_spill] sm:$0xff] }
 0x4fd   : > { %2907 = vmatmul.f32.gmra.mxu1 %v5142_v48 }
 0x4fe   : > { %v5628_v35 = vadd.f32 %v2713_v43, %v2633_v44 }
 0x500   : > { %2985 = vmatmul.f32.gmra.mxu2 %v5118_v38 }
 0x502   : > { %v2559_v54 = vpop.f32.mrf.mxu1 }
 0x503   : > { %v2635_v29 = vpop.f32.mrf.mxu2  ;;  %v2716_v58 = vpop.f32.mrf.mxu3  ;;  %v2560_v38 = vadd.f32 %v2559_v54, %v5514_v62  ;;  %v6384_v54 = vld [vmem:[#allocation25_spill] sm:$0xff] }
 0x504   : > { %v6385_v29 = vld [vmem:[#allocation92_spill] sm:$0xff] }
 0x505   : > { %2910 = vmatmul.f32.gmra.mxu1 %v6358_v63 }
 0x508   : > { %2988 = vmatmul.f32.gmra.mxu2 %v5145_v37 }
 0x50a   : > { %v2562_v55 = vpop.f32.mrf.mxu1 }
 0x50b   : > { %v2637_v10 = vpop.f32.mrf.mxu2  ;;  %v2718_v18 = vpop.f32.mrf.mxu3  ;;  %v6386_v55 = vld [vmem:[#allocation107_spill] sm:$0xff] }
 0x50c   : > { %v2638_v50 = vadd.f32 %v2637_v10, %v2557_v21 }
 0x50d   : > { %2912 = vmatmul.f32.gmra.mxu1 %v6362_v23 }
 0x50e   : > { %v5635_v48 = vadd.f32 %v2718_v18, %v2638_v50  ;;  %v6387_v50 = vld [vmem:[#allocation26_spill] sm:$0xff] }
 0x510   : > { %2991 = vmatmul.f32.gmra.mxu2 %v6359_v15 }
 0x512   : > { %v2564_v57 = vpop.f32.mrf.mxu1 }
 0x513   : > { %v2640_v49 = vpop.f32.mrf.mxu2  ;;  %v2721_v1 = vpop.f32.mrf.mxu3  ;;  %v2565_v15 = vadd.f32 %v2564_v57, %v5526_v26  ;;  %v6388_v57 = vld [vmem:[#allocation91_spill] sm:$0xff] }
 0x514   : > { %v2641_v63 = vadd.f32 %v2640_v49, %v2560_v38  ;;  %v6389_v49 = vld [vmem:[#allocation54_spill] sm:$0xff] }
 0x515   : > { %2915 = vmatmul.f32.gmra.mxu1 %v6365_v4 }
 0x516   : > { %v5640_v37 = vadd.f32 %v2721_v1, %v2641_v63  ;;  %v2026_v1 = vrot.slane %v5437_v60, 1  ;;  %v6390_v63 = vld [vmem:[#allocation94_spill] sm:$0xff] }
 0x518   : > { %2993 = vmatmul.f32.gmra.mxu2 %v6363_v5 }
 0x51a   : > { %v2567_v61 = vpop.f32.mrf.mxu1 }
 0x51b   : > { %v2643_v12 = vpop.f32.mrf.mxu2  ;;  %v2724_v9 = vpop.f32.mrf.mxu3  ;;  %v2568_v5 = vadd.f32 %v2567_v61, %v5531_v45 }
 0x51d   : > { %2918 = vmatmul.f32.gmra.mxu1 %v6369_v42 }
 0x520   : > { %2996 = vmatmul.f32.gmra.mxu2 %v6366_v6 }
 0x522   : > { %v2570_v62 = vpop.f32.mrf.mxu1 }
 0x523   : > { %v2645_v23 = vpop.f32.mrf.mxu2  ;;  %v2726_v34 = vpop.f32.mrf.mxu3  ;;  %v6391_v62 = vld [vmem:[#allocation90_spill] sm:$0xff] }
 0x524   : > { %v2646_v0 = vadd.f32 %v2645_v23, %v2565_v15  ;;  %v6392_v23 = vrot.slane %v6391_v62, 1 }
 0x525   : > { %2920 = vmatmul.f32.gmra.mxu1 %v6372_v56 }
 0x526   : > { %v5647_v4 = vadd.f32 %v2726_v34, %v2646_v0  ;;  %v2027_v34 = vsel %vm320_vm0, %v6392_v23, %v2026_v1  ;;  %v6393_v0 = vld [vmem:[#allocation53_spill] sm:$0xff] }
 0x527   : > { %v6404_v23 = vld [vmem:[#allocation61_spill] sm:$0xff] }
 0x528   : > { %2999 = vmatmul.f32.gmra.mxu2 %v6370_v40  ;;  %v6379_v40 = vld [vmem:[#allocation110_spill] sm:$0xff] }
 0x52a   : > { %v2881_v19 = vpop.f32.mrf.mxu1 }
 0x52b   : > { %v2648_v27 = vpop.f32.mrf.mxu2  ;;  %v2729_v52 = vpop.f32.mrf.mxu3  ;;  %v2882_v56 = vadd.f32 %v2881_v19, %v6379_v40  ;;  %v2028_v19 = vrot.slane %v5593_v13, 1 }
 0x52c   : > { %v2649_v42 = vadd.f32 %v2648_v27, %v2568_v5 }
 0x52d   : > { %2923 = vmatmul.f32.gmra.mxu1 %v6374_v51  ;;  %v5663_v51 = vld [vmem:[%s5814_s4] ss:$0 sm:$0xff] }
 0x52e   : > { %v5652_v6 = vadd.f32 %v2729_v52, %v2649_v42  ;;  %v6394_v52 = vld [vmem:[#allocation83_spill] sm:$0xff]  ;;  %v6395_v42 = vld [vmem:[#allocation86_spill] sm:$0xff] }
 0x530   : > { %3001 = vmatmul.f32.gmra.mxu2 %v6373_v2  ;;  %v6380_v2 = vld [vmem:[#allocation52_spill] sm:$0xff] }
 0x532   : > { %v2884_v26 = vpop.f32.mrf.mxu1 }
 0x533   : > { %v2651_v59 = vpop.f32.mrf.mxu2  ;;  %v2732_v30 = vpop.f32.mrf.mxu3 }
 0x535   : > { %2926 = vmatmul.f32.gmra.mxu1 %v6376_v33 }
 0x538   : > { %3004 = vmatmul.f32.gmra.mxu2 %v6375_v28  ;;  %v6382_v28 = vld [vmem:[#allocation93_spill] sm:$0xff] }
 0x539   : > { %v2885_v32 = vadd.f32 %v2884_v26, %v6382_v28 }
 0x53a   : > { %v2887_v45 = vpop.f32.mrf.mxu1 }
 0x53b   : > { %v5658_v53 = vpop.f32.mrf.mxu3  ;;  %v2962_v3 = vpop.f32.mrf.mxu2  ;;  %v6396_v45 = vld [vmem:[#allocation29_spill] sm:$0xff] }
 0x53c   : > { %v2963_v16 = vadd.f32 %v2962_v3, %v2882_v56  ;;  %v2116_v56 = vrot.slane %v5437_v60, 2  ;;  %v2118_v60 = vrot.slane %v5593_v13, 2 }
 0x53d   : > { %2928 = vmatmul.f32.gmra.mxu1 %v6380_v2  ;;  %v2029_v2 = vsel %vm320_vm0, %v2026_v1, %v2028_v19 }
 0x53e   : > { %v3026_v46 = vadd.f32 %v2963_v16, %v6381_v41  ;;  %v6397_v41 = vld [vmem:[#allocation95_spill] sm:$0xff] }
 0x540   : > { %v3046_v33 = vadd.f32 %v5663_v51, %v3026_v46  ;;  %3007 = vmatmul.f32.gmra.mxu2 %v6377_v24 }
 0x542   : > { %v3062_v7 = vmul.f32 0.5, %v3046_v33  ;;  %v2889_v14 = vpop.f32.mrf.mxu1  ;;  %v6398_v33 = vrot.slane %v6391_v62, 2 }
 0x543   : > { %v2862_v20 = vpop.f32.mrf.mxu3  ;;  %v2965_v11 = vpop.f32.mrf.mxu2  ;;  %v2890_v61 = vadd.f32 %v2889_v14, %v6390_v63 }
 0x544   : > { %v3078_v43 = vadd.f32 %v3062_v7, %v6383_v47  ;;  %v2966_v44 = vadd.f32 %v2965_v11, %v2885_v32  ;;  %v2117_v28 = vsel %vm429_vm1, %v6398_v33, %v2116_v56  ;;  %v6399_v11 = vld [vmem:[#allocation31_spill] sm:$0xff] }
 0x545   : > { %2931 = vmatmul.f32.gmra.mxu1 %v6384_v54 }
 0x546   : > { %3094 = vst [vmem:[%s3787_s30] sm:$0xff] %v3078_v43  ;;  %v3027_v58 = vadd.f32 %v2966_v44, %v6385_v29  ;;  %v2119_v43 = vsel %vm429_vm1, %v2116_v56, %v2118_v60  ;;  %v6400_v44 = vld [vmem:[#allocation21_spill] sm:$0xff] }
 0x548   : > { %v3047_v21 = vadd.f32 %v5663_v51, %v3027_v58  ;;  %3009 = vmatmul.f32.gmra.mxu2 %v6386_v55 }
 0x54a   : > { %v3063_v24 = vmul.f32 0.5, %v3047_v21  ;;  %v2892_v10 = vpop.f32.mrf.mxu1 }
 0x54b   : > { %v2968_v18 = vpop.f32.mrf.mxu2  ;;  %v2893_v26 = vadd.f32 %v2892_v10, %v6395_v42 }
 0x54c   : > { %v3079_v38 = vadd.f32 %v3063_v24, %v6387_v50  ;;  %v6401_v24 = vld [vmem:[#allocation111_spill] sm:$0xff] }
 0x54d   : > { %2934 = vmatmul.f32.gmra.mxu1 %v6388_v57  ;;  %v6402_v57 = vld [vmem:[#allocation35_spill] sm:$0xff] }
 0x54e   : > { %3095 = vst [vmem:[%s3787_s30 + $0x8] sm:$0xff] %v3079_v38 }
 0x550   : > { %3012 = vmatmul.f32.gmra.mxu2 %v6389_v49 }
 0x552   : > { %v2895_v12 = vpop.f32.mrf.mxu1 }
 0x553   : > { %v2970_v9 = vpop.f32.mrf.mxu2 }
 0x554   : > { %v2971_v15 = vadd.f32 %v2970_v9, %v2890_v61 }
 0x555   : > { %2936 = vmatmul.f32.gmra.mxu1 %v2027_v34 }
 0x556   : > { %v3028_v5 = vadd.f32 %v2971_v15, %v6393_v0  ;;  %v6403_v15 = vld [vmem:[#allocation37_spill] sm:$0xff] }
 0x558   : > { %v3048_v27 = vadd.f32 %v5663_v51, %v3028_v5  ;;  %3015 = vmatmul.f32.gmra.mxu2 %v6394_v52 }
 0x55a   : > { %v3064_v59 = vmul.f32 0.5, %v3048_v27  ;;  %v2897_v30 = vpop.f32.mrf.mxu1 }
 0x55b   : > { %v2973_v40 = vpop.f32.mrf.mxu2  ;;  %v2898_v54 = vadd.f32 %v2897_v30, %v6400_v44 }
 0x55c   : > { %v3080_v3 = vadd.f32 %v3064_v59, %v6396_v45  ;;  %v2974_v16 = vadd.f32 %v2973_v40, %v2893_v26  ;;  %v6406_v40 = vld [vmem:[#allocation38_spill] sm:$0xff] }
 0x55d   : > { %2939 = vmatmul.f32.gmra.mxu1 %v2029_v2 }
 0x55e   : > { %3096 = vst [vmem:[%s3787_s30 + $0x10] sm:$0xff] %v3080_v3  ;;  %v3029_v46 = vadd.f32 %v2974_v16, %v6397_v41 }
 0x560   : > { %v3049_v32 = vadd.f32 %v5663_v51, %v3029_v46  ;;  %3017 = vmatmul.f32.gmra.mxu2 %v2117_v28  ;;  %v6408_v28 = vld [vmem:[#allocation118_spill] sm:$0xff] }
 0x562   : > { %v3065_v7 = vmul.f32 0.5, %v3049_v32  ;;  %v2900_v14 = vpop.f32.mrf.mxu1 }
 0x563   : > { %v2976_v20 = vpop.f32.mrf.mxu2  ;;  %v2901_v10 = vadd.f32 %v2900_v14, %v6401_v24 }
 0x564   : > { %v3081_v47 = vadd.f32 %v3065_v7, %v6399_v11 }
 0x565   : > { %3241 = vmatmul.msk.f32.gmra.mxu1 %vm320_vm0, %v2028_v19 }
 0x566   : > { %3097 = vst [vmem:[%s3787_s30 + $0x18] sm:$0xff] %v3081_v47 }
 0x568   : > { %3020 = vmatmul.f32.gmra.mxu2 %v2119_v43 }
 0x56a   : > { %v2903_v29 = vpop.f32.mrf.mxu1 }
 0x56b   : > { %v2978_v58 = vpop.f32.mrf.mxu2  ;;  %v6410_v29 = vld [vmem:[#allocation44_spill] sm:$0xff] }
 0x56c   : > { %v2979_v21 = vadd.f32 %v2978_v58, %v2898_v54 }
 0x56e   : > { %v3030_v55 = vadd.f32 %v2979_v21, %v5578_v39 }
 0x570   : > { %v3050_v13 = vadd.f32 %v5663_v51, %v3030_v55  ;;  %3242 = vmatmul.msk.f32.gmra.mxu2 %vm429_vm1, %v2118_v60 }
 0x572   : > { %v3066_v18 = vmul.f32 0.5, %v3050_v13  ;;  %v2905_v50 = vpop.f32.mrf.mxu1 }
 0x573   : > { %v2981_v38 = vpop.f32.mrf.mxu2  ;;  %v2906_v34 = vadd.f32 %v2905_v50, %v6404_v23  ;;  %v6414_v23 = vld [vmem:[#allocation55_spill] sm:$0xff] }
 0x574   : > { %v3082_v49 = vadd.f32 %v3066_v18, %v6402_v57  ;;  %v2982_v1 = vadd.f32 %v2981_v38, %v2901_v10  ;;  %v6412_v38 = vld [vmem:[#allocation114_spill] sm:$0xff] }
 0x576   : > { %3098 = vst [vmem:[%s3787_s30 + $0x20] sm:$0xff] %v3082_v49  ;;  %v3031_v63 = vadd.f32 %v2982_v1, %v5584_v8  ;;  %v6405_v8 = vld [vmem:[#allocation97_spill] sm:$0xff] }
 0x578   : > { %v3051_v61 = vadd.f32 %v5663_v51, %v3031_v63 }
 0x57a   : > { %v3067_v12 = vmul.f32 0.5, %v3051_v61  ;;  %v2908_v39 = vpop.f32.mrf.mxu1 }
 0x57b   : > { %v2984_v9 = vpop.f32.mrf.mxu2  ;;  %v2909_v42 = vadd.f32 %v2908_v39, %v6405_v8 }
 0x57c   : > { %v3083_v62 = vadd.f32 %v3067_v12, %v6403_v15 }
 0x57e   : > { %3099 = vst [vmem:[%s3787_s30 + $0x28] sm:$0xff] %v3083_v62 }
 0x582   : > { %v2911_v0 = vpop.f32.mrf.mxu1 }
 0x583   : > { %v2986_v5 = vpop.f32.mrf.mxu2 }
 0x584   : > { %v2987_v19 = vadd.f32 %v2986_v5, %v2906_v34 }
 0x586   : > { %v3032_v27 = vadd.f32 %v2987_v19, %v5599_v17  ;;  %v6407_v17 = vld [vmem:[#allocation40_spill] sm:$0xff] }
 0x588   : > { %v3052_v52 = vadd.f32 %v5663_v51, %v3032_v27 }
 0x58a   : > { %v3068_v26 = vmul.f32 0.5, %v3052_v52  ;;  %v2913_v59 = vpop.f32.mrf.mxu1 }
 0x58b   : > { %v2989_v30 = vpop.f32.mrf.mxu2  ;;  %v2914_v32 = vadd.f32 %v2913_v59, %v6408_v28 }
 0x58c   : > { %v3084_v56 = vadd.f32 %v3068_v26, %v6406_v40  ;;  %v2990_v45 = vadd.f32 %v2989_v30, %v2909_v42  ;;  %v6416_v26 = vld [vmem:[#allocation115_spill] sm:$0xff] }
 0x58e   : > { %3100 = vst [vmem:[%s3787_s30 + $0x30] sm:$0xff] %v3084_v56  ;;  %v3033_v3 = vadd.f32 %v2990_v45, %v5604_v25  ;;  %v6409_v25 = vld [vmem:[#allocation89_spill] sm:$0xff] }
 0x590   : > { %v3053_v16 = vadd.f32 %v5663_v51, %v3033_v3 }
 0x592   : > { %v3069_v2 = vmul.f32 0.5, %v3053_v16  ;;  %v2916_v41 = vpop.f32.mrf.mxu1 }
 0x593   : > { %v2992_v46 = vpop.f32.mrf.mxu2  ;;  %v2917_v47 = vadd.f32 %v2916_v41, %v6409_v25  ;;  %v2856_v25 = vpop.f32.mrf.mxu0 }
 0x594   : > { %v3085_v33 = vadd.f32 %v3069_v2, %v6407_v17  ;;  %v6418_v17 = vld [vmem:[#allocation22_spill] sm:$0xff] }
 0x596   : > { %3101 = vst [vmem:[%s3787_s30 + $0x38] sm:$0xff] %v3085_v33 }
 0x59a   : > { %v2919_v7 = vpop.f32.mrf.mxu1 }
 0x59b   : > { %v2994_v14 = vpop.f32.mrf.mxu2 }
 0x59c   : > { %v2995_v60 = vadd.f32 %v2994_v14, %v2914_v32 }
 0x59e   : > { %v3034_v20 = vadd.f32 %v2995_v60, %v5611_v36  ;;  %v6411_v36 = vld [vmem:[#allocation48_spill] sm:$0xff] }
 0x5a0   : > { %v3054_v11 = vadd.f32 %v5663_v51, %v3034_v20  ;;  %v6419_v20 = vld [vmem:[#allocation23_spill] sm:$0xff] }
 0x5a2   : > { %v3070_v43 = vmul.f32 0.5, %v3054_v11  ;;  %v2921_v44 = vpop.f32.mrf.mxu1 }
 0x5a3   : > { %v2997_v54 = vpop.f32.mrf.mxu2  ;;  %v2922_v57 = vadd.f32 %v2921_v44, %v6412_v38 }
 0x5a4   : > { %v3086_v58 = vadd.f32 %v3070_v43, %v6410_v29  ;;  %v2998_v21 = vadd.f32 %v2997_v54, %v2917_v47 }
 0x5a6   : > { %3102 = vst [vmem:[%s3787_s30 + $0x40] sm:$0xff] %v3086_v58  ;;  %v3035_v55 = vadd.f32 %v2998_v21, %v5616_v22  ;;  %v6413_v22 = vld [vmem:[#allocation99_spill] sm:$0xff] }
 0x5a8   : > { %v3055_v13 = vadd.f32 %v5663_v51, %v3035_v55 }
 0x5aa   : > { %v3071_v24 = vmul.f32 0.5, %v3055_v13  ;;  %v2924_v10 = vpop.f32.mrf.mxu1  ;;  %v6420_v13 = vld [vmem:[#allocation27_spill] sm:$0xff] }
 0x5ab   : > { %v3000_v18 = vpop.f32.mrf.mxu2  ;;  %v2925_v39 = vadd.f32 %v2924_v10, %v6413_v22 }
 0x5ac   : > { %v3087_v50 = vadd.f32 %v3071_v24, %v6411_v36 }
 0x5ae   : > { %3103 = vst [vmem:[%s3787_s30 + $0x48] sm:$0xff] %v3087_v50  ;;  %v6421_v50 = vld [vmem:[#allocation28_spill] sm:$0xff] }
 0x5b2   : > { %v2927_v49 = vpop.f32.mrf.mxu1 }
 0x5b3   : > { %v3002_v1 = vpop.f32.mrf.mxu2 }
 0x5b4   : > { %v3003_v63 = vadd.f32 %v3002_v1, %v2922_v57 }
 0x5b6   : > { %v3036_v61 = vadd.f32 %v3003_v63, %v5623_v31  ;;  %v6415_v31 = vld [vmem:[#allocation60_spill] sm:$0xff] }
 0x5b8   : > { %v3056_v12 = vadd.f32 %v5663_v51, %v3036_v61 }
 0x5ba   : > { %v3072_v9 = vmul.f32 0.5, %v3056_v12  ;;  %v2929_v15 = vpop.f32.mrf.mxu1 }
 0x5bb   : > { %v3005_v62 = vpop.f32.mrf.mxu2  ;;  %v2930_v59 = vadd.f32 %v2929_v15, %v6416_v26 }
 0x5bc   : > { %v3088_v34 = vadd.f32 %v3072_v9, %v6414_v23  ;;  %v3006_v0 = vadd.f32 %v3005_v62, %v2925_v39 }
 0x5be   : > { %3104 = vst [vmem:[%s3787_s30 + $0x50] sm:$0xff] %v3088_v34  ;;  %v3037_v5 = vadd.f32 %v3006_v0, %v5628_v35  ;;  %v6417_v35 = vld [vmem:[#allocation103_spill] sm:$0xff] }
 0x5c0   : > { %v3057_v19 = vadd.f32 %v5663_v51, %v3037_v5 }
 0x5c2   : > { %v3073_v27 = vmul.f32 0.5, %v3057_v19  ;;  %v2932_v52 = vpop.f32.mrf.mxu1 }
 0x5c3   : > { %v3008_v8 = vpop.f32.mrf.mxu2  ;;  %v2933_v16 = vadd.f32 %v2932_v52, %v6417_v35 }
 0x5c4   : > { %v3089_v42 = vadd.f32 %v3073_v27, %v6415_v31 }
 0x5c6   : > { %3105 = vst [vmem:[%s3787_s30 + $0x58] sm:$0xff] %v3089_v42 }
 0x5ca   : > { %v2935_v30 = vpop.f32.mrf.mxu1 }
 0x5cb   : > { %v3010_v40 = vpop.f32.mrf.mxu2 }
 0x5cc   : > { %v3011_v56 = vadd.f32 %v3010_v40, %v2930_v59 }
 0x5ce   : > { %v3038_v45 = vadd.f32 %v3011_v56, %v5635_v48 }
 0x5d0   : > { %v3058_v3 = vadd.f32 %v5663_v51, %v3038_v45 }
 0x5d2   : > { %v3074_v2 = vmul.f32 0.5, %v3058_v3  ;;  %v2937_v41 = vpop.f32.mrf.mxu1 }
 0x5d3   : > { %v3013_v46 = vpop.f32.mrf.mxu2  ;;  %v2938_v47 = vadd.f32 %v2937_v41, %v2856_v25 }
 0x5d4   : > { %v3090_v33 = vadd.f32 %v3074_v2, %v6418_v17  ;;  %v3014_v28 = vadd.f32 %v3013_v46, %v2933_v16 }
 0x5d6   : > { %3106 = vst [vmem:[%s3787_s30 + $0x60] sm:$0xff] %v3090_v33  ;;  %v3039_v32 = vadd.f32 %v3014_v28, %v5640_v37 }
 0x5d8   : > { %v3059_v7 = vadd.f32 %v5663_v51, %v3039_v32 }
 0x5da   : > { %v3075_v14 = vmul.f32 0.5, %v3059_v7  ;;  %v2940_v60 = vpop.f32.mrf.mxu1 }
 0x5db   : > { %v3016_v48 = vpop.f32.mrf.mxu2  ;;  %v2941_v58 = vadd.f32 %v2940_v60, %v5658_v53 }
 0x5dc   : > { %v3091_v11 = vadd.f32 %v3075_v14, %v6419_v20 }
 0x5de   : > { %3107 = vst [vmem:[%s3787_s30 + $0x68] sm:$0xff] %v3091_v11 }
 0x5e2   : > { %v2943_v43 = vpop.f32.mrf.mxu1 }
 0x5e3   : > { %v3018_v44 = vpop.f32.mrf.mxu2 }
 0x5e4   : > { %v3019_v54 = vadd.f32 %v3018_v44, %v2938_v47 }
 0x5e6   : > { %v3040_v29 = vadd.f32 %v3019_v54, %v5647_v4 }
 0x5e8   : > { %v3060_v37 = vadd.f32 %v5663_v51, %v3040_v29 }
 0x5ea   : > { %v3076_v21 = vmul.f32 0.5, %v3060_v37 }
 0x5eb   : > { %v3021_v55 = vpop.f32.mrf.mxu2 }
 0x5ec   : > { %v3092_v24 = vadd.f32 %v3076_v21, %v6420_v13  ;;  %v3022_v10 = vadd.f32 %v3021_v55, %v2941_v58 }
 0x5ee   : > { %3108 = vst [vmem:[%s3787_s30 + $0x70] sm:$0xff] %v3092_v24  ;;  %v3041_v4 = vadd.f32 %v3022_v10, %v5652_v6 }
 0x5f0   : > { %v3061_v18 = vadd.f32 %v5663_v51, %v3041_v4 }
 0x5f2   : > { %v3077_v53 = vmul.f32 0.5, %v3061_v18 }
 0x5f3   : > { %v3024_v36 = vpop.f32.mrf.mxu2 }
 0x5f4   : > { %v3093_v38 = vadd.f32 %v3077_v53, %v6421_v50 }
 0x5f6   : > { %3109 = vst [vmem:[%s3787_s30 + $0x78] sm:$0xff] %v3093_v38 }
 0x5f7   : > { %3556 = shalt.err (!%p3553_p0)
}
 0x5f8   : > { %s3641_s30 = smov 128   ;;  %s3642_s15 = smov 8  }
 0x5f9   : > { %3308 = dma.vmem_to_hbm [thread:$0]  (%p3725_p3), %s3127_s22, 2048, %s3129_s9, %s3111_s1, %s3641_s30, %s3641_s30, %s3642_s15  }
 0x5fa PF: > { %p3325_p1 = scmp.ge.s32.totalorder %s3633_s25, 2  ;;  %s3143_s17 = sand.u32 1, %s3605_s18  }
 0x5fb   : > { %s3144_s27 = scalar_lea.sflag [#allocation6], %s3143_s17 }
 0x5fc   : > { %p3318_p2 = pnand %p3325_p1, %p3734_p8 }
 0x5fe   : > { %p3319_p4 = pneg %p3318_p2 }
 0x600   : > { %3600 = dma.done.wait (%p3319_p4), %s3144_s27, 2048  }
 0x601   : > { %3602 = vsyncadd (%p3319_p4), %s3144_s27, 4294965248  ;;  %s20_s25 = sadd.s32 1, %s3633_s25   ;;  %s6423_s22 = sld [smem:[#allocation18_spill]] }
 0x602   : > { %p17_p5 = scmp.ge.s32.totalorder %s20_s25, 6   ;;  %s6424_s7 = sld [smem:[#allocation19_spill]] }
 0x603   : > { %s6425_s24 = sld [smem:[#allocation20_spill]]  ;;  %s6426_s18 = smov %s3609_s19 }
 0x604   : > { %s6427_s19 = smov %s3613_s20  ;;  %s6428_s20 = smov %s3755_s16 }
 0x605   : > { %s6429_s21 = smov %s3625_s23  ;;  %19 = sbr.rel (!%p17_p5) target bundleno = 10 (0xa), region = 86 }
 0x608   : > { %s6430_s23 = smov %s6424_s7 }
 0x60a   :  { %3150 = vsyncpa [#allocation5], 1 }
 0x60b   :  { %3152 = vsyncpa [#allocation5 + $0x1], 1 }
 0x60c   :  { %3153 = vsyncpa [#allocation8], 1 }
 0x60d   :  { %3154 = vsyncpa [#allocation6], 1 }
 0x60e   :  { %3156 = vsyncpa [#allocation6 + $0x1], 1 }
 0x60f   :  { %3157 = vsyncmov [#allocation3] }
 0x612   :  { %s3158_s8 = vpop.sfrf %3157 }
 0x613   :  { %p3250_p3 = scmp.ne.s32.totalorder %s3158_s8, 0 }
 0x615   :  { %3162 = shalt.err (%p3250_p3)  }

</bundles_post_ra>
